<compile_context>
chip_gen: v5e
topology: v5e:2x2
jax: 0.10.0
libtpu: 0.0.40
codegen_flags: <defaults>
</compile_context>

<pallas_src>
import functools

import jax
import jax.numpy as jnp
from jax.experimental import pallas as pl
from jax.experimental.pallas import tpu as pltpu

NEG_SLOPE = 0.01   # torch.nn.LeakyReLU default
LANES = 128


# ---------------------------------------------------------------------------
# Kernels
# ---------------------------------------------------------------------------

def inv_dist_kernel(geo_ref, invd_ref, *, neighbor, pos_dim):
    """Per-node, per-neighbor inverse distance (computed once per graph).

    geo_ref : (TN, P*(K+1)) packed: [0:P] = dst pos, [P + p*K + k] = src pos
              coordinate p of neighbor k (coordinate axis unrolled in Python so
              the lane axis is always the neighbor axis).
    invd_ref: (TN, K)       1/dist with the torch red_func rule
              (dist == 0 -> dist := 0.5  =>  1/dist == 2.0).
    """
    tn = geo_ref.shape[0]
    d2 = jnp.zeros((tn, neighbor), jnp.float32)
    for p in range(pos_dim):
        dst = geo_ref[:, p:p + 1]
        src = geo_ref[:, pos_dim + p * neighbor: pos_dim + (p + 1) * neighbor]
        diff = dst - src
        d2 = d2 + diff * diff
    # norm == 0  <=>  d2 == 0 ; rsqrt(0)=inf is safely masked by the where.
    invd_ref[...] = jnp.where(d2 == 0.0, jnp.float32(2.0), jax.lax.rsqrt(d2))


def gnn_layer_kernel(msgs_ref, invd_ref, w_ref, b_ref, out_ref,
                     *, neighbor, in_feats, apply_act):
    """One GnnLayer for a tile of nodes.

    msgs_ref : (TN, K*F)    gathered source features, layout [k*F + f]
    invd_ref : (TN, K)      per-neighbor inverse distance
    w_ref    : (K*F, Opad)  layer weight (zero-padded columns beyond O)
    b_ref    : (1,  Opad)   layer bias   (zero-padded columns beyond O)
    out_ref  : (TN, Opad)   new node feature 'h'
    """
    tn = msgs_ref.shape[0]
    o_pad = out_ref.shape[1]

    # h1 = sum_k (msgs_k * inv_dist_k) @ W_k   -- K accumulating MXU matmuls,
    # no full-width (TN, K*F) select/scale pass on the VALU.
    acc = jnp.zeros((tn, o_pad), jnp.float32)
    for k in range(neighbor):
        wow_k = msgs_ref[:, k * in_feats:(k + 1) * in_feats] * invd_ref[:, k:k + 1]
        acc = acc + jnp.dot(wow_k, w_ref[k * in_feats:(k + 1) * in_feats, :],
                            preferred_element_type=jnp.float32)

    h1 = acc + b_ref[...]
    if apply_act:
        h1 = jnp.where(h1 >= 0.0, h1, NEG_SLOPE * h1)              # LeakyReLU
    out_ref[...] = h1.astype(out_ref.dtype)


# ---------------------------------------------------------------------------
# Wrappers
# ---------------------------------------------------------------------------

def choose_tile_n(n, *, max_tile=1024, min_tile=128, min_grid=4):
    """Largest power-of-two tile <= max_tile that keeps the grid >= min_grid
    steps (so the single 'parallel' axis can feed v7x's 2 TensorCores with
    pipeline slack), but never below min_tile."""
    t = max_tile
    while t > min_tile and pl.cdiv(n, t) < min_grid:
        t //= 2
    return t


def compute_inv_dist(pos, adj, *, tile_n):
    """(N, K) inverse distances; depends only on the graph, computed once."""
    N, P = pos.shape
    K = adj.shape[1]
    assert N % tile_n == 0

    # Pack dst pos + gathered src pos into ONE lane-packed input (width P*(K+1))
    # instead of two narrow blocks. Plain-JAX glue, one-time cost.
    srcpos = jnp.take(pos, adj, axis=0)                              # (N, K, P)
    srcpos = jnp.transpose(srcpos, (0, 2, 1)).reshape(N, P * K)      # (N, P*K)
    geo = jnp.concatenate([pos, srcpos], axis=1)                     # (N, P*(K+1))

    kernel = functools.partial(inv_dist_kernel, neighbor=K, pos_dim=P)
    return pl.pallas_call(
        kernel,
        out_shape=jax.ShapeDtypeStruct((N, K), jnp.float32),
        grid=(N // tile_n,),
        in_specs=[pl.BlockSpec((tile_n, P * (K + 1)), lambda i: (i, 0))],
        out_specs=pl.BlockSpec((tile_n, K), lambda i: (i, 0)),
        compiler_params=pltpu.CompilerParams(
            dimension_semantics=("parallel",)),
    )(geo)


def gnn_layer(h, inv_dist, adj, weight, bias, apply_act, *, tile_n):
    """Apply one GnnLayer to all nodes. Returns new h of shape (N, O_pad)."""
    N, F = h.shape
    K = adj.shape[1]
    KF = K * F
    O = weight.shape[1]
    assert weight.shape[0] == KF
    assert N % tile_n == 0, "caller must pad N to a multiple of tile_n"

    # Lane-dense output: zero-pad O up to a multiple of 128 (unmasked stores).
    # Padded weight/bias columns are zero, so the extra lanes carry zeros.
    O_pad = ((O + LANES - 1) // LANES) * LANES
    if O_pad != O:
        weight = jnp.pad(weight, ((0, 0), (0, O_pad - O)))
        bias = jnp.pad(bias, ((0, 0), (0, O_pad - O)))

    # Mailbox construction (graph gather) -- plain-JAX glue, flattened to 2-D so
    # the kernel blocks are lane-dense.
    # TODO(synk): fuse this gather into the kernel via scalar-prefetched adj in
    # SMEM + manual DMA row gather of h from HBM to kill the K*F HBM round trip.
    msgs = jnp.take(h, adj, axis=0).reshape(N, KF)                   # (N, K*F)

    kernel = functools.partial(
        gnn_layer_kernel, neighbor=K, in_feats=F, apply_act=apply_act)

    return pl.pallas_call(
        kernel,
        out_shape=jax.ShapeDtypeStruct((N, O_pad), jnp.float32),
        grid=(N // tile_n,),
        in_specs=[
            pl.BlockSpec((tile_n, KF), lambda i: (i, 0)),
            pl.BlockSpec((tile_n, K), lambda i: (i, 0)),
            pl.BlockSpec((KF, O_pad), lambda i: (0, 0)),
            pl.BlockSpec((1, O_pad), lambda i: (0, 0)),
        ],
        out_specs=pl.BlockSpec((tile_n, O_pad), lambda i: (i, 0)),
        compiler_params=pltpu.CompilerParams(
            dimension_semantics=("parallel",)),
    )(msgs, inv_dist, weight, bias)


def xavier_uniform(key, shape, gain=1.0):
    fan_in, fan_out = shape
    bound = gain * jnp.sqrt(6.0 / (fan_in + fan_out))
    return jax.random.uniform(key, shape, jnp.float32, -bound, bound)


def build_model_params(key, in_feats, h_feats, out_feats, neighbor, num_layers):
    """Mirror Model.build_model: input layer, num_layers hidden layers, output layer."""
    relu_gain = jnp.sqrt(2.0)      # nn.init.calculate_gain('relu')
    layer_dims = ([(in_feats, h_feats, False)] +
                  [(h_feats, h_feats, True)] * num_layers +
                  [(h_feats, out_feats, False)])
    params = []
    for (fin, fout, act) in layer_dims:
        key, kw, kb = jax.random.split(key, 3)
        gain = relu_gain if act else 1.0
        w = xavier_uniform(kw, (neighbor * fin, fout), gain)
        b = xavier_uniform(kb, (1, fout), gain)
        params.append((w, b, act))
    return params


def model_forward(h, pos, adj, params, *, max_tile_n=1024):
    """Model.forward: run every GnnLayer, return final node features (N, out)."""
    N = h.shape[0]
    tile_n = choose_tile_n(N, max_tile=max_tile_n)
    N_pad = pl.cdiv(N, tile_n) * tile_n
    if N_pad != N:
        pad = N_pad - N
        h = jnp.pad(h, ((0, pad), (0, 0)))
        pos = jnp.pad(pos, ((0, pad), (0, 0)))
        adj = jnp.pad(adj, ((0, pad), (0, 0)))   # padded rows gather node 0

    # Distances depend only on (pos, adj): compute the (N, K) inverse-distance
    # table once and reuse it in every layer.
    inv_dist = compute_inv_dist(pos, adj, tile_n=tile_n)

    out_feats = params[-1][0].shape[1]
    for li, (w, b, act) in enumerate(params):
        fout = w.shape[1]
        h = gnn_layer(h, inv_dist, adj, w, b, act, tile_n=tile_n)
        # Keep the padded lane-dense h between layers; only trim if the padded
        # width would not match the next layer's expected fan-in.
        if li + 1 < len(params) and h.shape[1] != fout:
            h = h[:, :fout]
    return h[:N, :out_feats]


def reference_forward(h, pos, adj, params):
    """Pure-JAX mirror of the torch Model.forward (dense fixed-degree graph)."""
    N = h.shape[0]
    diff = pos[:, None, :] - pos[adj]                      # (N, K, P)
    dist = jnp.sqrt(jnp.sum(diff * diff, axis=2, keepdims=True))
    dist = jnp.where(dist == 0.0, 0.5, dist)               # (N, K, 1)
    for (w, b, act) in params:
        wow = (h[adj] / dist).reshape(N, -1)               # (N, K*F)
        h = jnp.matmul(wow, w, precision=jax.lax.Precision.HIGHEST) + b
        if act:
            h = jnp.where(h >= 0.0, h, NEG_SLOPE * h)
    return h


if __name__ == "__main__":
    key = jax.random.PRNGKey(0)

    N = 500          # number of nodes (deliberately not a tile multiple)
    K = 4            # neighbor (fixed in-degree)
    IN_FEATS = 32    # K * IN_FEATS = 128  -> lane-dense mailbox / contraction
    H_FEATS = 128
    OUT_FEATS = 8
    POS_DIM = 3
    NUM_LAYERS = 1

    k_h, k_pos, k_params = jax.random.split(key, 3)
    h0 = jax.random.normal(k_h, (N, IN_FEATS), jnp.float32)
    pos = jax.random.normal(k_pos, (N, POS_DIM), jnp.float32)
    # Deterministic fixed-degree neighbor table: node i's k-th neighbor is (i+k+1) mod N.
    adj = jnp.stack([(jnp.arange(N) + k + 1) % N for k in range(K)],
                    axis=1).astype(jnp.int32)

    params = build_model_params(k_params, IN_FEATS, H_FEATS, OUT_FEATS, K, NUM_LAYERS)

    fwd = jax.jit(lambda h_, p_, a_: model_forward(h_, p_, a_, params))
    out = fwd(h0, pos, adj)
    jax.block_until_ready(out)

    assert out.shape == (N, OUT_FEATS)
    assert bool(jnp.all(jnp.isfinite(out)))

    ref = reference_forward(h0, pos, adj, params)
    assert bool(jnp.allclose(out, ref, rtol=1e-3, atol=1e-3)), (
        float(jnp.max(jnp.abs(out - ref))))

    print("KERNEL_OK")
</pallas_src>

<mosaic_0001>
module attributes {stable_mosaic.version = 11 : i64} {
  func.func @inv_dist_kernel(%arg0: i32, %arg1: memref<128x15xf32, #tpu.memory_space<vmem>>, %arg2: memref<128x4xf32, #tpu.memory_space<vmem>>) attributes {dimension_semantics = [#tpu.dimension_semantics<parallel>], iteration_bounds = array<i64: 4>, scalar_prefetch = 0 : i64, scratch_operands = 0 : i64, tpu.core_type = #tpu.core_type<tc>, window_params = [{transform_indices = @transform_0, window_bounds = array<i64: 128, 15>}, {transform_indices = @transform_1, window_bounds = array<i64: 128, 4>}]} {
    %cst = arith.constant 0.000000e+00 : f32
    %0 = vector.broadcast %cst : f32 to vector<128x4xf32>
    %c0 = arith.constant 0 : index
    %c0_0 = arith.constant 0 : index
    %1 = vector.load %arg1[%c0, %c0_0] : memref<128x15xf32, #tpu.memory_space<vmem>>, vector<128x1xf32>
    %c0_1 = arith.constant 0 : index
    %c3 = arith.constant 3 : index
    %2 = vector.load %arg1[%c0_1, %c3] : memref<128x15xf32, #tpu.memory_space<vmem>>, vector<128x4xf32>
    %3 = vector.broadcast %1 : vector<128x1xf32> to vector<128x4xf32>
    %4 = arith.subf %3, %2 : vector<128x4xf32>
    %5 = arith.mulf %4, %4 : vector<128x4xf32>
    %6 = arith.addf %0, %5 : vector<128x4xf32>
    %c0_2 = arith.constant 0 : index
    %c1 = arith.constant 1 : index
    %7 = vector.load %arg1[%c0_2, %c1] : memref<128x15xf32, #tpu.memory_space<vmem>>, vector<128x1xf32>
    %c0_3 = arith.constant 0 : index
    %c7 = arith.constant 7 : index
    %8 = vector.load %arg1[%c0_3, %c7] : memref<128x15xf32, #tpu.memory_space<vmem>>, vector<128x4xf32>
    %9 = vector.broadcast %7 : vector<128x1xf32> to vector<128x4xf32>
    %10 = arith.subf %9, %8 : vector<128x4xf32>
    %11 = arith.mulf %10, %10 : vector<128x4xf32>
    %12 = arith.addf %6, %11 : vector<128x4xf32>
    %c0_4 = arith.constant 0 : index
    %c2 = arith.constant 2 : index
    %13 = vector.load %arg1[%c0_4, %c2] : memref<128x15xf32, #tpu.memory_space<vmem>>, vector<128x1xf32>
    %c0_5 = arith.constant 0 : index
    %c11 = arith.constant 11 : index
    %14 = vector.load %arg1[%c0_5, %c11] : memref<128x15xf32, #tpu.memory_space<vmem>>, vector<128x4xf32>
    %15 = vector.broadcast %13 : vector<128x1xf32> to vector<128x4xf32>
    %16 = arith.subf %15, %14 : vector<128x4xf32>
    %17 = arith.mulf %16, %16 : vector<128x4xf32>
    %18 = arith.addf %12, %17 : vector<128x4xf32>
    %cst_6 = arith.constant 0.000000e+00 : f32
    %19 = vector.broadcast %cst_6 : f32 to vector<128x4xf32>
    %20 = arith.cmpf oeq, %18, %19 : vector<128x4xf32>
    %21 = math.rsqrt %18 : vector<128x4xf32>
    %cst_7 = arith.constant 2.000000e+00 : f32
    %22 = vector.broadcast %cst_7 : f32 to vector<128x4xf32>
    %23 = arith.select %20, %22, %21 : vector<128x4xi1>, vector<128x4xf32>
    %c0_8 = arith.constant 0 : index
    %c0_9 = arith.constant 0 : index
    %24 = vector.load %arg2[%c0_8, %c0_9] : memref<128x4xf32, #tpu.memory_space<vmem>>, vector<128x4xf32>
    tpu.vector_store %arg2[%c0_8, %c0_9], %23 {strides = array<i32>} : memref<128x4xf32, #tpu.memory_space<vmem>>, vector<128x4xf32>,
    return
  }
  func.func @transform_0(%arg0: i32) -> (i32, i32) {
    %c0_i32 = arith.constant 0 : i32
    %c0_i32_0 = arith.constant 0 : i32
    return %arg0, %c0_i32 : i32, i32
  }
  func.func @transform_1(%arg0: i32) -> (i32, i32) {
    %c0_i32 = arith.constant 0 : i32
    %c0_i32_0 = arith.constant 0 : i32
    return %arg0, %c0_i32 : i32, i32
  }
}

module attributes {stable_mosaic.version = 11 : i64} {
  func.func @gnn_layer_kernel(%arg0: i32, %arg1: memref<128x128xf32, #tpu.memory_space<vmem>>, %arg2: memref<128x4xf32, #tpu.memory_space<vmem>>, %arg3: memref<128x128xf32, #tpu.memory_space<vmem>>, %arg4: memref<1x128xf32, #tpu.memory_space<vmem>>, %arg5: memref<128x128xf32, #tpu.memory_space<vmem>>) attributes {dimension_semantics = [#tpu.dimension_semantics<parallel>], iteration_bounds = array<i64: 4>, scalar_prefetch = 0 : i64, scratch_operands = 0 : i64, tpu.core_type = #tpu.core_type<tc>, window_params = [{transform_indices = @transform_0, window_bounds = array<i64: 128, 128>}, {transform_indices = @transform_1, window_bounds = array<i64: 128, 4>}, {pipeline_mode = #tpu.pipeline_mode<synchronous>, transform_indices = @transform_2, window_bounds = array<i64: 128, 128>}, {pipeline_mode = #tpu.pipeline_mode<synchronous>, transform_indices = @transform_3, window_bounds = array<i64: 1, 128>}, {transform_indices = @transform_4, window_bounds = array<i64: 128, 128>}]} {
    %cst = arith.constant 0.000000e+00 : f32
    %0 = vector.broadcast %cst : f32 to vector<128x128xf32>
    %c0 = arith.constant 0 : index
    %c0_0 = arith.constant 0 : index
    %1 = vector.load %arg1[%c0, %c0_0] : memref<128x128xf32, #tpu.memory_space<vmem>>, vector<128x32xf32>
    %c0_1 = arith.constant 0 : index
    %c0_2 = arith.constant 0 : index
    %2 = vector.load %arg2[%c0_1, %c0_2] : memref<128x4xf32, #tpu.memory_space<vmem>>, vector<128x1xf32>
    %3 = vector.broadcast %2 : vector<128x1xf32> to vector<128x32xf32>
    %4 = arith.mulf %1, %3 : vector<128x32xf32>
    %c0_3 = arith.constant 0 : index
    %c0_4 = arith.constant 0 : index
    %5 = vector.load %arg3[%c0_3, %c0_4] : memref<128x128xf32, #tpu.memory_space<vmem>>, vector<32x128xf32>
    %cst_5 = arith.constant dense<0.000000e+00> : vector<128x128xf32>
    %6 = tpu.matmul %4, %5, %cst_5 {dimension_numbers = #tpu.dot_dimension_numbers<[1], [0], [0], [1], [0, 0, 1, 1], [], []>} : vector<128x32xf32>, vector<32x128xf32>, vector<128x128xf32> -> vector<128x128xf32>
    %7 = arith.addf %0, %6 : vector<128x128xf32>
    %c0_6 = arith.constant 0 : index
    %c32 = arith.constant 32 : index
    %8 = vector.load %arg1[%c0_6, %c32] : memref<128x128xf32, #tpu.memory_space<vmem>>, vector<128x32xf32>
    %c0_7 = arith.constant 0 : index
    %c1 = arith.constant 1 : index
    %9 = vector.load %arg2[%c0_7, %c1] : memref<128x4xf32, #tpu.memory_space<vmem>>, vector<128x1xf32>
    %10 = vector.broadcast %9 : vector<128x1xf32> to vector<128x32xf32>
    %11 = arith.mulf %8, %10 : vector<128x32xf32>
    %c32_8 = arith.constant 32 : index
    %c0_9 = arith.constant 0 : index
    %12 = vector.load %arg3[%c32_8, %c0_9] : memref<128x128xf32, #tpu.memory_space<vmem>>, vector<32x128xf32>
    %cst_10 = arith.constant dense<0.000000e+00> : vector<128x128xf32>
    %13 = tpu.matmul %11, %12, %cst_10 {dimension_numbers = #tpu.dot_dimension_numbers<[1], [0], [0], [1], [0, 0, 1, 1], [], []>} : vector<128x32xf32>, vector<32x128xf32>, vector<128x128xf32> -> vector<128x128xf32>
    %14 = arith.addf %7, %13 : vector<128x128xf32>
    %c0_11 = arith.constant 0 : index
    %c64 = arith.constant 64 : index
    %15 = vector.load %arg1[%c0_11, %c64] : memref<128x128xf32, #tpu.memory_space<vmem>>, vector<128x32xf32>
    %c0_12 = arith.constant 0 : index
    %c2 = arith.constant 2 : index
    %16 = vector.load %arg2[%c0_12, %c2] : memref<128x4xf32, #tpu.memory_space<vmem>>, vector<128x1xf32>
    %17 = vector.broadcast %16 : vector<128x1xf32> to vector<128x32xf32>
    %18 = arith.mulf %15, %17 : vector<128x32xf32>
    %c64_13 = arith.constant 64 : index
    %c0_14 = arith.constant 0 : index
    %19 = vector.load %arg3[%c64_13, %c0_14] : memref<128x128xf32, #tpu.memory_space<vmem>>, vector<32x128xf32>
    %cst_15 = arith.constant dense<0.000000e+00> : vector<128x128xf32>
    %20 = tpu.matmul %18, %19, %cst_15 {dimension_numbers = #tpu.dot_dimension_numbers<[1], [0], [0], [1], [0, 0, 1, 1], [], []>} : vector<128x32xf32>, vector<32x128xf32>, vector<128x128xf32> -> vector<128x128xf32>
    %21 = arith.addf %14, %20 : vector<128x128xf32>
    %c0_16 = arith.constant 0 : index
    %c96 = arith.constant 96 : index
    %22 = vector.load %arg1[%c0_16, %c96] : memref<128x128xf32, #tpu.memory_space<vmem>>, vector<128x32xf32>
    %c0_17 = arith.constant 0 : index
    %c3 = arith.constant 3 : index
    %23 = vector.load %arg2[%c0_17, %c3] : memref<128x4xf32, #tpu.memory_space<vmem>>, vector<128x1xf32>
    %24 = vector.broadcast %23 : vector<128x1xf32> to vector<128x32xf32>
    %25 = arith.mulf %22, %24 : vector<128x32xf32>
    %c96_18 = arith.constant 96 : index
    %c0_19 = arith.constant 0 : index
    %26 = vector.load %arg3[%c96_18, %c0_19] : memref<128x128xf32, #tpu.memory_space<vmem>>, vector<32x128xf32>
    %cst_20 = arith.constant dense<0.000000e+00> : vector<128x128xf32>
    %27 = tpu.matmul %25, %26, %cst_20 {dimension_numbers = #tpu.dot_dimension_numbers<[1], [0], [0], [1], [0, 0, 1, 1], [], []>} : vector<128x32xf32>, vector<32x128xf32>, vector<128x128xf32> -> vector<128x128xf32>
    %28 = arith.addf %21, %27 : vector<128x128xf32>
    %c0_21 = arith.constant 0 : index
    %c0_22 = arith.constant 0 : index
    %29 = vector.load %arg4[%c0_21, %c0_22] : memref<1x128xf32, #tpu.memory_space<vmem>>, vector<1x128xf32>
    %30 = vector.broadcast %29 : vector<1x128xf32> to vector<128x128xf32>
    %31 = arith.addf %28, %30 : vector<128x128xf32>
    %c0_23 = arith.constant 0 : index
    %c0_24 = arith.constant 0 : index
    %32 = vector.load %arg5[%c0_23, %c0_24] : memref<128x128xf32, #tpu.memory_space<vmem>>, vector<128x128xf32>
    tpu.vector_store %arg5[%c0_23, %c0_24], %31 {strides = array<i32>} : memref<128x128xf32, #tpu.memory_space<vmem>>, vector<128x128xf32>,
    return
  }
  func.func @transform_0(%arg0: i32) -> (i32, i32) {
    %c0_i32 = arith.constant 0 : i32
    %c0_i32_0 = arith.constant 0 : i32
    return %arg0, %c0_i32 : i32, i32
  }
  func.func @transform_1(%arg0: i32) -> (i32, i32) {
    %c0_i32 = arith.constant 0 : i32
    %c0_i32_0 = arith.constant 0 : i32
    return %arg0, %c0_i32 : i32, i32
  }
  func.func @transform_2(%arg0: i32) -> (i32, i32) {
    %c0_i32 = arith.constant 0 : i32
    %c0_i32_0 = arith.constant 0 : i32
    %c0_i32_1 = arith.constant 0 : i32
    return %c0_i32, %c0_i32_0 : i32, i32
  }
  func.func @transform_3(%arg0: i32) -> (i32, i32) {
    %c0_i32 = arith.constant 0 : i32
    %c0_i32_0 = arith.constant 0 : i32
    %c0_i32_1 = arith.constant 0 : i32
    return %c0_i32, %c0_i32_0 : i32, i32
  }
  func.func @transform_4(%arg0: i32) -> (i32, i32) {
    %c0_i32 = arith.constant 0 : i32
    %c0_i32_0 = arith.constant 0 : i32
    return %arg0, %c0_i32 : i32, i32
  }
}

module attributes {stable_mosaic.version = 11 : i64} {
  func.func @gnn_layer_kernel(%arg0: i32, %arg1: memref<128x512xf32, #tpu.memory_space<vmem>>, %arg2: memref<128x4xf32, #tpu.memory_space<vmem>>, %arg3: memref<512x128xf32, #tpu.memory_space<vmem>>, %arg4: memref<1x128xf32, #tpu.memory_space<vmem>>, %arg5: memref<128x128xf32, #tpu.memory_space<vmem>>) attributes {dimension_semantics = [#tpu.dimension_semantics<parallel>], iteration_bounds = array<i64: 4>, scalar_prefetch = 0 : i64, scratch_operands = 0 : i64, tpu.core_type = #tpu.core_type<tc>, window_params = [{transform_indices = @transform_0, window_bounds = array<i64: 128, 512>}, {transform_indices = @transform_1, window_bounds = array<i64: 128, 4>}, {pipeline_mode = #tpu.pipeline_mode<synchronous>, transform_indices = @transform_2, window_bounds = array<i64: 512, 128>}, {pipeline_mode = #tpu.pipeline_mode<synchronous>, transform_indices = @transform_3, window_bounds = array<i64: 1, 128>}, {transform_indices = @transform_4, window_bounds = array<i64: 128, 128>}]} {
    %cst = arith.constant 0.000000e+00 : f32
    %0 = vector.broadcast %cst : f32 to vector<128x128xf32>
    %c0 = arith.constant 0 : index
    %c0_0 = arith.constant 0 : index
    %1 = vector.load %arg1[%c0, %c0_0] : memref<128x512xf32, #tpu.memory_space<vmem>>, vector<128x128xf32>
    %c0_1 = arith.constant 0 : index
    %c0_2 = arith.constant 0 : index
    %2 = vector.load %arg2[%c0_1, %c0_2] : memref<128x4xf32, #tpu.memory_space<vmem>>, vector<128x1xf32>
    %3 = vector.broadcast %2 : vector<128x1xf32> to vector<128x128xf32>
    %4 = arith.mulf %1, %3 : vector<128x128xf32>
    %c0_3 = arith.constant 0 : index
    %c0_4 = arith.constant 0 : index
    %5 = vector.load %arg3[%c0_3, %c0_4] : memref<512x128xf32, #tpu.memory_space<vmem>>, vector<128x128xf32>
    %cst_5 = arith.constant dense<0.000000e+00> : vector<128x128xf32>
    %6 = tpu.matmul %4, %5, %cst_5 {dimension_numbers = #tpu.dot_dimension_numbers<[1], [0], [0], [1], [0, 0, 1, 1], [], []>} : vector<128x128xf32>, vector<128x128xf32>, vector<128x128xf32> -> vector<128x128xf32>
    %7 = arith.addf %0, %6 : vector<128x128xf32>
    %c0_6 = arith.constant 0 : index
    %c128 = arith.constant 128 : index
    %8 = vector.load %arg1[%c0_6, %c128] : memref<128x512xf32, #tpu.memory_space<vmem>>, vector<128x128xf32>
    %c0_7 = arith.constant 0 : index
    %c1 = arith.constant 1 : index
    %9 = vector.load %arg2[%c0_7, %c1] : memref<128x4xf32, #tpu.memory_space<vmem>>, vector<128x1xf32>
    %10 = vector.broadcast %9 : vector<128x1xf32> to vector<128x128xf32>
    %11 = arith.mulf %8, %10 : vector<128x128xf32>
    %c128_8 = arith.constant 128 : index
    %c0_9 = arith.constant 0 : index
    %12 = vector.load %arg3[%c128_8, %c0_9] : memref<512x128xf32, #tpu.memory_space<vmem>>, vector<128x128xf32>
    %cst_10 = arith.constant dense<0.000000e+00> : vector<128x128xf32>
    %13 = tpu.matmul %11, %12, %cst_10 {dimension_numbers = #tpu.dot_dimension_numbers<[1], [0], [0], [1], [0, 0, 1, 1], [], []>} : vector<128x128xf32>, vector<128x128xf32>, vector<128x128xf32> -> vector<128x128xf32>
    %14 = arith.addf %7, %13 : vector<128x128xf32>
    %c0_11 = arith.constant 0 : index
    %c256 = arith.constant 256 : index
    %15 = vector.load %arg1[%c0_11, %c256] : memref<128x512xf32, #tpu.memory_space<vmem>>, vector<128x128xf32>
    %c0_12 = arith.constant 0 : index
    %c2 = arith.constant 2 : index
    %16 = vector.load %arg2[%c0_12, %c2] : memref<128x4xf32, #tpu.memory_space<vmem>>, vector<128x1xf32>
    %17 = vector.broadcast %16 : vector<128x1xf32> to vector<128x128xf32>
    %18 = arith.mulf %15, %17 : vector<128x128xf32>
    %c256_13 = arith.constant 256 : index
    %c0_14 = arith.constant 0 : index
    %19 = vector.load %arg3[%c256_13, %c0_14] : memref<512x128xf32, #tpu.memory_space<vmem>>, vector<128x128xf32>
    %cst_15 = arith.constant dense<0.000000e+00> : vector<128x128xf32>
    %20 = tpu.matmul %18, %19, %cst_15 {dimension_numbers = #tpu.dot_dimension_numbers<[1], [0], [0], [1], [0, 0, 1, 1], [], []>} : vector<128x128xf32>, vector<128x128xf32>, vector<128x128xf32> -> vector<128x128xf32>
    %21 = arith.addf %14, %20 : vector<128x128xf32>
    %c0_16 = arith.constant 0 : index
    %c384 = arith.constant 384 : index
    %22 = vector.load %arg1[%c0_16, %c384] : memref<128x512xf32, #tpu.memory_space<vmem>>, vector<128x128xf32>
    %c0_17 = arith.constant 0 : index
    %c3 = arith.constant 3 : index
    %23 = vector.load %arg2[%c0_17, %c3] : memref<128x4xf32, #tpu.memory_space<vmem>>, vector<128x1xf32>
    %24 = vector.broadcast %23 : vector<128x1xf32> to vector<128x128xf32>
    %25 = arith.mulf %22, %24 : vector<128x128xf32>
    %c384_18 = arith.constant 384 : index
    %c0_19 = arith.constant 0 : index
    %26 = vector.load %arg3[%c384_18, %c0_19] : memref<512x128xf32, #tpu.memory_space<vmem>>, vector<128x128xf32>
    %cst_20 = arith.constant dense<0.000000e+00> : vector<128x128xf32>
    %27 = tpu.matmul %25, %26, %cst_20 {dimension_numbers = #tpu.dot_dimension_numbers<[1], [0], [0], [1], [0, 0, 1, 1], [], []>} : vector<128x128xf32>, vector<128x128xf32>, vector<128x128xf32> -> vector<128x128xf32>
    %28 = arith.addf %21, %27 : vector<128x128xf32>
    %c0_21 = arith.constant 0 : index
    %c0_22 = arith.constant 0 : index
    %29 = vector.load %arg4[%c0_21, %c0_22] : memref<1x128xf32, #tpu.memory_space<vmem>>, vector<1x128xf32>
    %30 = vector.broadcast %29 : vector<1x128xf32> to vector<128x128xf32>
    %31 = arith.addf %28, %30 : vector<128x128xf32>
    %cst_23 = arith.constant 0.000000e+00 : f32
    %32 = vector.broadcast %cst_23 : f32 to vector<128x128xf32>
    %33 = arith.cmpf oge, %31, %32 : vector<128x128xf32>
    %cst_24 = arith.constant 0.00999999977 : f32
    %34 = vector.broadcast %cst_24 : f32 to vector<128x128xf32>
    %35 = arith.mulf %34, %31 : vector<128x128xf32>
    %36 = arith.select %33, %31, %35 : vector<128x128xi1>, vector<128x128xf32>
    %c0_25 = arith.constant 0 : index
    %c0_26 = arith.constant 0 : index
    %37 = vector.load %arg5[%c0_25, %c0_26] : memref<128x128xf32, #tpu.memory_space<vmem>>, vector<128x128xf32>
    tpu.vector_store %arg5[%c0_25, %c0_26], %36 {strides = array<i32>} : memref<128x128xf32, #tpu.memory_space<vmem>>, vector<128x128xf32>,
    return
  }
  func.func @transform_0(%arg0: i32) -> (i32, i32) {
    %c0_i32 = arith.constant 0 : i32
    %c0_i32_0 = arith.constant 0 : i32
    return %arg0, %c0_i32 : i32, i32
  }
  func.func @transform_1(%arg0: i32) -> (i32, i32) {
    %c0_i32 = arith.constant 0 : i32
    %c0_i32_0 = arith.constant 0 : i32
    return %arg0, %c0_i32 : i32, i32
  }
  func.func @transform_2(%arg0: i32) -> (i32, i32) {
    %c0_i32 = arith.constant 0 : i32
    %c0_i32_0 = arith.constant 0 : i32
    %c0_i32_1 = arith.constant 0 : i32
    return %c0_i32, %c0_i32_0 : i32, i32
  }
  func.func @transform_3(%arg0: i32) -> (i32, i32) {
    %c0_i32 = arith.constant 0 : i32
    %c0_i32_0 = arith.constant 0 : i32
    %c0_i32_1 = arith.constant 0 : i32
    return %c0_i32, %c0_i32_0 : i32, i32
  }
  func.func @transform_4(%arg0: i32) -> (i32, i32) {
    %c0_i32 = arith.constant 0 : i32
    %c0_i32_0 = arith.constant 0 : i32
    return %arg0, %c0_i32 : i32, i32
  }
}

module attributes {stable_mosaic.version = 11 : i64} {
  func.func @gnn_layer_kernel(%arg0: i32, %arg1: memref<128x512xf32, #tpu.memory_space<vmem>>, %arg2: memref<128x4xf32, #tpu.memory_space<vmem>>, %arg3: memref<512x128xf32, #tpu.memory_space<vmem>>, %arg4: memref<1x128xf32, #tpu.memory_space<vmem>>, %arg5: memref<128x128xf32, #tpu.memory_space<vmem>>) attributes {dimension_semantics = [#tpu.dimension_semantics<parallel>], iteration_bounds = array<i64: 4>, scalar_prefetch = 0 : i64, scratch_operands = 0 : i64, tpu.core_type = #tpu.core_type<tc>, window_params = [{transform_indices = @transform_0, window_bounds = array<i64: 128, 512>}, {transform_indices = @transform_1, window_bounds = array<i64: 128, 4>}, {pipeline_mode = #tpu.pipeline_mode<synchronous>, transform_indices = @transform_2, window_bounds = array<i64: 512, 128>}, {pipeline_mode = #tpu.pipeline_mode<synchronous>, transform_indices = @transform_3, window_bounds = array<i64: 1, 128>}, {transform_indices = @transform_4, window_bounds = array<i64: 128, 128>}]} {
    %cst = arith.constant 0.000000e+00 : f32
    %0 = vector.broadcast %cst : f32 to vector<128x128xf32>
    %c0 = arith.constant 0 : index
    %c0_0 = arith.constant 0 : index
    %1 = vector.load %arg1[%c0, %c0_0] : memref<128x512xf32, #tpu.memory_space<vmem>>, vector<128x128xf32>
    %c0_1 = arith.constant 0 : index
    %c0_2 = arith.constant 0 : index
    %2 = vector.load %arg2[%c0_1, %c0_2] : memref<128x4xf32, #tpu.memory_space<vmem>>, vector<128x1xf32>
    %3 = vector.broadcast %2 : vector<128x1xf32> to vector<128x128xf32>
    %4 = arith.mulf %1, %3 : vector<128x128xf32>
    %c0_3 = arith.constant 0 : index
    %c0_4 = arith.constant 0 : index
    %5 = vector.load %arg3[%c0_3, %c0_4] : memref<512x128xf32, #tpu.memory_space<vmem>>, vector<128x128xf32>
    %cst_5 = arith.constant dense<0.000000e+00> : vector<128x128xf32>
    %6 = tpu.matmul %4, %5, %cst_5 {dimension_numbers = #tpu.dot_dimension_numbers<[1], [0], [0], [1], [0, 0, 1, 1], [], []>} : vector<128x128xf32>, vector<128x128xf32>, vector<128x128xf32> -> vector<128x128xf32>
    %7 = arith.addf %0, %6 : vector<128x128xf32>
    %c0_6 = arith.constant 0 : index
    %c128 = arith.constant 128 : index
    %8 = vector.load %arg1[%c0_6, %c128] : memref<128x512xf32, #tpu.memory_space<vmem>>, vector<128x128xf32>
    %c0_7 = arith.constant 0 : index
    %c1 = arith.constant 1 : index
    %9 = vector.load %arg2[%c0_7, %c1] : memref<128x4xf32, #tpu.memory_space<vmem>>, vector<128x1xf32>
    %10 = vector.broadcast %9 : vector<128x1xf32> to vector<128x128xf32>
    %11 = arith.mulf %8, %10 : vector<128x128xf32>
    %c128_8 = arith.constant 128 : index
    %c0_9 = arith.constant 0 : index
    %12 = vector.load %arg3[%c128_8, %c0_9] : memref<512x128xf32, #tpu.memory_space<vmem>>, vector<128x128xf32>
    %cst_10 = arith.constant dense<0.000000e+00> : vector<128x128xf32>
    %13 = tpu.matmul %11, %12, %cst_10 {dimension_numbers = #tpu.dot_dimension_numbers<[1], [0], [0], [1], [0, 0, 1, 1], [], []>} : vector<128x128xf32>, vector<128x128xf32>, vector<128x128xf32> -> vector<128x128xf32>
    %14 = arith.addf %7, %13 : vector<128x128xf32>
    %c0_11 = arith.constant 0 : index
    %c256 = arith.constant 256 : index
    %15 = vector.load %arg1[%c0_11, %c256] : memref<128x512xf32, #tpu.memory_space<vmem>>, vector<128x128xf32>
    %c0_12 = arith.constant 0 : index
    %c2 = arith.constant 2 : index
    %16 = vector.load %arg2[%c0_12, %c2] : memref<128x4xf32, #tpu.memory_space<vmem>>, vector<128x1xf32>
    %17 = vector.broadcast %16 : vector<128x1xf32> to vector<128x128xf32>
    %18 = arith.mulf %15, %17 : vector<128x128xf32>
    %c256_13 = arith.constant 256 : index
    %c0_14 = arith.constant 0 : index
    %19 = vector.load %arg3[%c256_13, %c0_14] : memref<512x128xf32, #tpu.memory_space<vmem>>, vector<128x128xf32>
    %cst_15 = arith.constant dense<0.000000e+00> : vector<128x128xf32>
    %20 = tpu.matmul %18, %19, %cst_15 {dimension_numbers = #tpu.dot_dimension_numbers<[1], [0], [0], [1], [0, 0, 1, 1], [], []>} : vector<128x128xf32>, vector<128x128xf32>, vector<128x128xf32> -> vector<128x128xf32>
    %21 = arith.addf %14, %20 : vector<128x128xf32>
    %c0_16 = arith.constant 0 : index
    %c384 = arith.constant 384 : index
    %22 = vector.load %arg1[%c0_16, %c384] : memref<128x512xf32, #tpu.memory_space<vmem>>, vector<128x128xf32>
    %c0_17 = arith.constant 0 : index
    %c3 = arith.constant 3 : index
    %23 = vector.load %arg2[%c0_17, %c3] : memref<128x4xf32, #tpu.memory_space<vmem>>, vector<128x1xf32>
    %24 = vector.broadcast %23 : vector<128x1xf32> to vector<128x128xf32>
    %25 = arith.mulf %22, %24 : vector<128x128xf32>
    %c384_18 = arith.constant 384 : index
    %c0_19 = arith.constant 0 : index
    %26 = vector.load %arg3[%c384_18, %c0_19] : memref<512x128xf32, #tpu.memory_space<vmem>>, vector<128x128xf32>
    %cst_20 = arith.constant dense<0.000000e+00> : vector<128x128xf32>
    %27 = tpu.matmul %25, %26, %cst_20 {dimension_numbers = #tpu.dot_dimension_numbers<[1], [0], [0], [1], [0, 0, 1, 1], [], []>} : vector<128x128xf32>, vector<128x128xf32>, vector<128x128xf32> -> vector<128x128xf32>
    %28 = arith.addf %21, %27 : vector<128x128xf32>
    %c0_21 = arith.constant 0 : index
    %c0_22 = arith.constant 0 : index
    %29 = vector.load %arg4[%c0_21, %c0_22] : memref<1x128xf32, #tpu.memory_space<vmem>>, vector<1x128xf32>
    %30 = vector.broadcast %29 : vector<1x128xf32> to vector<128x128xf32>
    %31 = arith.addf %28, %30 : vector<128x128xf32>
    %c0_23 = arith.constant 0 : index
    %c0_24 = arith.constant 0 : index
    %32 = vector.load %arg5[%c0_23, %c0_24] : memref<128x128xf32, #tpu.memory_space<vmem>>, vector<128x128xf32>
    tpu.vector_store %arg5[%c0_23, %c0_24], %31 {strides = array<i32>} : memref<128x128xf32, #tpu.memory_space<vmem>>, vector<128x128xf32>,
    return
  }
  func.func @transform_0(%arg0: i32) -> (i32, i32) {
    %c0_i32 = arith.constant 0 : i32
    %c0_i32_0 = arith.constant 0 : i32
    return %arg0, %c0_i32 : i32, i32
  }
  func.func @transform_1(%arg0: i32) -> (i32, i32) {
    %c0_i32 = arith.constant 0 : i32
    %c0_i32_0 = arith.constant 0 : i32
    return %arg0, %c0_i32 : i32, i32
  }
  func.func @transform_2(%arg0: i32) -> (i32, i32) {
    %c0_i32 = arith.constant 0 : i32
    %c0_i32_0 = arith.constant 0 : i32
    %c0_i32_1 = arith.constant 0 : i32
    return %c0_i32, %c0_i32_0 : i32, i32
  }
  func.func @transform_3(%arg0: i32) -> (i32, i32) {
    %c0_i32 = arith.constant 0 : i32
    %c0_i32_0 = arith.constant 0 : i32
    %c0_i32_1 = arith.constant 0 : i32
    return %c0_i32, %c0_i32_0 : i32, i32
  }
  func.func @transform_4(%arg0: i32) -> (i32, i32) {
    %c0_i32 = arith.constant 0 : i32
    %c0_i32_0 = arith.constant 0 : i32
    return %arg0, %c0_i32 : i32, i32
  }
}

</mosaic_0001>

<bundles_post_ra>
// kernel: _lambda_.4
= control target key start
LH: loop header
LB: loop body
LE: loop exit
PB: predicated region body
PF: predicated region fallthrough
CT: control target
= control target key end

     0   :  { %s1035_s6 = smov 0   ;;  %s1486_s0 = inlined_call_operand.vmem [shape: f32[512,15], index: 0, kind: input, shape index: {}]   ;;  %s1487_s1 = inlined_call_operand.vmem [shape: f32[512,4], index: 1, kind: output, shape index: {}]  }
   0x1 LB: > { %s945_s7 = sadd.s32 4294967295, %s1017_s6   ;;  %p949_p0 = scmp.ge.s32.totalorder %s1017_s6, 1  ;;  %s1017_s6 = sphi %s1035_s6, %s11_s6  }
   0x2   : > { %p88_p1 = scmp.lt.s32.totalorder %s1017_s6, 5 }
   0x4   : > { %p89_p2 = pnand %p949_p0, %p88_p1 }
   0x5   : > { %s950_s8 = sshll.u32 (!%p89_p2), %s945_s7, 4  ;;  %s1021_s13 = smov (!%p89_p2), 124  }
   0x6   : > { %92 = sbr.rel (%p89_p2) target bundleno = 629 (0x275), region = 24  ;;  %p109_p3 = scmp.lt.s32.totalorder (!%p89_p2), %s950_s8, 63 }
   0x7   : > { %s1023_s14 = smov (!%p89_p2), 120   ;;  %s1024_s15 = smov (!%p89_p2), 125  }
   0xb   : > { %v1019_v0 = vmov 0   ;;  %s1489_s8 = smov (!%p109_p3, %s950_s8), 63  ;;  %v1020_v17 = vmov 1   ;;  %v1022_v50 = vmov 2  }
   0xc   : > { %972 = vset.pattern.permute.xlu2 %v1019_v0  ;;  %971 = vset.pattern.permute.xlu1 %v1019_v0  ;;  %s951_s9 = sshll.u32 %s1489_s8, 3 }
   0xd   : > { %970 = vset.pattern.permute.xlu0 %v1019_v0  ;;  %s1051_s12 = scalar_lea.vmem %s1486_s0, %s951_s9  ;;  %s1449_s18 = scalar_lea.vmem %s1487_s1, %s951_s9 }
   0xe   : > { %v1054_v1 = vld [vmem:[%s1051_s12 + $0x20] sm:$0xff]  ;;  %v1057_v2 = vld [vmem:[%s1051_s12 + $0x10] sm:$0xff]  ;;  %v1066_v4 = vld [vmem:[%s1051_s12 + $0x28] sm:$0xff] }
   0xf   : > { %v1060_v3 = vld [vmem:[%s1051_s12] sm:$0xff]  ;;  %158 = vperm.xlu2 %972, %v1054_v1   ;;  %148 = vperm.xlu1 %971, %v1057_v2   ;;  %v1069_v5 = vld [vmem:[%s1051_s12 + $0x18] sm:$0xff]  ;;  %v1072_v6 = vld [vmem:[%s1051_s12 + $0x8] sm:$0xff] }
  0x10   : > { %138 = vperm.xlu0 %970, %v1060_v3   ;;  %v1078_v7 = vld [vmem:[%s1051_s12 + $0x40] sm:$0xff]  ;;  %v1081_v8 = vld [vmem:[%s1051_s12 + $0x38] sm:$0xff]  ;;  %v1084_v9 = vld [vmem:[%s1051_s12 + $0x30] sm:$0xff] }
  0x11   : > { %v1090_v10 = vld [vmem:[%s1051_s12 + $0x58] sm:$0xff]  ;;  %v1093_v11 = vld [vmem:[%s1051_s12 + $0x50] sm:$0xff]  ;;  %v1096_v12 = vld [vmem:[%s1051_s12 + $0x48] sm:$0xff] }
  0x12   : > { %v1102_v13 = vld [vmem:[%s1051_s12 + $0x70] sm:$0xff]  ;;  %v1105_v14 = vld [vmem:[%s1051_s12 + $0x68] sm:$0xff]  ;;  %v1108_v15 = vld [vmem:[%s1051_s12 + $0x60] sm:$0xff] }
  0x13   : > { %v1114_v16 = vld [vmem:[%s1051_s12 + $0x78] sm:$0xff] }
  0x17   : > { %163 = vperm.xlu2 %972, %v1066_v4   ;;  %153 = vperm.xlu1 %971, %v1069_v5  }
  0x18   : > { %143 = vperm.xlu0 %970, %v1072_v6  }
  0x1f   : > { %178 = vperm.xlu2 %972, %v1078_v7   ;;  %173 = vperm.xlu1 %971, %v1081_v8  }
  0x20   : > { %168 = vperm.xlu0 %970, %v1084_v9  }
  0x27   : > { %193 = vperm.xlu2 %972, %v1090_v10   ;;  %188 = vperm.xlu1 %971, %v1093_v11  }
  0x28   : > { %183 = vperm.xlu0 %970, %v1096_v12  }
  0x2f   : > { %208 = vperm.xlu2 %972, %v1102_v13   ;;  %203 = vperm.xlu1 %971, %v1105_v14  }
  0x30   : > { %198 = vperm.xlu0 %970, %v1108_v15  }
  0x37   : > { %974 = vset.pattern.permute.xlu2 %v1020_v17  ;;  %973 = vset.pattern.permute.xlu1 %v1020_v17 }
  0x38   : > { %213 = vperm.xlu0 %970, %v1114_v16   ;;  %269 = vperm.xlu2 %974, %v1072_v6  }
  0x39   : > { %265 = vperm.xlu1 %973, %v1060_v3  }
  0x40   : > { %975 = vset.pattern.permute.xlu0 %v1020_v17  ;;  %281 = vperm.xlu2 %974, %v1054_v1  }
  0x41   : > { %277 = vperm.xlu1 %973, %v1069_v5   ;;  %273 = vperm.xlu0 %975, %v1057_v2  }
  0x48   : > { %289 = vperm.xlu2 %974, %v1084_v9  }
  0x49   : > { %285 = vperm.xlu1 %973, %v1066_v4   ;;  %293 = vperm.xlu0 %975, %v1081_v8  }
  0x50   : > { %301 = vperm.xlu2 %974, %v1096_v12  }
  0x51   : > { %297 = vperm.xlu1 %973, %v1078_v7   ;;  %305 = vperm.xlu0 %975, %v1093_v11  }
  0x58   : > { %313 = vperm.xlu2 %974, %v1108_v15  }
  0x59   : > { %309 = vperm.xlu1 %973, %v1090_v10   ;;  %317 = vperm.xlu0 %975, %v1105_v14  }
  0x60   : > { %325 = vperm.xlu2 %974, %v1114_v16  }
  0x61   : > { %321 = vperm.xlu1 %973, %v1102_v13   ;;  %978 = vset.pattern.permute.xlu0 %v1022_v50 }
  0x68   : > { %977 = vset.pattern.permute.xlu2 %v1022_v50 }
  0x69   : > { %v1133_v18 = vpop.permute.xlu2 %158  ;;  %976 = vset.pattern.permute.xlu1 %v1022_v50 }
  0x71   : > { %v1135_v19 = vpop.permute.xlu2 %163 }
  0x79   : > { %v1137_v20 = vpop.permute.xlu2 %178 }
  0x81   : > { %v1139_v21 = vpop.permute.xlu2 %193  ;;  %v1141_v22 = vpop.permute.xlu1 %148 }
  0x82   : > { %v1143_v23 = vpop.permute.xlu0 %138 }
  0x89   : > { %v1145_v24 = vpop.permute.xlu2 %208  ;;  %v1147_v25 = vpop.permute.xlu1 %153 }
  0x8a   : > { %v1149_v26 = vpop.permute.xlu0 %143 }
  0x91   : > { %v1151_v27 = vpop.permute.xlu1 %173 }
  0x92   : > { %v1153_v28 = vpop.permute.xlu0 %168  ;;  %v270_v29 = vpop.permute.xlu2 %269 }
  0x93   : > { %v329_v30 = vsub.f32 %v270_v29, %v1072_v6 }
  0x95   : > { %v345_v31 = vmul.f32 %v329_v30, %v329_v30 }
  0x97   : > { %378 = vrot.lane.b32.xlu1 %v345_v31, %s1021_s13 }
  0x99   : > { %v1157_v32 = vpop.permute.xlu1 %188 }
  0x9a   : > { %v1159_v33 = vpop.permute.xlu0 %183  ;;  %v282_v34 = vpop.permute.xlu2 %281 }
  0x9b   : > { %v332_v35 = vsub.f32 %v282_v34, %v1054_v1 }
  0x9d   : > { %v348_v36 = vmul.f32 %v332_v35, %v332_v35 }
  0x9f   : > { %384 = vrot.lane.b32.xlu1 %v348_v36, %s1021_s13 }
  0xa1   : > { %v1163_v37 = vpop.permute.xlu1 %203 }
  0xa2   : > { %v1165_v38 = vpop.permute.xlu0 %198  ;;  %v290_v43 = vpop.permute.xlu2 %289 }
  0xa3   : > { %v334_v51 = vsub.f32 %v290_v43, %v1084_v9 }
  0xa5   : > { %v350_v57 = vmul.f32 %v334_v51, %v334_v51  ;;  %v217_v51 = vsub.f32 %v1149_v26, %v1072_v6  ;;  %v221_v26 = vsub.f32 %v1135_v19, %v1066_v4  ;;  %v227_v19 = vsub.f32 %v1139_v21, %v1090_v10 }
  0xa6   : > { %v223_v21 = vsub.f32 %v1151_v27, %v1081_v8 }
  0xaa   : > { %v1167_v39 = vpop.permute.xlu0 %213  ;;  %v302_v52 = vpop.permute.xlu2 %301 }
  0xab   : > { %v266_v40 = vpop.permute.xlu1 %265  ;;  %v337_v60 = vsub.f32 %v302_v52, %v1096_v12  ;;  %v233_v52 = vmul.f32 %v217_v51, %v217_v51 }
  0xac   : > { %v328_v41 = vsub.f32 %v266_v40, %v1060_v3 }
  0xad   : > { %v353_v29 = vmul.f32 %v337_v60, %v337_v60 }
  0xae   : > { %v344_v42 = vmul.f32 %v328_v41, %v328_v41 }
  0xb0   : > { %376 = vrot.lane.b32.xlu0 %v344_v42, %s1021_s13 }
  0xb2   : > { %v314_v17 = vpop.permute.xlu2 %313 }
  0xb3   : > { %v278_v44 = vpop.permute.xlu1 %277  ;;  %v274_v45 = vpop.permute.xlu0 %273  ;;  %v340_v34 = vsub.f32 %v314_v17, %v1108_v15 }
  0xb4   : > { %v331_v46 = vsub.f32 %v278_v44, %v1069_v5  ;;  %v330_v47 = vsub.f32 %v274_v45, %v1057_v2 }
  0xb5   : > { %v356_v42 = vmul.f32 %v340_v34, %v340_v34 }
  0xb6   : > { %v347_v48 = vmul.f32 %v331_v46, %v331_v46  ;;  %v346_v49 = vmul.f32 %v330_v47, %v330_v47 }
  0xb8   : > { %382 = vrot.lane.b32.xlu0 %v347_v48, %s1021_s13  ;;  %380 = vrot.lane.b32.xlu2 %v346_v49, %s1021_s13 }
  0xba   : > { %v326_v45 = vpop.permute.xlu2 %325 }
  0xbb   : > { %v286_v53 = vpop.permute.xlu1 %285  ;;  %v294_v54 = vpop.permute.xlu0 %293  ;;  %v343_v46 = vsub.f32 %v326_v45, %v1114_v16  ;;  %v230_v45 = vsub.f32 %v1145_v24, %v1102_v13  ;;  %v225_v24 = vsub.f32 %v1159_v33, %v1096_v12  ;;  %v229_v33 = vsub.f32 %v1163_v37, %v1105_v14 }
  0xbc   : > { %v333_v55 = vsub.f32 %v286_v53, %v1066_v4  ;;  %v335_v56 = vsub.f32 %v294_v54, %v1081_v8 }
  0xbd   : > { %v359_v49 = vmul.f32 %v343_v46, %v343_v46  ;;  %v222_v46 = vsub.f32 %v1153_v28, %v1084_v9  ;;  %v226_v28 = vsub.f32 %v1157_v32, %v1093_v11 }
  0xbe   : > { %v349_v58 = vmul.f32 %v333_v55, %v333_v55  ;;  %v351_v59 = vmul.f32 %v335_v56, %v335_v56  ;;  %v220_v55 = vsub.f32 %v1133_v18, %v1054_v1  ;;  %v218_v56 = vsub.f32 %v1141_v22, %v1057_v2 }
  0xbf   : > { %v224_v18 = vsub.f32 %v1137_v20, %v1078_v7  ;;  %v216_v22 = vsub.f32 %v1143_v23, %v1060_v3  ;;  %v242_v27 = vmul.f32 %v226_v28, %v226_v28 }
  0xc0   : > { %388 = vrot.lane.b32.xlu0 %v350_v57, %s1021_s13  ;;  %386 = vrot.lane.b32.xlu2 %v349_v58, %s1021_s13  ;;  %v236_v57 = vmul.f32 %v220_v55, %v220_v55  ;;  %v234_v58 = vmul.f32 %v218_v56, %v218_v56  ;;  %v241_v56 = vmul.f32 %v225_v24, %v225_v24 }
  0xc1   : > { %390 = vrot.lane.b32.xlu1 %v351_v59, %s1021_s13 }
  0xc3   : > { %v298_v61 = vpop.permute.xlu1 %297  ;;  %v306_v62 = vpop.permute.xlu0 %305 }
  0xc4   : > { %v336_v63 = vsub.f32 %v298_v61, %v1078_v7  ;;  %v338_v0 = vsub.f32 %v306_v62, %v1093_v11 }
  0xc6   : > { %v352_v30 = vmul.f32 %v336_v63, %v336_v63  ;;  %v354_v31 = vmul.f32 %v338_v0, %v338_v0  ;;  %v237_v63 = vmul.f32 %v221_v26, %v221_v26 }
  0xc8   : > { %394 = vrot.lane.b32.xlu0 %v353_v29, %s1021_s13  ;;  %392 = vrot.lane.b32.xlu2 %v352_v30, %s1021_s13  ;;  %v240_v29 = vmul.f32 %v224_v18, %v224_v18  ;;  %v232_v30 = vmul.f32 %v216_v22, %v216_v22  ;;  %v245_v22 = vmul.f32 %v229_v33, %v229_v33 }
  0xc9   : > { %396 = vrot.lane.b32.xlu1 %v354_v31, %s1021_s13 }
  0xcb   : > { %v310_v35 = vpop.permute.xlu1 %309  ;;  %v318_v36 = vpop.permute.xlu0 %317 }
  0xcc   : > { %v339_v40 = vsub.f32 %v310_v35, %v1090_v10  ;;  %v341_v41 = vsub.f32 %v318_v36, %v1105_v14 }
  0xce   : > { %v355_v43 = vmul.f32 %v339_v40, %v339_v40  ;;  %v357_v44 = vmul.f32 %v341_v41, %v341_v41  ;;  %v219_v40 = vsub.f32 %v1147_v25, %v1069_v5  ;;  %v243_v41 = vmul.f32 %v227_v19, %v227_v19 }
  0xcf   : > { %v239_v25 = vmul.f32 %v223_v21, %v223_v21 }
  0xd0   : > { %400 = vrot.lane.b32.xlu0 %v356_v42, %s1021_s13  ;;  %398 = vrot.lane.b32.xlu2 %v355_v43, %s1021_s13  ;;  %v235_v42 = vmul.f32 %v219_v40, %v219_v40 }
  0xd1   : > { %402 = vrot.lane.b32.xlu1 %v357_v44, %s1021_s13 }
  0xd3   : > { %v322_v47 = vpop.permute.xlu1 %321 }
  0xd4   : > { %v342_v48 = vsub.f32 %v322_v47, %v1102_v13  ;;  %v246_v47 = vmul.f32 %v230_v45, %v230_v45 }
  0xd6   : > { %v358_v50 = vmul.f32 %v342_v48, %v342_v48  ;;  %v238_v48 = vmul.f32 %v222_v46, %v222_v46 }
  0xd8   : > { %406 = vrot.lane.b32.xlu0 %v359_v49, %s1021_s13  ;;  %404 = vrot.lane.b32.xlu2 %v358_v50, %s1021_s13 }
  0xd9   : > { %441 = vperm.xlu1 %976, %v1060_v3  }
  0xe0   : > { %449 = vperm.xlu0 %978, %v1057_v2   ;;  %445 = vperm.xlu2 %977, %v1072_v6  }
  0xe1   : > { %453 = vperm.xlu1 %976, %v1069_v5  }
  0xe8   : > { %469 = vperm.xlu0 %978, %v1081_v8   ;;  %457 = vperm.xlu2 %977, %v1054_v1  }
  0xe9   : > { %461 = vperm.xlu1 %976, %v1066_v4  }
  0xf0   : > { %481 = vperm.xlu0 %978, %v1093_v11   ;;  %465 = vperm.xlu2 %977, %v1084_v9  }
  0xf1   : > { %473 = vperm.xlu1 %976, %v1078_v7  }
  0xf8   : > { %493 = vperm.xlu0 %978, %v1105_v14   ;;  %477 = vperm.xlu2 %977, %v1096_v12  }
  0xf9   : > { %485 = vperm.xlu1 %976, %v1090_v10  }
 0x100   : > { %489 = vperm.xlu2 %977, %v1108_v15  }
 0x101   : > { %497 = vperm.xlu1 %976, %v1102_v13  }
 0x108   : > { %501 = vperm.xlu2 %977, %v1114_v16  }
 0x109   : > { %v379_v53 = vpop.permute.xlu1 %378 }
 0x10a   : > { %v1215_v54 = vadd.f32 %v379_v53, %v233_v52 }
 0x111   : > { %v385_v59 = vpop.permute.xlu1 %384 }
 0x112   : > { %v1221_v60 = vadd.f32 %v385_v59, %v236_v57  ;;  %v381_v61 = vpop.permute.xlu2 %380 }
 0x113   : > { %v1223_v62 = vadd.f32 %v381_v61, %v234_v58 }
 0x11a   : > { %v387_v0 = vpop.permute.xlu2 %386 }
 0x11b   : > { %v1227_v17 = vadd.f32 %v387_v0, %v237_v63  ;;  %v228_v0 = vsub.f32 %v1165_v38, %v1108_v15  ;;  %v231_v38 = vsub.f32 %v1167_v39, %v1114_v16 }
 0x11d   : > { %v244_v32 = vmul.f32 %v228_v0, %v228_v0  ;;  %v247_v37 = vmul.f32 %v231_v38, %v231_v38 }
 0x122   : > { %v393_v31 = vpop.permute.xlu2 %392  ;;  %v377_v34 = vpop.permute.xlu0 %376 }
 0x123   : > { %v1233_v35 = vadd.f32 %v393_v31, %v240_v29  ;;  %v1235_v36 = vadd.f32 %v377_v34, %v232_v30 }
 0x12a   : > { %v399_v20 = vpop.permute.xlu2 %398  ;;  %v383_v43 = vpop.permute.xlu0 %382 }
 0x12b   : > { %v1241_v44 = vadd.f32 %v399_v20, %v243_v41  ;;  %v1243_v23 = vadd.f32 %v383_v43, %v235_v42 }
 0x132   : > { %v405_v49 = vpop.permute.xlu2 %404  ;;  %v389_v50 = vpop.permute.xlu0 %388 }
 0x133   : > { %v1251_v51 = vadd.f32 %v405_v49, %v246_v47  ;;  %v391_v52 = vpop.permute.xlu1 %390  ;;  %v1253_v53 = vadd.f32 %v389_v50, %v238_v48 }
 0x134   : > { %v1255_v55 = vadd.f32 %v391_v52, %v239_v25 }
 0x13a   : > { %v446_v57 = vpop.permute.xlu2 %445  ;;  %v395_v58 = vpop.permute.xlu0 %394 }
 0x13b   : > { %v505_v59 = vsub.f32 %v446_v57, %v1072_v6  ;;  %v397_v61 = vpop.permute.xlu1 %396  ;;  %v1262_v26 = vadd.f32 %v395_v58, %v241_v56 }
 0x13c   : > { %v1264_v63 = vadd.f32 %v397_v61, %v242_v27 }
 0x13d   : > { %v521_v18 = vmul.f32 %v505_v59, %v505_v59 }
 0x13f   : > { %554 = vrot.lane.b32.xlu1 %v521_v18, %s1023_s14 }
 0x142   : > { %v458_v29 = vpop.permute.xlu2 %457  ;;  %v401_v30 = vpop.permute.xlu0 %400 }
 0x143   : > { %v508_v6 = vsub.f32 %v458_v29, %v1054_v1  ;;  %v403_v31 = vpop.permute.xlu1 %402  ;;  %v1272_v34 = vadd.f32 %v401_v30, %v244_v32 }
 0x144   : > { %v1274_v19 = vadd.f32 %v403_v31, %v245_v22 }
 0x145   : > { %v524_v40 = vmul.f32 %v508_v6, %v508_v6 }
 0x147   : > { %560 = vrot.lane.b32.xlu1 %v524_v40, %s1023_s14 }
 0x14a   : > { %v407_v41 = vpop.permute.xlu0 %406  ;;  %v466_v1 = vpop.permute.xlu2 %465 }
 0x14b   : > { %v442_v42 = vpop.permute.xlu1 %441  ;;  %v1279_v20 = vadd.f32 %v407_v41, %v247_v37  ;;  %v510_v49 = vsub.f32 %v466_v1, %v1084_v9 }
 0x14c   : > { %v504_v43 = vsub.f32 %v442_v42, %v1060_v3 }
 0x14d   : > { %v526_v27 = vmul.f32 %v510_v49, %v510_v49 }
 0x14e   : > { %v520_v45 = vmul.f32 %v504_v43, %v504_v43 }
 0x150   : > { %552 = vrot.lane.b32.xlu0 %v520_v45, %s1023_s14 }
 0x152   : > { %v450_v46 = vpop.permute.xlu0 %449  ;;  %v478_v3 = vpop.permute.xlu2 %477 }
 0x153   : > { %v454_v21 = vpop.permute.xlu1 %453  ;;  %v506_v47 = vsub.f32 %v450_v46, %v1057_v2 }
 0x154   : > { %v507_v39 = vsub.f32 %v454_v21, %v1069_v5  ;;  %v513_v5 = vsub.f32 %v478_v3, %v1096_v12 }
 0x155   : > { %v522_v48 = vmul.f32 %v506_v47, %v506_v47 }
 0x156   : > { %v523_v25 = vmul.f32 %v507_v39, %v507_v39 }
 0x157   : > { %556 = vrot.lane.b32.xlu2 %v522_v48, %s1023_s14 }
 0x158   : > { %558 = vrot.lane.b32.xlu0 %v523_v25, %s1023_s14 }
 0x15a   : > { %v470_v50 = vpop.permute.xlu0 %469 }
 0x15b   : > { %v462_v52 = vpop.permute.xlu1 %461  ;;  %v511_v24 = vsub.f32 %v470_v50, %v1081_v8  ;;  %v490_v8 = vpop.permute.xlu2 %489 }
 0x15c   : > { %v509_v28 = vsub.f32 %v462_v52, %v1066_v4  ;;  %v529_v4 = vmul.f32 %v513_v5, %v513_v5  ;;  %v516_v18 = vsub.f32 %v490_v8, %v1108_v15 }
 0x15d   : > { %v527_v56 = vmul.f32 %v511_v24, %v511_v24 }
 0x15e   : > { %v525_v2 = vmul.f32 %v509_v28, %v509_v28 }
 0x15f   : > { %566 = vrot.lane.b32.xlu1 %v527_v56, %s1023_s14 }
 0x160   : > { %564 = vrot.lane.b32.xlu0 %v526_v27, %s1023_s14  ;;  %562 = vrot.lane.b32.xlu2 %v525_v2, %s1023_s14 }
 0x162   : > { %v482_v57 = vpop.permute.xlu0 %481 }
 0x163   : > { %v474_v9 = vpop.permute.xlu1 %473  ;;  %v514_v58 = vsub.f32 %v482_v57, %v1093_v11  ;;  %v502_v30 = vpop.permute.xlu2 %501 }
 0x164   : > { %v512_v59 = vsub.f32 %v474_v9, %v1078_v7  ;;  %v532_v7 = vmul.f32 %v516_v18, %v516_v18  ;;  %v519_v6 = vsub.f32 %v502_v30, %v1114_v16 }
 0x165   : > { %v530_v61 = vmul.f32 %v514_v58, %v514_v58 }
 0x166   : > { %v528_v0 = vmul.f32 %v512_v59, %v512_v59  ;;  %v535_v38 = vmul.f32 %v519_v6, %v519_v6 }
 0x167   : > { %572 = vrot.lane.b32.xlu1 %v530_v61, %s1023_s14 }
 0x168   : > { %570 = vrot.lane.b32.xlu0 %v529_v4, %s1023_s14  ;;  %568 = vrot.lane.b32.xlu2 %v528_v0, %s1023_s14 }
 0x16a   : > { %v494_v33 = vpop.permute.xlu0 %493 }
 0x16b   : > { %v486_v12 = vpop.permute.xlu1 %485  ;;  %v517_v32 = vsub.f32 %v494_v33, %v1105_v14 }
 0x16c   : > { %v515_v11 = vsub.f32 %v486_v12, %v1090_v10 }
 0x16d   : > { %v533_v22 = vmul.f32 %v517_v32, %v517_v32 }
 0x16e   : > { %v531_v29 = vmul.f32 %v515_v11, %v515_v11 }
 0x16f   : > { %578 = vrot.lane.b32.xlu1 %v533_v22, %s1023_s14 }
 0x170   : > { %576 = vrot.lane.b32.xlu0 %v532_v7, %s1023_s14  ;;  %574 = vrot.lane.b32.xlu2 %v531_v29, %s1023_s14 }
 0x173   : > { %v498_v31 = vpop.permute.xlu1 %497 }
 0x174   : > { %v518_v15 = vsub.f32 %v498_v31, %v1102_v13 }
 0x176   : > { %v534_v40 = vmul.f32 %v518_v15, %v518_v15 }
 0x178   : > { %582 = vrot.lane.b32.xlu0 %v535_v38, %s1023_s14  ;;  %580 = vrot.lane.b32.xlu2 %v534_v40, %s1023_s14 }
 0x1b1   : > { %v555_v10 = vpop.permute.xlu1 %554  ;;  %v557_v14 = vpop.permute.xlu2 %556 }
 0x1b2   : > { %v601_v37 = vadd.f32 %v555_v10, %v1215_v54  ;;  %v602_v41 = vadd.f32 %v557_v14, %v1223_v62 }
 0x1b4   : > { %979 = vrsqrt.f32 %v601_v37  ;;  %vm648_vm1 = vweird.f32 %v601_v37  ;;  %vm617_vm3 = vcmp.eq.f32.partialorder %v601_v37, 0.0  ;;  %vm658_vm5 = vweird.f32 %v602_v41 }
 0x1b5   : > { %981 = vrsqrt.f32 %v602_v41  ;;  %vm618_vm6 = vcmp.eq.f32.partialorder %v602_v41, 0.0 }
 0x1b9   : > { %v561_v42 = vpop.permute.xlu1 %560 }
 0x1ba   : > { %v980_v43 = vpop.eup %979  ;;  %v1312_v16 = vadd.f32 %v561_v42, %v1221_v60  ;;  %v563_v13 = vpop.permute.xlu2 %562 }
 0x1bb   : > { %v982_v45 = vpop.eup %981  ;;  %v643_v1 = vmul.f32 %v980_v43, %v601_v37  ;;  %v1315_v46 = vadd.f32 %v563_v13, %v1227_v17  ;;  %vm649_vm0 = vweird.f32 %v980_v43 }
 0x1bc   : > { %v653_v21 = vmul.f32 %v982_v45, %v602_v41  ;;  %983 = vrsqrt.f32 %v1312_v16  ;;  %vm659_vm2 = vweird.f32 %v982_v45  ;;  %vm650_vm4 = vmor %vm648_vm1, %vm649_vm0  ;;  %vm678_vm10 = vweird.f32 %v1312_v16 }
 0x1bd   : > { %985 = vrsqrt.f32 %v1315_v46  ;;  %v644_v54 = vmul.f32 %v980_v43, %v643_v1  ;;  %vm660_vm7 = vmor %vm658_vm5, %vm659_vm2  ;;  %vm620_vm11 = vcmp.eq.f32.partialorder %v1312_v16, 0.0  ;;  %vm688_vm13 = vweird.f32 %v1315_v46 }
 0x1be   : > { %v654_v62 = vmul.f32 %v982_v45, %v653_v21  ;;  %vm621_vm14 = vcmp.eq.f32.partialorder %v1315_v46, 0.0 }
 0x1bf   : > { %v645_v47 = vmul.f32 0.5, %v644_v54 }
 0x1c0   : > { %v655_v39 = vmul.f32 0.5, %v654_v62 }
 0x1c1   : > { %v646_v48 = vsub.f32 1.5, %v645_v47 }
 0x1c2   : > { %v984_v25 = vpop.eup %983  ;;  %v569_v60 = vpop.permute.xlu2 %568  ;;  %v656_v50 = vsub.f32 1.5, %v655_v39 }
 0x1c3   : > { %v553_v49 = vpop.permute.xlu0 %552  ;;  %v986_v3 = vpop.eup %985  ;;  %v673_v17 = vmul.f32 %v984_v25, %v1312_v16  ;;  %v1321_v52 = vadd.f32 %v569_v60, %v1233_v35  ;;  %v647_v28 = vmul.f32 %v980_v43, %v646_v48  ;;  %vm679_vm8 = vweird.f32 %v984_v25 }
 0x1c4   : > { %v1324_v24 = vadd.f32 %v553_v49, %v1235_v36  ;;  %v683_v56 = vmul.f32 %v986_v3, %v1315_v46  ;;  %v657_v27 = vmul.f32 %v982_v45, %v656_v50  ;;  %vm689_vm9 = vweird.f32 %v986_v3  ;;  %vm680_vm12 = vmor %vm678_vm10, %vm679_vm8 }
 0x1c5   : > { %987 = vrsqrt.f32 %v1321_v52  ;;  %v651_v2 = vsel %vm650_vm4, %v980_v43, %v647_v28  ;;  %v674_v5 = vmul.f32 %v984_v25, %v673_v17  ;;  %vm690_vm15 = vmor %vm688_vm13, %vm689_vm9  ;;  %vm718_vm2 = vweird.f32 %v1321_v52 }
 0x1c6   : > { %989 = vrsqrt.f32 %v1324_v24  ;;  %v793_v35 = vsel %vm617_vm3, 2.0, %v651_v2  ;;  %v661_v57 = vsel %vm660_vm7, %v982_v45, %v657_v27  ;;  %v684_v9 = vmul.f32 %v986_v3, %v683_v56 }
 0x1c7   : > { %826 = vrot.lane.b32.xlu2 %v793_v35, %s1024_s15  ;;  %v794_v36 = vsel %vm618_vm6, 2.0, %v661_v57  ;;  %v675_v58 = vmul.f32 0.5, %v674_v5  ;;  %vm638_vm4 = vweird.f32 %v1324_v24  ;;  %vm624_vm5 = vcmp.eq.f32.partialorder %v1321_v52, 0.0 }
 0x1c8   : > { %828 = vrot.lane.b32.xlu0 %v794_v36, %s1024_s15  ;;  %v685_v59 = vmul.f32 0.5, %v684_v9  ;;  %vm616_vm7 = vcmp.eq.f32.partialorder %v1324_v24, 0.0 }
 0x1c9   : > { %v676_v8 = vsub.f32 1.5, %v675_v58 }
 0x1ca   : > { %v575_v61 = vpop.permute.xlu2 %574  ;;  %v686_v0 = vsub.f32 1.5, %v685_v59 }
 0x1cb   : > { %v559_v4 = vpop.permute.xlu0 %558  ;;  %v988_v18 = vpop.eup %987  ;;  %v1332_v33 = vadd.f32 %v575_v61, %v1241_v44  ;;  %v677_v32 = vmul.f32 %v984_v25, %v676_v8 }
 0x1cc   : > { %v1335_v12 = vadd.f32 %v559_v4, %v1243_v23  ;;  %v990_v11 = vpop.eup %989  ;;  %v713_v22 = vmul.f32 %v988_v18, %v1321_v52  ;;  %v687_v7 = vmul.f32 %v986_v3, %v686_v0  ;;  %vm719_vm0 = vweird.f32 %v988_v18 }
 0x1cd   : > { %v633_v29 = vmul.f32 %v990_v11, %v1324_v24  ;;  %991 = vrsqrt.f32 %v1332_v33  ;;  %v681_v44 = vsel %vm680_vm12, %v984_v25, %v677_v32  ;;  %vm639_vm1 = vweird.f32 %v990_v11  ;;  %vm720_vm3 = vmor %vm718_vm2, %vm719_vm0 }
 0x1ce   : > { %993 = vrsqrt.f32 %v1335_v12  ;;  %v796_v23 = vsel %vm620_vm11, 2.0, %v681_v44  ;;  %v691_v30 = vsel %vm690_vm15, %v986_v3, %v687_v7  ;;  %v714_v6 = vmul.f32 %v988_v18, %v713_v22  ;;  %vm640_vm6 = vmor %vm638_vm4, %vm639_vm1 }
 0x1cf   : > { %832 = vrot.lane.b32.xlu2 %v796_v23, %s1024_s15  ;;  %v797_v31 = vsel %vm621_vm14, 2.0, %v691_v30  ;;  %v634_v15 = vmul.f32 %v990_v11, %v633_v29  ;;  %vm748_vm8 = vweird.f32 %v1332_v33  ;;  %vm668_vm11 = vweird.f32 %v1335_v12 }
 0x1d0   : > { %834 = vrot.lane.b32.xlu0 %v797_v31, %s1024_s15  ;;  %v715_v38 = vmul.f32 0.5, %v714_v6  ;;  %vm627_vm13 = vcmp.eq.f32.partialorder %v1332_v33, 0.0  ;;  %vm619_vm14 = vcmp.eq.f32.partialorder %v1335_v12, 0.0 }
 0x1d1   : > { %v567_v40 = vpop.permute.xlu1 %566  ;;  %v635_v10 = vmul.f32 0.5, %v634_v15 }
 0x1d2   : > { %v581_v14 = vpop.permute.xlu2 %580  ;;  %v1349_v37 = vadd.f32 %v567_v40, %v1255_v55  ;;  %v716_v42 = vsub.f32 1.5, %v715_v38 }
 0x1d3   : > { %v565_v41 = vpop.permute.xlu0 %564  ;;  %v992_v43 = vpop.eup %991  ;;  %v1352_v16 = vadd.f32 %v581_v14, %v1251_v51  ;;  %v636_v45 = vsub.f32 1.5, %v635_v10 }
 0x1d4   : > { %v1355_v13 = vadd.f32 %v565_v41, %v1253_v53  ;;  %v994_v1 = vpop.eup %993  ;;  %v743_v46 = vmul.f32 %v992_v43, %v1332_v33  ;;  %995 = vrsqrt.f32 %v1349_v37  ;;  %v717_v21 = vmul.f32 %v988_v18, %v716_v42 }
 0x1d5   : > { %v663_v55 = vmul.f32 %v994_v1, %v1335_v12  ;;  %997 = vrsqrt.f32 %v1352_v16  ;;  %v637_v51 = vmul.f32 %v990_v11, %v636_v45  ;;  %vm749_vm9 = vweird.f32 %v992_v43 }
 0x1d6   : > { %999 = vrsqrt.f32 %v1355_v13  ;;  %v721_v53 = vsel %vm720_vm3, %v988_v18, %v717_v21  ;;  %v744_v54 = vmul.f32 %v992_v43, %v743_v46  ;;  %vm669_vm10 = vweird.f32 %v994_v1  ;;  %vm750_vm12 = vmor %vm748_vm8, %vm749_vm9 }
 0x1d7   : > { %v800_v62 = vsel %vm624_vm5, 2.0, %v721_v53  ;;  %v641_v47 = vsel %vm640_vm6, %v990_v11, %v637_v51  ;;  %v664_v39 = vmul.f32 %v994_v1, %v663_v55  ;;  %vm670_vm15 = vmor %vm668_vm11, %vm669_vm10  ;;  %vm778_vm0 = vweird.f32 %v1352_v16 }
 0x1d8   : > { %840 = vrot.lane.b32.xlu0 %v800_v62, %s1024_s15  ;;  %v792_v48 = vsel %vm616_vm7, 2.0, %v641_v47  ;;  %v745_v25 = vmul.f32 0.5, %v744_v54  ;;  %vm623_vm1 = vcmp.eq.f32.partialorder %v1349_v37, 0.0  ;;  %vm708_vm2 = vweird.f32 %v1349_v37 }
 0x1d9   : > { %824 = vrot.lane.b32.xlu1 %v792_v48, %s1024_s15  ;;  %v573_v60 = vpop.permute.xlu1 %572  ;;  %v665_v49 = vmul.f32 0.5, %v664_v39  ;;  %vm698_vm7 = vweird.f32 %v1355_v13  ;;  %vm630_vm9 = vcmp.eq.f32.partialorder %v1352_v16, 0.0  ;;  %vm622_vm11 = vcmp.eq.f32.partialorder %v1355_v13, 0.0 }
 0x1da   : > { %v1368_v50 = vpop.eup %995  ;;  %v1371_v3 = vadd.f32 %v573_v60, %v1264_v63  ;;  %v746_v52 = vsub.f32 1.5, %v745_v25 }
 0x1db   : > { %v571_v17 = vpop.permute.xlu0 %570  ;;  %v998_v24 = vpop.eup %997  ;;  %v703_v28 = vmul.f32 %v1368_v50, %v1349_v37  ;;  %v666_v27 = vsub.f32 1.5, %v665_v49  ;;  %vm709_vm3 = vweird.f32 %v1368_v50 }
 0x1dc   : > { %v1377_v56 = vadd.f32 %v571_v17, %v1262_v26  ;;  %v1379_v2 = vpop.eup %999  ;;  %v773_v5 = vmul.f32 %v998_v24, %v1352_v16  ;;  %1001 = vrsqrt.f32 %v1371_v3  ;;  %v747_v63 = vmul.f32 %v992_v43, %v746_v52  ;;  %vm710_vm6 = vmor %vm708_vm2, %vm709_vm3 }
 0x1dd   : > { %v693_v35 = vmul.f32 %v1379_v2, %v1355_v13  ;;  %v667_v57 = vmul.f32 %v994_v1, %v666_v27  ;;  %v704_v26 = vmul.f32 %v1368_v50, %v703_v28  ;;  %vm779_vm4 = vweird.f32 %v998_v24 }
 0x1de   : > { %1003 = vrsqrt.f32 %v1377_v56  ;;  %v751_v9 = vsel %vm750_vm12, %v992_v43, %v747_v63  ;;  %v774_v36 = vmul.f32 %v998_v24, %v773_v5  ;;  %vm699_vm5 = vweird.f32 %v1379_v2  ;;  %vm780_vm8 = vmor %vm778_vm0, %vm779_vm4 }
 0x1df   : > { %v803_v58 = vsel %vm627_vm13, 2.0, %v751_v9  ;;  %v671_v59 = vsel %vm670_vm15, %v994_v1, %v667_v57  ;;  %v705_v8 = vmul.f32 0.5, %v704_v26  ;;  %v694_v61 = vmul.f32 %v1379_v2, %v693_v35  ;;  %vm700_vm10 = vmor %vm698_vm7, %vm699_vm5 }
 0x1e0   : > { %846 = vrot.lane.b32.xlu0 %v803_v58, %s1024_s15  ;;  %v795_v4 = vsel %vm619_vm14, 2.0, %v671_v59  ;;  %v775_v0 = vmul.f32 0.5, %v774_v36  ;;  %vm738_vm14 = vweird.f32 %v1371_v3  ;;  %vm728_vm0 = vweird.f32 %v1377_v56 }
 0x1e1   : > { %830 = vrot.lane.b32.xlu1 %v795_v4, %s1024_s15  ;;  %v579_v18 = vpop.permute.xlu1 %578  ;;  %v706_v33 = vsub.f32 1.5, %v705_v8  ;;  %v695_v12 = vmul.f32 0.5, %v694_v61  ;;  %vm625_vm3 = vcmp.eq.f32.partialorder %v1377_v56, 0.0 }
 0x1e2   : > { %v1002_v32 = vpop.eup %1001  ;;  %v1398_v11 = vadd.f32 %v579_v18, %v1274_v19  ;;  %v776_v7 = vsub.f32 1.5, %v775_v0 }
 0x1e3   : > { %v577_v22 = vpop.permute.xlu0 %576  ;;  %v733_v44 = vmul.f32 %v1002_v32, %v1371_v3  ;;  %v707_v30 = vmul.f32 %v1368_v50, %v706_v33  ;;  %v696_v6 = vsub.f32 1.5, %v695_v12  ;;  %vm739_vm12 = vweird.f32 %v1002_v32 }
 0x1e4   : > { %v1004_v29 = vpop.eup %1003  ;;  %v1403_v23 = vadd.f32 %v577_v22, %v1272_v34  ;;  %1005 = vrsqrt.f32 %v1398_v11  ;;  %v777_v19 = vmul.f32 %v998_v24, %v776_v7  ;;  %vm740_vm15 = vmor %vm738_vm14, %vm739_vm12 }
 0x1e5   : > { %v723_v31 = vmul.f32 %v1004_v29, %v1377_v56  ;;  %v711_v34 = vsel %vm710_vm6, %v1368_v50, %v707_v30  ;;  %v697_v15 = vmul.f32 %v1379_v2, %v696_v6  ;;  %v734_v38 = vmul.f32 %v1002_v32, %v733_v44 }
 0x1e6   : > { %1007 = vrsqrt.f32 %v1403_v23  ;;  %v781_v40 = vsel %vm780_vm8, %v998_v24, %v777_v19  ;;  %v799_v10 = vsel %vm623_vm1, 2.0, %v711_v34  ;;  %vm729_vm13 = vweird.f32 %v1004_v29 }
 0x1e7   : > { %v724_v14 = vmul.f32 %v1004_v29, %v723_v31  ;;  %v806_v41 = vsel %vm630_vm9, 2.0, %v781_v40  ;;  %838 = vrot.lane.b32.xlu2 %v799_v10, %s1024_s15  ;;  %v701_v42 = vsel %vm700_vm10, %v1379_v2, %v697_v15  ;;  %v735_v43 = vmul.f32 0.5, %v734_v38  ;;  %vm730_vm2 = vmor %vm728_vm0, %vm729_vm13 }
 0x1e8   : > { %852 = vrot.lane.b32.xlu0 %v806_v41, %s1024_s15  ;;  %v798_v45 = vsel %vm622_vm11, 2.0, %v701_v42  ;;  %vm626_vm1 = vcmp.eq.f32.partialorder %v1371_v3, 0.0  ;;  %vm768_vm6 = vweird.f32 %v1398_v11  ;;  %vm758_vm8 = vweird.f32 %v1403_v23 }
 0x1e9   : > { %v725_v16 = vmul.f32 0.5, %v724_v14  ;;  %836 = vrot.lane.b32.xlu1 %v798_v45, %s1024_s15  ;;  %v736_v37 = vsub.f32 1.5, %v735_v43  ;;  %vm629_vm9 = vcmp.eq.f32.partialorder %v1398_v11, 0.0  ;;  %vm628_vm11 = vcmp.eq.f32.partialorder %v1403_v23, 0.0 }
 0x1ea   : > { %v1006_v1 = vpop.eup %1005  ;;  %vm872_vm0 = vcmask 31744  }
 0x1eb   : > { %v583_v46 = vpop.permute.xlu0 %582  ;;  %v726_v21 = vsub.f32 1.5, %v725_v16  ;;  %v763_v51 = vmul.f32 %v1006_v1, %v1398_v11  ;;  %v737_v53 = vmul.f32 %v1002_v32, %v736_v37  ;;  %vm769_vm4 = vweird.f32 %v1006_v1 }
 0x1ec   : > { %v1008_v55 = vpop.eup %1007  ;;  %v615_v13 = vadd.f32 %v583_v46, %v1279_v20  ;;  %vm770_vm7 = vmor %vm768_vm6, %vm769_vm4 }
 0x1ed   : > { %v753_v54 = vmul.f32 %v1008_v55, %v1403_v23  ;;  %v727_v62 = vmul.f32 %v1004_v29, %v726_v21  ;;  %v741_v47 = vsel %vm740_vm15, %v1002_v32, %v737_v53  ;;  %v764_v39 = vmul.f32 %v1006_v1, %v763_v51 }
 0x1ee   : > { %1009 = vrsqrt.f32 %v615_v13  ;;  %v802_v48 = vsel %vm626_vm1, 2.0, %v741_v47  ;;  %vm759_vm5 = vweird.f32 %v1008_v55  ;;  %vm788_vm13 = vweird.f32 %v615_v13 }
 0x1ef   : > { %v731_v25 = vsel %vm730_vm2, %v1004_v29, %v727_v62  ;;  %v754_v20 = vmul.f32 %v1008_v55, %v753_v54  ;;  %844 = vrot.lane.b32.xlu2 %v802_v48, %s1024_s15  ;;  %v765_v49 = vmul.f32 0.5, %v764_v39  ;;  %vm760_vm10 = vmor %vm758_vm8, %vm759_vm5  ;;  %vm631_vm15 = vcmp.eq.f32.partialorder %v615_v13, 0.0 }
 0x1f0   : > { %v801_v60 = vsel %vm625_vm3, 2.0, %v731_v25 }
 0x1f1   : > { %v755_v50 = vmul.f32 0.5, %v754_v20  ;;  %842 = vrot.lane.b32.xlu1 %v801_v60, %s1024_s15  ;;  %v766_v17 = vsub.f32 1.5, %v765_v49 }
 0x1f3   : > { %v756_v52 = vsub.f32 1.5, %v755_v50  ;;  %v767_v24 = vmul.f32 %v1006_v1, %v766_v17 }
 0x1f4   : > { %v1010_v3 = vpop.eup %1009 }
 0x1f5   : > { %v783_v28 = vmul.f32 %v1010_v3, %v615_v13  ;;  %v757_v56 = vmul.f32 %v1008_v55, %v756_v52  ;;  %v771_v27 = vsel %vm770_vm7, %v1006_v1, %v767_v24  ;;  %vm789_vm12 = vweird.f32 %v1010_v3 }
 0x1f6   : > { %v805_v2 = vsel %vm629_vm9, 2.0, %v771_v27  ;;  %vm790_vm14 = vmor %vm788_vm13, %vm789_vm12 }
 0x1f7   : > { %v761_v5 = vsel %vm760_vm10, %v1008_v55, %v757_v56  ;;  %v784_v63 = vmul.f32 %v1010_v3, %v783_v28  ;;  %850 = vrot.lane.b32.xlu2 %v805_v2, %s1024_s15 }
 0x1f8   : > { %v804_v35 = vsel %vm628_vm11, 2.0, %v761_v5 }
 0x1f9   : > { %v785_v57 = vmul.f32 0.5, %v784_v63  ;;  %848 = vrot.lane.b32.xlu1 %v804_v35, %s1024_s15 }
 0x1fb   : > { %v786_v26 = vsub.f32 1.5, %v785_v57 }
 0x1fd   : > { %v787_v9 = vmul.f32 %v1010_v3, %v786_v26 }
 0x1ff   : > { %v791_v36 = vsel %vm790_vm14, %v1010_v3, %v787_v9 }
 0x200   : > { %v807_v58 = vsel %vm631_vm15, 2.0, %v791_v36 }
 0x201   : > { %854 = vrot.lane.b32.xlu1 %v807_v58, %s1024_s15 }
 0x221   : > { %v827_v59 = vpop.permute.xlu2 %826 }
 0x222   : > { %874 = vst.msk [vmem:[%s1449_s18 + $0x8] sm:$0xff] %vm872_vm0, %v827_v59 }
 0x229   : > { %v833_v8 = vpop.permute.xlu2 %832 }
 0x22a   : > { %877 = vst.msk [vmem:[%s1449_s18 + $0x20] sm:$0xff] %vm872_vm0, %v833_v8 }
 0x23a   : > { %v829_v61 = vpop.permute.xlu0 %828 }
 0x23b   : > { %875 = vst.msk [vmem:[%s1449_s18 + $0x10] sm:$0xff] %vm872_vm0, %v829_v61 }
 0x241   : > { %v839_v4 = vpop.permute.xlu2 %838 }
 0x242   : > { %880 = vst.msk [vmem:[%s1449_s18 + $0x38] sm:$0xff] %vm872_vm0, %v839_v4  ;;  %v835_v0 = vpop.permute.xlu0 %834 }
 0x243   : > { %878 = vst.msk [vmem:[%s1449_s18 + $0x28] sm:$0xff] %vm872_vm0, %v835_v0 }
 0x249   : > { %v845_v18 = vpop.permute.xlu2 %844 }
 0x24a   : > { %883 = vst.msk [vmem:[%s1449_s18 + $0x50] sm:$0xff] %vm872_vm0, %v845_v18  ;;  %v841_v33 = vpop.permute.xlu0 %840 }
 0x24b   : > { %v825_v12 = vpop.permute.xlu1 %824  ;;  %881 = vst.msk [vmem:[%s1449_s18 + $0x40] sm:$0xff] %vm872_vm0, %v841_v33 }
 0x24c   : > { %873 = vst.msk [vmem:[%s1449_s18] sm:$0xff] %vm872_vm0, %v825_v12 }
 0x251   : > { %v851_v32 = vpop.permute.xlu2 %850 }
 0x252   : > { %886 = vst.msk [vmem:[%s1449_s18 + $0x68] sm:$0xff] %vm872_vm0, %v851_v32  ;;  %v847_v11 = vpop.permute.xlu0 %846 }
 0x253   : > { %v831_v22 = vpop.permute.xlu1 %830  ;;  %884 = vst.msk [vmem:[%s1449_s18 + $0x58] sm:$0xff] %vm872_vm0, %v847_v11 }
 0x254   : > { %876 = vst.msk [vmem:[%s1449_s18 + $0x18] sm:$0xff] %vm872_vm0, %v831_v22 }
 0x25a   : > { %v853_v7 = vpop.permute.xlu0 %852 }
 0x25b   : > { %v837_v29 = vpop.permute.xlu1 %836  ;;  %887 = vst.msk [vmem:[%s1449_s18 + $0x70] sm:$0xff] %vm872_vm0, %v853_v7 }
 0x25c   : > { %879 = vst.msk [vmem:[%s1449_s18 + $0x30] sm:$0xff] %vm872_vm0, %v837_v29 }
 0x263   : > { %v843_v44 = vpop.permute.xlu1 %842 }
 0x264   : > { %882 = vst.msk [vmem:[%s1449_s18 + $0x48] sm:$0xff] %vm872_vm0, %v843_v44 }
 0x26b   : > { %v849_v23 = vpop.permute.xlu1 %848 }
 0x26c   : > { %885 = vst.msk [vmem:[%s1449_s18 + $0x60] sm:$0xff] %vm872_vm0, %v849_v23 }
 0x273   : > { %v855_v30 = vpop.permute.xlu1 %854 }
 0x274   : > { %888 = vst.msk [vmem:[%s1449_s18 + $0x78] sm:$0xff] %vm872_vm0, %v855_v30 }
 0x275 PF: > { %s11_s6 = sadd.s32 1, %s1017_s6  }
 0x276   : > { %p8_p4 = scmp.ge.s32.totalorder %s11_s6, 6  }
 0x278   :  { %10 = sbr.rel (!%p8_p4) target bundleno = 1 (0x1), region = 54 }

// kernel: _lambda_.5
= control target key start
LH: loop header
LB: loop body
LE: loop exit
PB: predicated region body
PF: predicated region fallthrough
CT: control target
= control target key end

     0   :  { %s1448_s15 = smov 0   ;;  %s1977_s0 = inlined_call_operand.vmem [shape: f32[512,128], index: 0, kind: input, shape index: {}]   ;;  %s1978_s1 = inlined_call_operand.vmem [shape: f32[512,4], index: 1, kind: input, shape index: {}]   ;;  %s1979_s2 = inlined_call_operand.vmem [shape: f32[128,128], index: 2, kind: input, shape index: {}]   ;;  %s1980_s3 = inlined_call_operand.vmem [shape: f32[1,128], index: 3, kind: input, shape index: {}]   ;;  %s1981_s4 = inlined_call_operand.vmem [shape: f32[512,128], index: 4, kind: output, shape index: {}]  }
   0x1 LB: > { %s1292_s16 = sadd.s32 4294967295, %s1414_s15   ;;  %p1296_p0 = scmp.ge.s32.totalorder %s1414_s15, 1  ;;  %s1414_s15 = sphi %s1448_s15, %s14_s15  }
   0x2   : > { %p174_p1 = scmp.lt.s32.totalorder %s1414_s15, 5 }
   0x4   : > { %p175_p2 = pnand %p1296_p0, %p174_p1 }
   0x5   : > { %s1297_s17 = sshll.u32 (!%p175_p2), %s1292_s16, 4  ;;  %s1420_s7 = smov (!%p175_p2), 96  }
   0x6   : > { %178 = sbr.rel (%p175_p2) target bundleno = 776 (0x308), region = 36  ;;  %p206_p3 = scmp.lt.s32.totalorder (!%p175_p2), %s1297_s17, 63 }
   0x7   : > { %s1421_s8 = smov (!%p175_p2), 32   ;;  %s1422_s9 = smov (!%p175_p2), 64  }
   0xb   : > { %v1416_v0 = vmov 0   ;;  %s1983_s17 = smov (!%p206_p3, %s1297_s17), 63  ;;  %v1417_v17 = vmov 1   ;;  %v354_v18 = vld [vmem:[%s1979_s2 + $0x18] sm:$0xff]  ;;  %v353_v19 = vld [vmem:[%s1979_s2 + $0x10] sm:$0xff]  ;;  %v352_v20 = vld [vmem:[%s1979_s2 + $0x8] sm:$0xff] }
   0xc   : > { %1386 = vset.pattern.permute.xlu2 %v1416_v0  ;;  %1385 = vset.pattern.permute.xlu1 %v1416_v0  ;;  %s1456_s18 = sshll.u32 %s1983_s17, 3  ;;  %v1418_v21 = vmov 3   ;;  %v351_v22 = vld [vmem:[%s1979_s2] sm:$0xff]  ;;  %v1419_v23 = vmov 2   ;;  %vm487_vm0 = vcmask 261120  }
   0xd   : > { %1384 = vset.pattern.permute.xlu0 %v1416_v0  ;;  %s1462_s21 = scalar_lea.vmem %s1978_s1, %s1456_s18  ;;  %645 = vmatpush.msra.mxu1 %v354_v18  ;;  %s1576_s6 = scalar_lea.vmem %s1977_s0, %s1456_s18 }
   0xe   : > { %v1465_v1 = vld [vmem:[%s1462_s21 + $0x20] sm:$0xff]  ;;  %v1468_v2 = vld [vmem:[%s1462_s21 + $0x10] sm:$0xff]  ;;  %v1477_v4 = vld [vmem:[%s1462_s21 + $0x28] sm:$0xff]  ;;  %s1911_s17 = scalar_lea.vmem %s1981_s4, %s1456_s18 }
   0xf   : > { %v1471_v3 = vld [vmem:[%s1462_s21] sm:$0xff]  ;;  %277 = vperm.xlu2 %1386, %v1465_v1   ;;  %267 = vperm.xlu1 %1385, %v1468_v2   ;;  %v1480_v5 = vld [vmem:[%s1462_s21 + $0x18] sm:$0xff]  ;;  %v1483_v6 = vld [vmem:[%s1462_s21 + $0x8] sm:$0xff] }
  0x10   : > { %257 = vperm.xlu0 %1384, %v1471_v3   ;;  %v1489_v7 = vld [vmem:[%s1462_s21 + $0x40] sm:$0xff]  ;;  %v1492_v8 = vld [vmem:[%s1462_s21 + $0x38] sm:$0xff]  ;;  %v1495_v9 = vld [vmem:[%s1462_s21 + $0x30] sm:$0xff]  ;;  %646 = vmatpush.msra.mxu1 %v353_v19 }
  0x11   : > { %v1501_v10 = vld [vmem:[%s1462_s21 + $0x58] sm:$0xff]  ;;  %v1504_v11 = vld [vmem:[%s1462_s21 + $0x50] sm:$0xff]  ;;  %v1507_v12 = vld [vmem:[%s1462_s21 + $0x48] sm:$0xff] }
  0x12   : > { %v1513_v13 = vld [vmem:[%s1462_s21 + $0x70] sm:$0xff]  ;;  %v1516_v14 = vld [vmem:[%s1462_s21 + $0x68] sm:$0xff]  ;;  %v1519_v15 = vld [vmem:[%s1462_s21 + $0x60] sm:$0xff]  ;;  %647 = vmatpush.msra.mxu1 %v352_v20 }
  0x13   : > { %v1525_v16 = vld [vmem:[%s1462_s21 + $0x78] sm:$0xff]  ;;  %v1579_v27 = vld [vmem:[%s1576_s6] sm:$0xff]  ;;  %v1586_v31 = vld [vmem:[%s1576_s6 + $0x8] sm:$0xff] }
  0x14   : > { %648 = vmatpush.msra.mxu1 %v351_v22  ;;  %v1595_v36 = vld [vmem:[%s1576_s6 + $0x10] sm:$0xff]  ;;  %v1602_v41 = vld [vmem:[%s1576_s6 + $0x18] sm:$0xff]  ;;  %v1609_v46 = vld [vmem:[%s1576_s6 + $0x20] sm:$0xff] }
  0x15   : > { %v1618_v50 = vld [vmem:[%s1576_s6 + $0x28] sm:$0xff]  ;;  %v1629_v56 = vld [vmem:[%s1576_s6 + $0x30] sm:$0xff]  ;;  %v1641_v61 = vld [vmem:[%s1576_s6 + $0x38] sm:$0xff] }
  0x16   : > { %v1675_v20 = vld [vmem:[%s1576_s6 + $0x50] sm:$0xff] }
  0x17   : > { %282 = vperm.xlu2 %1386, %v1477_v4   ;;  %272 = vperm.xlu1 %1385, %v1480_v5  }
  0x18   : > { %262 = vperm.xlu0 %1384, %v1483_v6  }
  0x1f   : > { %297 = vperm.xlu2 %1386, %v1489_v7   ;;  %292 = vperm.xlu1 %1385, %v1492_v8  }
  0x20   : > { %287 = vperm.xlu0 %1384, %v1495_v9  }
  0x27   : > { %312 = vperm.xlu2 %1386, %v1501_v10   ;;  %307 = vperm.xlu1 %1385, %v1504_v11  }
  0x28   : > { %302 = vperm.xlu0 %1384, %v1507_v12  }
  0x2f   : > { %327 = vperm.xlu2 %1386, %v1513_v13   ;;  %322 = vperm.xlu1 %1385, %v1516_v14  }
  0x30   : > { %317 = vperm.xlu0 %1384, %v1519_v15  }
  0x37   : > { %1388 = vset.pattern.permute.xlu2 %v1417_v17  ;;  %1387 = vset.pattern.permute.xlu1 %v1417_v17 }
  0x38   : > { %332 = vperm.xlu0 %1384, %v1525_v16   ;;  %360 = vperm.xlu2 %1388, %v1483_v6  }
  0x39   : > { %356 = vperm.xlu1 %1387, %v1471_v3  }
  0x40   : > { %1389 = vset.pattern.permute.xlu0 %v1417_v17  ;;  %372 = vperm.xlu2 %1388, %v1465_v1  }
  0x41   : > { %368 = vperm.xlu1 %1387, %v1480_v5   ;;  %364 = vperm.xlu0 %1389, %v1468_v2  }
  0x48   : > { %380 = vperm.xlu2 %1388, %v1495_v9  }
  0x49   : > { %376 = vperm.xlu1 %1387, %v1477_v4   ;;  %384 = vperm.xlu0 %1389, %v1492_v8  }
  0x50   : > { %392 = vperm.xlu2 %1388, %v1507_v12  }
  0x51   : > { %388 = vperm.xlu1 %1387, %v1489_v7   ;;  %396 = vperm.xlu0 %1389, %v1504_v11  }
  0x58   : > { %404 = vperm.xlu2 %1388, %v1519_v15  }
  0x59   : > { %400 = vperm.xlu1 %1387, %v1501_v10   ;;  %408 = vperm.xlu0 %1389, %v1516_v14  }
  0x60   : > { %416 = vperm.xlu2 %1388, %v1525_v16  }
  0x61   : > { %412 = vperm.xlu1 %1387, %v1513_v13   ;;  %1392 = vset.pattern.permute.xlu0 %v1418_v21 }
  0x62   : > { %952 = vperm.xlu0 %1392, %v1468_v2  }
  0x68   : > { %1391 = vset.pattern.permute.xlu2 %v1419_v23 }
  0x69   : > { %1390 = vset.pattern.permute.xlu1 %v1418_v21  ;;  %703 = vperm.xlu2 %1391, %v1483_v6   ;;  %v278_v24 = vpop.permute.xlu2 %277 }
  0x6a   : > { %944 = vperm.xlu1 %1390, %v1471_v3   ;;  %1393 = vset.pattern.permute.xlu0 %v1419_v23  ;;  %v339_v49 = vmul.f32 %v278_v24, %v1609_v46 }
  0x6b   : > { %699 = vperm.xlu0 %1393, %v1471_v3  }
  0x71   : > { %707 = vperm.xlu2 %1391, %v1468_v2   ;;  %v283_v25 = vpop.permute.xlu2 %282  ;;  %v1654_v2 = vld [vmem:[%s1576_s6 + $0x40] sm:$0xff] }
  0x72   : > { %948 = vperm.xlu1 %1390, %v1483_v6   ;;  %v340_v53 = vmul.f32 %v283_v25, %v1618_v50 }
  0x73   : > { %719 = vperm.xlu0 %1393, %v1477_v4  }
  0x79   : > { %1395 = vset.pattern.permute.xlu2 %v1418_v21  ;;  %v298_v26 = vpop.permute.xlu2 %297 }
  0x7a   : > { %1394 = vset.pattern.permute.xlu1 %v1419_v23  ;;  %956 = vperm.xlu2 %1395, %v1480_v5   ;;  %v343_v3 = vmul.f32 %v298_v26, %v1654_v2 }
  0x7b   : > { %711 = vperm.xlu1 %1394, %v1480_v5   ;;  %723 = vperm.xlu0 %1393, %v1495_v9  }
  0x81   : > { %v268_v28 = vpop.permute.xlu1 %267  ;;  %v1588_v33 = vpop.permute.xlu2 %312 }
  0x82   : > { %v258_v29 = vpop.permute.xlu0 %257  ;;  %960 = vperm.xlu2 %1395, %v1465_v1   ;;  %v337_v39 = vmul.f32 %v268_v28, %v1595_v36 }
  0x83   : > { %v335_v30 = vmul.f32 %v258_v29, %v1579_v27  ;;  %715 = vperm.xlu1 %1394, %v1465_v1   ;;  %v1686_v29 = vld [vmem:[%s1576_s6 + $0x58] sm:$0xff] }
  0x85   : > { %1319 = vmatmul.msk.f32.vlgmr.msra.gmra.mxu1 %vm487_vm0, %v335_v30 }
  0x89   : > { %v273_v32 = vpop.permute.xlu1 %272  ;;  %v1598_v40 = vpop.permute.xlu2 %327 }
  0x8a   : > { %v263_v34 = vpop.permute.xlu0 %262  ;;  %964 = vperm.xlu2 %1395, %v1477_v4   ;;  %v338_v44 = vmul.f32 %v273_v32, %v1602_v41  ;;  %v346_v32 = vmul.f32 %v1588_v33, %v1686_v29  ;;  %v437_v33 = vld [vmem:[%s1979_s2 + $0x30] sm:$0xff] }
  0x8b   : > { %v336_v35 = vmul.f32 %v263_v34, %v1586_v31  ;;  %1397 = vset.pattern.permute.xlu1 %v1418_v21 }
  0x8d   : > { %1320 = vmatmul.msk.f32.gmra.mxu1 %vm487_vm0, %v336_v35 }
  0x91   : > { %v293_v37 = vpop.permute.xlu1 %292 }
  0x92   : > { %v288_v38 = vpop.permute.xlu0 %287  ;;  %v1606_v45 = vpop.permute.xlu2 %360  ;;  %v342_v62 = vmul.f32 %v293_v37, %v1641_v61 }
  0x93   : > { %v341_v58 = vmul.f32 %v288_v38, %v1629_v56  ;;  %v1693_v38 = vld [vmem:[%s1576_s6 + $0x60] sm:$0xff] }
  0x95   : > { %1321 = vmatmul.msk.f32.gmra.mxu1 %vm487_vm0, %v337_v39  ;;  %v438_v39 = vld [vmem:[%s1979_s2 + $0x38] sm:$0xff] }
  0x96   : > { %532 = vmatpush.msra.mxu0 %v438_v39 }
  0x98   : > { %533 = vmatpush.msra.mxu0 %v437_v33 }
  0x99   : > { %v308_v42 = vpop.permute.xlu1 %307 }
  0x9a   : > { %v303_v43 = vpop.permute.xlu0 %302  ;;  %v1620_v51 = vpop.permute.xlu2 %372  ;;  %v345_v24 = vmul.f32 %v308_v42, %v1675_v20 }
  0x9d   : > { %1322 = vmatmul.msk.f32.gmra.mxu1 %vm487_vm0, %v338_v44 }
  0xa1   : > { %v1611_v47 = vpop.permute.xlu1 %322 }
  0xa2   : > { %v1613_v48 = vpop.permute.xlu0 %317  ;;  %v1631_v57 = vpop.permute.xlu2 %380 }
  0xa3   : > { %v347_v44 = vmul.f32 %v1613_v48, %v1693_v38 }
  0xa5   : > { %1323 = vmatmul.msk.f32.gmra.mxu1 %vm487_vm0, %v339_v49 }
  0xaa   : > { %v1622_v52 = vpop.permute.xlu0 %332  ;;  %v1648_v1 = vpop.permute.xlu2 %392 }
  0xab   : > { %v357_v54 = vpop.permute.xlu1 %356 }
  0xac   : > { %v419_v55 = vmul.f32 %v357_v54, %v1579_v27 }
  0xad   : > { %1324 = vmatmul.msk.f32.gmra.mxu1 %vm487_vm0, %v340_v53 }
  0xae   : > { %455 = vrot.lane.b32.xlu2 %v419_v55, %s1420_s7  ;;  %v435_v55 = vld [vmem:[%s1979_s2 + $0x20] sm:$0xff] }
  0xb2   : > { %v1662_v6 = vpop.permute.xlu2 %404 }
  0xb3   : > { %v1634_v59 = vpop.permute.xlu1 %368  ;;  %v1636_v60 = vpop.permute.xlu0 %364 }
  0xb5   : > { %1325 = vmatmul.msk.f32.gmra.mxu1 %vm487_vm0, %v341_v58  ;;  %v1715_v58 = vld [vmem:[%s1576_s6 + $0x68] sm:$0xff] }
  0xb6   : > { %968 = vperm.xlu2 %1395, %v1495_v9   ;;  %v1666_v9 = vld [vmem:[%s1576_s6 + $0x48] sm:$0xff] }
  0xb7   : > { %v344_v17 = vmul.f32 %v303_v43, %v1666_v9  ;;  %v436_v43 = vld [vmem:[%s1979_s2 + $0x28] sm:$0xff] }
  0xb8   : > { %534 = vmatpush.msra.mxu0 %v436_v43  ;;  %v778_v43 = vld [vmem:[%s1979_s2 + $0x40] sm:$0xff] }
  0xba   : > { %v1677_v22 = vpop.permute.xlu2 %416  ;;  %535 = vmatpush.msra.mxu0 %v435_v55  ;;  %v425_v55 = vmul.f32 %v1631_v57, %v1629_v56 }
  0xbb   : > { %v1644_v63 = vpop.permute.xlu1 %376  ;;  %v1646_v0 = vpop.permute.xlu0 %384 }
  0xbd   : > { %1326 = vmatmul.msk.f32.gmra.mxu1 %vm487_vm0, %v342_v62  ;;  %v348_v62 = vmul.f32 %v1611_v47, %v1715_v58 }
  0xbe   : > { %1396 = vset.pattern.permute.xlu2 %v1419_v23 }
  0xbf   : > { %727 = vperm.xlu2 %1396, %v1492_v8  }
  0xc3   : > { %v1657_v4 = vpop.permute.xlu1 %388  ;;  %v1659_v5 = vpop.permute.xlu0 %396 }
  0xc4   : > { %v704_v30 = vpop.permute.xlu2 %703 }
  0xc5   : > { %1327 = vmatmul.msk.f32.gmra.mxu1 %vm487_vm0, %v343_v3 }
  0xc7   : > { %1399 = vset.pattern.permute.xlu2 %v1418_v21 }
  0xcb   : > { %v1669_v18 = vpop.permute.xlu1 %400  ;;  %v1671_v19 = vpop.permute.xlu0 %408 }
  0xcc   : > { %v708_v42 = vpop.permute.xlu2 %707 }
  0xcd   : > { %1328 = vmatmul.msk.f32.gmra.mxu1 %vm487_vm0, %v344_v17  ;;  %v764_v3 = vmul.f32 %v708_v42, %v1595_v36  ;;  %v426_v42 = vmul.f32 %v1646_v0, %v1641_v61 }
  0xd3   : > { %v1680_v25 = vpop.permute.xlu1 %412 }
  0xd4   : > { %v953_v26 = vpop.permute.xlu0 %952  ;;  %v957_v48 = vpop.permute.xlu2 %956 }
  0xd5   : > { %v1009_v28 = vmul.f32 %v953_v26, %v1595_v36  ;;  %1329 = vmatmul.msk.f32.gmra.mxu1 %vm487_vm0, %v345_v24  ;;  %v1726_v26 = vld [vmem:[%s1576_s6 + $0x70] sm:$0xff] }
  0xd6   : > { %v349_v47 = vmul.f32 %v1598_v40, %v1726_v26 }
  0xd7   : > { %1047 = vrot.lane.b32.xlu2 %v1009_v28, %s1421_s8 }
  0xdc   : > { %v945_v34 = vpop.permute.xlu1 %944  ;;  %v961_v28 = vpop.permute.xlu2 %960 }
  0xdd   : > { %v700_v35 = vpop.permute.xlu0 %699  ;;  %1330 = vmatmul.msk.f32.gmra.mxu1 %vm487_vm0, %v346_v32  ;;  %v1007_v54 = vmul.f32 %v945_v34, %v1579_v27  ;;  %v421_v32 = vmul.f32 %v1636_v60, %v1595_v36  ;;  %v422_v34 = vmul.f32 %v1634_v59, %v1602_v41  ;;  %v1010_v59 = vmul.f32 %v957_v48, %v1602_v41 }
  0xde   : > { %v762_v37 = vmul.f32 %v700_v35, %v1579_v27  ;;  %v763_v27 = vmul.f32 %v704_v30, %v1586_v31  ;;  %v420_v30 = vmul.f32 %v1606_v45, %v1586_v31  ;;  %v1741_v35 = vld [vmem:[%s1576_s6 + $0x78] sm:$0xff]  ;;  %v423_v45 = vmul.f32 %v1620_v51, %v1609_v46 }
  0xdf   : > { %v350_v36 = vmul.f32 %v1622_v52, %v1741_v35 }
  0xe0   : > { %798 = vrot.lane.b32.xlu1 %v762_v37, %s1422_s9  ;;  %v1011_v37 = vmul.f32 %v961_v28, %v1609_v46 }
  0xe4   : > { %v949_v49 = vpop.permute.xlu1 %948 }
  0xe5   : > { %v1008_v53 = vmul.f32 %v949_v49, %v1586_v31  ;;  %1331 = vmatmul.msk.f32.gmra.mxu1 %vm487_vm0, %v347_v44  ;;  %v965_v31 = vpop.permute.xlu2 %964  ;;  %v1026_v44 = vld [vmem:[%s1979_s2 + $0x78] sm:$0xff]  ;;  %v1024_v49 = vld [vmem:[%s1979_s2 + $0x68] sm:$0xff] }
  0xe6   : > { %v1012_v33 = vmul.f32 %v965_v31, %v1618_v50  ;;  %1119 = vmatpush.msra.mxu3 %v1026_v44 }
  0xe7   : > { %1045 = vrot.lane.b32.xlu0 %v1008_v53, %s1421_s8 }
  0xe8   : > { %1043 = vrot.lane.b32.xlu1 %v1007_v54, %s1421_s8  ;;  %v1023_v54 = vld [vmem:[%s1979_s2 + $0x60] sm:$0xff] }
  0xed   : > { %v712_v17 = vpop.permute.xlu1 %711  ;;  %1332 = vmatmul.msk.f32.gmra.mxu1 %vm487_vm0, %v348_v62 }
  0xee   : > { %v765_v24 = vmul.f32 %v712_v17, %v1602_v41 }
  0xef   : > { %802 = vrot.lane.b32.xlu0 %v764_v3, %s1422_s9 }
  0xf0   : > { %800 = vrot.lane.b32.xlu1 %v763_v27, %s1422_s9  ;;  %804 = vrot.lane.b32.xlu2 %v765_v24, %s1422_s9 }
  0xf5   : > { %1333 = vmatmul.msk.f32.gmra.mxu1 %vm487_vm0, %v349_v47  ;;  %v716_v40 = vpop.permute.xlu1 %715 }
  0xf6   : > { %v766_v60 = vmul.f32 %v716_v40, %v1609_v46  ;;  %v779_v46 = vld [vmem:[%s1979_s2 + $0x48] sm:$0xff] }
  0xf7   : > { %459 = vrot.lane.b32.xlu0 %v421_v32, %s1420_s7 }
  0xf8   : > { %457 = vrot.lane.b32.xlu1 %v420_v30, %s1420_s7  ;;  %461 = vrot.lane.b32.xlu2 %v422_v34, %s1420_s7 }
  0xfd   : > { %1334 = vmatmul.msk.f32.gmra.mxu1 %vm487_vm0, %v350_v36 }
  0xff   : > { %739 = vperm.xlu0 %1393, %v1504_v11  }
 0x100   : > { %972 = vperm.xlu1 %1397, %v1492_v8   ;;  %806 = vrot.lane.b32.xlu2 %v766_v60, %s1422_s9  ;;  %v424_v8 = vmul.f32 %v1644_v63, %v1618_v50  ;;  %v720_v63 = vpop.permute.xlu0 %719 }
 0x101   : > { %v767_v39 = vmul.f32 %v720_v63, %v1618_v50  ;;  %v1025_v50 = vld [vmem:[%s1979_s2 + $0x70] sm:$0xff]  ;;  %v428_v63 = vmul.f32 %v1648_v1, %v1666_v9  ;;  %v429_v1 = vmul.f32 %v1659_v5, %v1675_v20 }
 0x102   : > { %1120 = vmatpush.msra.mxu3 %v1025_v50  ;;  %v433_v50 = vmul.f32 %v1680_v25, %v1726_v26 }
 0x104   : > { %1121 = vmatpush.msra.mxu3 %v1024_v49 }
 0x106   : > { %1122 = vmatpush.msra.mxu3 %v1023_v54 }
 0x107   : > { %743 = vperm.xlu0 %1393, %v1501_v10  }
 0x108   : > { %1398 = vset.pattern.permute.xlu1 %v1419_v23  ;;  %463 = vrot.lane.b32.xlu2 %v423_v45, %s1420_s7  ;;  %v456_v52 = vpop.permute.xlu2 %455  ;;  %v724_v0 = vpop.permute.xlu0 %723 }
 0x109   : > { %731 = vperm.xlu1 %1398, %v1489_v7   ;;  %1303 = vmatmul.msk.f32.vlgmr.msra.gmra.mxu0 %vm487_vm0, %v456_v52  ;;  %v768_v53 = vmul.f32 %v724_v0, %v1629_v56 }
 0x10f   : > { %1400 = vset.pattern.permute.xlu0 %v1418_v21 }
 0x110   : > { %976 = vperm.xlu0 %1400, %v1489_v7   ;;  %984 = vperm.xlu2 %1399, %v1504_v11   ;;  %v969_v51 = vpop.permute.xlu2 %968 }
 0x111   : > { %1049 = vrot.lane.b32.xlu1 %v1010_v59, %s1421_s8  ;;  %v1013_v41 = vmul.f32 %v969_v51, %v1629_v56 }
 0x118   : > { %980 = vperm.xlu0 %1400, %v1507_v12   ;;  %465 = vrot.lane.b32.xlu2 %v424_v8, %s1420_s7  ;;  %v427_v8 = vmul.f32 %v1657_v4, %v1654_v2 }
 0x119   : > { %735 = vperm.xlu1 %1398, %v1507_v12   ;;  %v728_v7 = vpop.permute.xlu2 %727  ;;  %v780_v12 = vld [vmem:[%s1979_s2 + $0x50] sm:$0xff] }
 0x11a   : > { %v769_v11 = vmul.f32 %v728_v7, %v1641_v61 }
 0x120   : > { %1055 = vrot.lane.b32.xlu0 %v1013_v41, %s1421_s8  ;;  %988 = vperm.xlu2 %1399, %v1501_v10   ;;  %v781_v10 = vld [vmem:[%s1979_s2 + $0x58] sm:$0xff] }
 0x121   : > { %1051 = vrot.lane.b32.xlu1 %v1011_v37, %s1421_s8  ;;  %874 = vmatpush.msra.mxu2 %v781_v10 }
 0x122   : > { %1402 = vset.pattern.permute.xlu1 %v1418_v21 }
 0x123   : > { %875 = vmatpush.msra.mxu2 %v780_v12 }
 0x125   : > { %876 = vmatpush.msra.mxu2 %v779_v46 }
 0x127   : > { %877 = vmatpush.msra.mxu2 %v778_v43 }
 0x128   : > { %812 = vrot.lane.b32.xlu0 %v769_v11, %s1422_s9  ;;  %1401 = vset.pattern.permute.xlu2 %v1419_v23 }
 0x129   : > { %808 = vrot.lane.b32.xlu1 %v767_v39, %s1422_s9  ;;  %747 = vperm.xlu2 %1401, %v1519_v15  }
 0x130   : > { %469 = vrot.lane.b32.xlu0 %v426_v42, %s1420_s7 }
 0x131   : > { %1053 = vrot.lane.b32.xlu1 %v1012_v33, %s1421_s8  ;;  %1405 = vset.pattern.permute.xlu2 %v1418_v21  ;;  %v1048_v48 = vpop.permute.xlu2 %1047 }
 0x138   : > { %996 = vperm.xlu0 %1400, %v1516_v14  }
 0x139   : > { %810 = vrot.lane.b32.xlu1 %v768_v53, %s1422_s9 }
 0x140   : > { %1000 = vperm.xlu0 %1400, %v1513_v13  }
 0x141   : > { %467 = vrot.lane.b32.xlu1 %v425_v55, %s1420_s7 }
 0x148   : > { %1404 = vset.pattern.permute.xlu0 %v1419_v23 }
 0x149   : > { %992 = vperm.xlu1 %1402, %v1519_v15   ;;  %759 = vperm.xlu0 %1404, %v1525_v16  }
 0x14a   : > { %v805_v62 = vpop.permute.xlu2 %804 }
 0x151   : > { %1403 = vset.pattern.permute.xlu1 %v1419_v23  ;;  %1406 = vset.pattern.permute.xlu0 %v1418_v21 }
 0x152   : > { %751 = vperm.xlu1 %1403, %v1516_v14   ;;  %v799_v3 = vpop.permute.xlu1 %798  ;;  %v462_v56 = vpop.permute.xlu2 %461 }
 0x153   : > { %1335 = vmatmul.msk.f32.vlgmr.msra.gmra.mxu2 %vm487_vm0, %v799_v3 }
 0x159   : > { %v1046_v57 = vpop.permute.xlu0 %1045 }
 0x15a   : > { %v1044_v17 = vpop.permute.xlu1 %1043  ;;  %v807_v27 = vpop.permute.xlu2 %806 }
 0x15b   : > { %1351 = vmatmul.msk.f32.vlgmr.msra.gmra.mxu3 %vm487_vm0, %v1044_v17 }
 0x161   : > { %v803_v24 = vpop.permute.xlu0 %802 }
 0x162   : > { %v801_v15 = vpop.permute.xlu1 %800  ;;  %v464_v23 = vpop.permute.xlu2 %463 }
 0x163   : > { %1336 = vmatmul.msk.f32.gmra.mxu2 %vm487_vm0, %v801_v15  ;;  %1352 = vmatmul.msk.f32.gmra.mxu3 %vm487_vm0, %v1046_v57 }
 0x169   : > { %v460_v47 = vpop.permute.xlu0 %459 }
 0x16a   : > { %v458_v21 = vpop.permute.xlu1 %457  ;;  %v985_v14 = vpop.permute.xlu2 %984 }
 0x16b   : > { %1304 = vmatmul.msk.f32.gmra.mxu0 %vm487_vm0, %v458_v21  ;;  %1337 = vmatmul.msk.f32.gmra.mxu2 %vm487_vm0, %v803_v24  ;;  %v1017_v10 = vmul.f32 %v985_v14, %v1675_v20 }
 0x16c   : > { %1353 = vmatmul.msk.f32.gmra.mxu3 %vm487_vm0, %v1048_v48  ;;  %v650_v48 = vpop.f32.mrf.mxu1 }
 0x171   : > { %v740_v28 = vpop.permute.xlu0 %739 }
 0x172   : > { %v973_v32 = vpop.permute.xlu1 %972  ;;  %v466_v40 = vpop.permute.xlu2 %465  ;;  %v772_v39 = vmul.f32 %v740_v28, %v1675_v20  ;;  %v431_v20 = vmul.f32 %v1662_v6, %v1693_v38 }
 0x173   : > { %v1014_v30 = vmul.f32 %v973_v32, %v1641_v61  ;;  %1305 = vmatmul.msk.f32.gmra.mxu0 %vm487_vm0, %v460_v47  ;;  %1338 = vmatmul.msk.f32.gmra.mxu2 %vm487_vm0, %v805_v62 }
 0x174   : > { %v653_v15 = vpop.f32.mrf.mxu1 }
 0x175   : > { %1057 = vrot.lane.b32.xlu2 %v1014_v30, %s1421_s8 }
 0x179   : > { %v744_v34 = vpop.permute.xlu0 %743 }
 0x17a   : > { %v773_v36 = vmul.f32 %v744_v34, %v1686_v29  ;;  %v989_v45 = vpop.permute.xlu2 %988 }
 0x17b   : > { %v732_v60 = vpop.permute.xlu1 %731  ;;  %1306 = vmatmul.msk.f32.gmra.mxu0 %vm487_vm0, %v462_v56  ;;  %1339 = vmatmul.msk.f32.gmra.mxu2 %vm487_vm0, %v807_v27 }
 0x17c   : > { %v770_v31 = vmul.f32 %v732_v60, %v1654_v2  ;;  %820 = vrot.lane.b32.xlu0 %v773_v36, %s1422_s9  ;;  %v656_v34 = vpop.f32.mrf.mxu1 }
 0x17e   : > { %814 = vrot.lane.b32.xlu2 %v770_v31, %s1422_s9 }
 0x182   : > { %v977_v61 = vpop.permute.xlu0 %976 }
 0x183   : > { %v1015_v52 = vmul.f32 %v977_v61, %v1654_v2  ;;  %v1050_v59 = vpop.permute.xlu1 %1049  ;;  %1307 = vmatmul.msk.f32.gmra.mxu0 %vm487_vm0, %v464_v23  ;;  %v748_v41 = vpop.permute.xlu2 %747 }
 0x184   : > { %1354 = vmatmul.msk.f32.gmra.mxu3 %vm487_vm0, %v1050_v59  ;;  %v774_v7 = vmul.f32 %v748_v41, %v1693_v38 }
 0x185   : > { %1059 = vrot.lane.b32.xlu1 %v1015_v52, %s1421_s8 }
 0x186   : > { %471 = vrot.lane.b32.xlu2 %v427_v8, %s1420_s7  ;;  %822 = vrot.lane.b32.xlu0 %v774_v7, %s1422_s9 }
 0x18a   : > { %v981_v2 = vpop.permute.xlu0 %980 }
 0x18b   : > { %v736_v51 = vpop.permute.xlu1 %735  ;;  %1308 = vmatmul.msk.f32.gmra.mxu0 %vm487_vm0, %v466_v40  ;;  %v1016_v4 = vmul.f32 %v981_v2, %v1666_v9 }
 0x18c   : > { %v771_v37 = vmul.f32 %v736_v51, %v1666_v9  ;;  %v1018_v9 = vmul.f32 %v989_v45, %v1686_v29 }
 0x18d   : > { %755 = vperm.xlu1 %1403, %v1513_v13  }
 0x18e   : > { %816 = vrot.lane.b32.xlu2 %v771_v37, %s1422_s9 }
 0x192   : > { %v1056_v12 = vpop.permute.xlu0 %1055 }
 0x193   : > { %v1052_v11 = vpop.permute.xlu1 %1051 }
 0x194   : > { %1355 = vmatmul.msk.f32.gmra.mxu3 %vm487_vm0, %v1052_v11 }
 0x195   : > { %1061 = vrot.lane.b32.xlu1 %v1016_v4, %s1421_s8 }
 0x196   : > { %473 = vrot.lane.b32.xlu2 %v428_v63, %s1420_s7  ;;  %v659_v63 = vpop.f32.mrf.mxu1 }
 0x19a   : > { %v813_v42 = vpop.permute.xlu0 %812 }
 0x19b   : > { %v809_v13 = vpop.permute.xlu1 %808 }
 0x19c   : > { %1340 = vmatmul.msk.f32.gmra.mxu2 %vm487_vm0, %v809_v13 }
 0x19d   : > { %818 = vrot.lane.b32.xlu1 %v772_v39, %s1422_s9 }
 0x19e   : > { %1004 = vperm.xlu2 %1405, %v1525_v16   ;;  %v430_v16 = vmul.f32 %v1669_v18, %v1686_v29  ;;  %v432_v29 = vmul.f32 %v1671_v19, %v1715_v58 }
 0x1a2   : > { %v470_v43 = vpop.permute.xlu0 %469 }
 0x1a3   : > { %v1054_v46 = vpop.permute.xlu1 %1053 }
 0x1a4   : > { %1356 = vmatmul.msk.f32.gmra.mxu3 %vm487_vm0, %v1054_v46 }
 0x1a5   : > { %1063 = vrot.lane.b32.xlu1 %v1017_v10, %s1421_s8 }
 0x1a6   : > { %475 = vrot.lane.b32.xlu2 %v429_v1, %s1420_s7 }
 0x1aa   : > { %v997_v6 = vpop.permute.xlu0 %996 }
 0x1ab   : > { %v811_v33 = vpop.permute.xlu1 %810  ;;  %v1020_v0 = vmul.f32 %v997_v6, %v1715_v58 }
 0x1ac   : > { %1341 = vmatmul.msk.f32.gmra.mxu2 %vm487_vm0, %v811_v33  ;;  %1357 = vmatmul.msk.f32.gmra.mxu3 %vm487_vm0, %v1056_v12 }
 0x1ad   : > { %1065 = vrot.lane.b32.xlu1 %v1018_v9, %s1421_s8 }
 0x1ae   : > { %477 = vrot.lane.b32.xlu2 %v430_v16, %s1420_s7 }
 0x1b2   : > { %v1001_v19 = vpop.permute.xlu0 %1000 }
 0x1b3   : > { %v468_v5 = vpop.permute.xlu1 %467  ;;  %v1021_v54 = vmul.f32 %v1001_v19, %v1726_v26 }
 0x1b4   : > { %1309 = vmatmul.msk.f32.gmra.mxu0 %vm487_vm0, %v468_v5  ;;  %1342 = vmatmul.msk.f32.gmra.mxu2 %vm487_vm0, %v813_v42 }
 0x1b6   : > { %479 = vrot.lane.b32.xlu2 %v431_v20, %s1420_s7  ;;  %v662_v20 = vpop.f32.mrf.mxu1 }
 0x1bb   : > { %v993_v18 = vpop.permute.xlu1 %992  ;;  %v760_v10 = vpop.permute.xlu0 %759 }
 0x1bc   : > { %v1019_v44 = vmul.f32 %v993_v18, %v1693_v38  ;;  %1310 = vmatmul.msk.f32.gmra.mxu0 %vm487_vm0, %v470_v43  ;;  %v434_v38 = vmul.f32 %v1677_v22, %v1741_v35  ;;  %v1905_v22 = vld [vmem:[%s1980_s3] ss:$0 sm:$0xff]  ;;  %v777_v12 = vmul.f32 %v760_v10, %v1741_v35 }
 0x1be   : > { %481 = vrot.lane.b32.xlu2 %v432_v29, %s1420_s7  ;;  %1067 = vrot.lane.b32.xlu1 %v1019_v44, %s1421_s8 }
 0x1c4   : > { %v752_v49 = vpop.permute.xlu1 %751 }
 0x1c5   : > { %v775_v53 = vmul.f32 %v752_v49, %v1715_v58  ;;  %v537_v58 = vpop.f32.mrf.mxu0 }
 0x1c6   : > { %483 = vrot.lane.b32.xlu2 %v433_v50, %s1420_s7  ;;  %1069 = vrot.lane.b32.xlu1 %v1020_v0, %s1421_s8  ;;  %v651_v3 = vadd.f32 %v650_v48, %v537_v58  ;;  %v665_v58 = vpop.f32.mrf.mxu1 }
 0x1c7   : > { %824 = vrot.lane.b32.xlu0 %v775_v53, %s1422_s9 }
 0x1ce   : > { %485 = vrot.lane.b32.xlu2 %v434_v38, %s1420_s7  ;;  %1071 = vrot.lane.b32.xlu1 %v1021_v54, %s1421_s8 }
 0x1cf   : > { %v1058_v25 = vpop.permute.xlu2 %1057 }
 0x1d0   : > { %1358 = vmatmul.msk.f32.gmra.mxu3 %vm487_vm0, %v1058_v25 }
 0x1d6   : > { %v879_v62 = vpop.f32.mrf.mxu2 }
 0x1d7   : > { %v927_v56 = vadd.f32 %v879_v62, %v651_v3 }
 0x1d8   : > { %v815_v55 = vpop.permute.xlu2 %814 }
 0x1d9   : > { %1343 = vmatmul.msk.f32.gmra.mxu2 %vm487_vm0, %v815_v55 }
 0x1de   : > { %v1124_v57 = vpop.f32.mrf.mxu3 }
 0x1df   : > { %v1172_v17 = vadd.f32 %v1124_v57, %v927_v56 }
 0x1e0   : > { %v472_v27 = vpop.permute.xlu2 %471 }
 0x1e1   : > { %v1192_v24 = vadd.f32 %v1905_v22, %v1172_v17  ;;  %1311 = vmatmul.msk.f32.gmra.mxu0 %vm487_vm0, %v472_v27 }
 0x1e3   : > { %1208 = vst [vmem:[%s1911_s17] sm:$0xff] %v1192_v24  ;;  %v668_v24 = vpop.f32.mrf.mxu1 }
 0x1e6   : > { %v882_v23 = vpop.f32.mrf.mxu2  ;;  %v1127_v28 = vpop.f32.mrf.mxu3 }
 0x1e8   : > { %v540_v47 = vpop.f32.mrf.mxu0  ;;  %v817_v21 = vpop.permute.xlu2 %816 }
 0x1e9   : > { %v654_v14 = vadd.f32 %v653_v15, %v540_v47  ;;  %1344 = vmatmul.msk.f32.gmra.mxu2 %vm487_vm0, %v817_v21 }
 0x1eb   : > { %v928_v32 = vadd.f32 %v882_v23, %v654_v14 }
 0x1ed   : > { %v1173_v30 = vadd.f32 %v1127_v28, %v928_v32 }
 0x1ee   : > { %v885_v61 = vpop.f32.mrf.mxu2  ;;  %v821_v29 = vpop.permute.xlu0 %820 }
 0x1ef   : > { %v1193_v40 = vadd.f32 %v1905_v22, %v1173_v30  ;;  %v1130_v52 = vpop.f32.mrf.mxu3 }
 0x1f0   : > { %v543_v36 = vpop.f32.mrf.mxu0  ;;  %v474_v60 = vpop.permute.xlu2 %473 }
 0x1f1   : > { %1209 = vst [vmem:[%s1911_s17 + $0x8] sm:$0xff] %v1193_v40  ;;  %v657_v31 = vadd.f32 %v656_v34, %v543_v36  ;;  %1312 = vmatmul.msk.f32.gmra.mxu0 %vm487_vm0, %v474_v60  ;;  %v671_v60 = vpop.f32.mrf.mxu1 }
 0x1f3   : > { %v929_v45 = vadd.f32 %v885_v61, %v657_v31 }
 0x1f5   : > { %v1174_v59 = vadd.f32 %v1130_v52, %v929_v45 }
 0x1f6   : > { %v888_v13 = vpop.f32.mrf.mxu2 }
 0x1f7   : > { %v1194_v8 = vadd.f32 %v1905_v22, %v1174_v59  ;;  %v1060_v51 = vpop.permute.xlu1 %1059 }
 0x1f8   : > { %1359 = vmatmul.msk.f32.gmra.mxu3 %vm487_vm0, %v1060_v51  ;;  %v1005_v41 = vpop.permute.xlu2 %1004  ;;  %v546_v7 = vpop.f32.mrf.mxu0 }
 0x1f9   : > { %1210 = vst [vmem:[%s1911_s17 + $0x10] sm:$0xff] %v1194_v8  ;;  %v1022_v37 = vmul.f32 %v1005_v41, %v1741_v35  ;;  %v660_v39 = vadd.f32 %v659_v63, %v546_v7  ;;  %v823_v19 = vpop.permute.xlu0 %822  ;;  %v674_v7 = vpop.f32.mrf.mxu1 }
 0x1fb   : > { %1073 = vrot.lane.b32.xlu1 %v1022_v37, %s1421_s8  ;;  %v930_v46 = vadd.f32 %v888_v13, %v660_v39 }
 0x1fe   : > { %v891_v18 = vpop.f32.mrf.mxu2 }
 0x1ff   : > { %v756_v2 = vpop.permute.xlu1 %755 }
 0x200   : > { %v776_v4 = vmul.f32 %v756_v2, %v1726_v26  ;;  %v476_v11 = vpop.permute.xlu2 %475  ;;  %v549_v16 = vpop.f32.mrf.mxu0 }
 0x201   : > { %1313 = vmatmul.msk.f32.gmra.mxu0 %vm487_vm0, %v476_v11  ;;  %v663_v43 = vadd.f32 %v662_v20, %v549_v16 }
 0x202   : > { %826 = vrot.lane.b32.xlu0 %v776_v4, %s1422_s9 }
 0x203   : > { %v931_v44 = vadd.f32 %v891_v18, %v663_v43 }
 0x207   : > { %v1062_v1 = vpop.permute.xlu1 %1061  ;;  %v1133_v9 = vpop.f32.mrf.mxu3 }
 0x208   : > { %v1175_v42 = vadd.f32 %v1133_v9, %v930_v46  ;;  %1360 = vmatmul.msk.f32.gmra.mxu3 %vm487_vm0, %v1062_v1  ;;  %v478_v33 = vpop.permute.xlu2 %477  ;;  %v552_v25 = vpop.f32.mrf.mxu0 }
 0x209   : > { %1314 = vmatmul.msk.f32.gmra.mxu0 %vm487_vm0, %v478_v33  ;;  %v666_v48 = vadd.f32 %v665_v58, %v552_v25  ;;  %v677_v46 = vpop.f32.mrf.mxu1 }
 0x20a   : > { %v1195_v26 = vadd.f32 %v1905_v22, %v1175_v42  ;;  %828 = vrot.lane.b32.xlu0 %v777_v12, %s1422_s9 }
 0x20c   : > { %1211 = vst [vmem:[%s1911_s17 + $0x18] sm:$0xff] %v1195_v26 }
 0x20f   : > { %v819_v5 = vpop.permute.xlu1 %818 }
 0x210   : > { %1345 = vmatmul.msk.f32.gmra.mxu2 %vm487_vm0, %v819_v5  ;;  %v480_v35 = vpop.permute.xlu2 %479 }
 0x211   : > { %1315 = vmatmul.msk.f32.gmra.mxu0 %vm487_vm0, %v480_v35  ;;  %v680_v35 = vpop.f32.mrf.mxu1 }
 0x217   : > { %v1136_v6 = vpop.f32.mrf.mxu3  ;;  %v1064_v50 = vpop.permute.xlu1 %1063 }
 0x218   : > { %v1176_v0 = vadd.f32 %v1136_v6, %v931_v44  ;;  %1346 = vmatmul.msk.f32.gmra.mxu2 %vm487_vm0, %v821_v29  ;;  %1361 = vmatmul.msk.f32.gmra.mxu3 %vm487_vm0, %v1064_v50  ;;  %v482_v49 = vpop.permute.xlu2 %481 }
 0x219   : > { %1316 = vmatmul.msk.f32.gmra.mxu0 %vm487_vm0, %v482_v49 }
 0x21a   : > { %v1196_v53 = vadd.f32 %v1905_v22, %v1176_v0  ;;  %v683_v0 = vpop.f32.mrf.mxu1 }
 0x21c   : > { %1212 = vst [vmem:[%s1911_s17 + $0x20] sm:$0xff] %v1196_v53 }
 0x21f   : > { %v1066_v38 = vpop.permute.xlu1 %1065  ;;  %v894_v55 = vpop.f32.mrf.mxu2 }
 0x220   : > { %1347 = vmatmul.msk.f32.gmra.mxu2 %vm487_vm0, %v823_v19  ;;  %1362 = vmatmul.msk.f32.gmra.mxu3 %vm487_vm0, %v1066_v38  ;;  %v484_v54 = vpop.permute.xlu2 %483  ;;  %v932_v62 = vadd.f32 %v894_v55, %v666_v48 }
 0x221   : > { %1317 = vmatmul.msk.f32.gmra.mxu0 %vm487_vm0, %v484_v54 }
 0x222   : > { %v686_v55 = vpop.f32.mrf.mxu1 }
 0x227   : > { %v1139_v3 = vpop.f32.mrf.mxu3 }
 0x228   : > { %v1177_v56 = vadd.f32 %v1139_v3, %v932_v62  ;;  %v486_v57 = vpop.permute.xlu2 %485 }
 0x229   : > { %1318 = vmatmul.msk.f32.gmra.mxu0 %vm487_vm0, %v486_v57 }
 0x22a   : > { %v1197_v17 = vadd.f32 %v1905_v22, %v1177_v56 }
 0x22c   : > { %1213 = vst [vmem:[%s1911_s17 + $0x28] sm:$0xff] %v1197_v17 }
 0x22f   : > { %v897_v47 = vpop.f32.mrf.mxu2  ;;  %v1142_v14 = vpop.f32.mrf.mxu3 }
 0x230   : > { %v1068_v27 = vpop.permute.xlu1 %1067 }
 0x231   : > { %v555_v15 = vpop.f32.mrf.mxu0  ;;  %1363 = vmatmul.msk.f32.gmra.mxu3 %vm487_vm0, %v1068_v27 }
 0x232   : > { %v669_v23 = vadd.f32 %v668_v24, %v555_v15  ;;  %v689_v24 = vpop.f32.mrf.mxu1 }
 0x234   : > { %v933_v21 = vadd.f32 %v897_v47, %v669_v23 }
 0x236   : > { %v1178_v28 = vadd.f32 %v1142_v14, %v933_v21 }
 0x237   : > { %v900_v61 = vpop.f32.mrf.mxu2 }
 0x238   : > { %v1198_v32 = vadd.f32 %v1905_v22, %v1178_v28  ;;  %v1070_v30 = vpop.permute.xlu1 %1069 }
 0x239   : > { %v825_v34 = vpop.permute.xlu0 %824  ;;  %1364 = vmatmul.msk.f32.gmra.mxu3 %vm487_vm0, %v1070_v30  ;;  %v558_v36 = vpop.f32.mrf.mxu0 }
 0x23a   : > { %1214 = vst [vmem:[%s1911_s17 + $0x30] sm:$0xff] %v1198_v32  ;;  %1348 = vmatmul.msk.f32.gmra.mxu2 %vm487_vm0, %v825_v34  ;;  %v672_v31 = vadd.f32 %v671_v60, %v558_v36  ;;  %v692_v30 = vpop.f32.mrf.mxu1 }
 0x23c   : > { %v934_v45 = vadd.f32 %v900_v61, %v672_v31 }
 0x240   : > { %v1072_v40 = vpop.permute.xlu1 %1071 }
 0x241   : > { %1365 = vmatmul.msk.f32.gmra.mxu3 %vm487_vm0, %v1072_v40 }
 0x253   : > { %v1145_v52 = vpop.f32.mrf.mxu3 }
 0x254   : > { %v1179_v59 = vadd.f32 %v1145_v52, %v934_v45  ;;  %v695_v52 = vpop.f32.mrf.mxu1 }
 0x256   : > { %v1199_v8 = vadd.f32 %v1905_v22, %v1179_v59 }
 0x258   : > { %1215 = vst [vmem:[%s1911_s17 + $0x38] sm:$0xff] %v1199_v8 }
 0x25c   : > { %v903_v4 = vpop.f32.mrf.mxu2 }
 0x25e   : > { %v561_v41 = vpop.f32.mrf.mxu0 }
 0x25f   : > { %v675_v2 = vadd.f32 %v674_v7, %v561_v41 }
 0x261   : > { %v935_v11 = vadd.f32 %v903_v4, %v675_v2 }
 0x26c   : > { %v906_v9 = vpop.f32.mrf.mxu2 }
 0x26d   : > { %v1074_v51 = vpop.permute.xlu1 %1073 }
 0x26e   : > { %1366 = vmatmul.msk.f32.gmra.mxu3 %vm487_vm0, %v1074_v51  ;;  %v564_v12 = vpop.f32.mrf.mxu0 }
 0x26f   : > { %v678_v1 = vadd.f32 %v677_v46, %v564_v12 }
 0x271   : > { %v936_v42 = vadd.f32 %v906_v9, %v678_v1 }
 0x274   : > { %v827_v37 = vpop.permute.xlu0 %826 }
 0x275   : > { %1349 = vmatmul.msk.f32.gmra.mxu2 %vm487_vm0, %v827_v37 }
 0x27b   : > { %v1148_v63 = vpop.f32.mrf.mxu3 }
 0x27c   : > { %v1180_v39 = vadd.f32 %v1148_v63, %v935_v11  ;;  %v829_v13 = vpop.permute.xlu0 %828 }
 0x27d   : > { %1350 = vmatmul.msk.f32.gmra.mxu2 %vm487_vm0, %v829_v13 }
 0x27e   : > { %v1200_v10 = vadd.f32 %v1905_v22, %v1180_v39  ;;  %v567_v5 = vpop.f32.mrf.mxu0 }
 0x27f   : > { %v681_v43 = vadd.f32 %v680_v35, %v567_v5 }
 0x280   : > { %1216 = vst [vmem:[%s1911_s17 + $0x40] sm:$0xff] %v1200_v10 }
 0x286   : > { %v570_v6 = vpop.f32.mrf.mxu0 }
 0x287   : > { %v684_v53 = vadd.f32 %v683_v0, %v570_v6 }
 0x28b   : > { %v1151_v33 = vpop.f32.mrf.mxu3 }
 0x28c   : > { %v1181_v26 = vadd.f32 %v1151_v33, %v936_v42 }
 0x28e   : > { %v1201_v16 = vadd.f32 %v1905_v22, %v1181_v26  ;;  %v573_v58 = vpop.f32.mrf.mxu0 }
 0x28f   : > { %v687_v62 = vadd.f32 %v686_v55, %v573_v58 }
 0x290   : > { %1217 = vst [vmem:[%s1911_s17 + $0x48] sm:$0xff] %v1201_v16 }
 0x293   : > { %v909_v20 = vpop.f32.mrf.mxu2 }
 0x294   : > { %v937_v18 = vadd.f32 %v909_v20, %v681_v43 }
 0x296   : > { %v576_v27 = vpop.f32.mrf.mxu0 }
 0x297   : > { %v690_v15 = vadd.f32 %v689_v24, %v576_v27 }
 0x29b   : > { %v1154_v29 = vpop.f32.mrf.mxu3  ;;  %v912_v49 = vpop.f32.mrf.mxu2 }
 0x29c   : > { %v1182_v44 = vadd.f32 %v1154_v29, %v937_v18  ;;  %v938_v19 = vadd.f32 %v912_v49, %v684_v53 }
 0x29e   : > { %v1202_v50 = vadd.f32 %v1905_v22, %v1182_v44  ;;  %v579_v32 = vpop.f32.mrf.mxu0 }
 0x29f   : > { %v693_v34 = vadd.f32 %v692_v30, %v579_v32 }
 0x2a0   : > { %1218 = vst [vmem:[%s1911_s17 + $0x50] sm:$0xff] %v1202_v50 }
 0x2a3   : > { %v1157_v38 = vpop.f32.mrf.mxu3  ;;  %v915_v48 = vpop.f32.mrf.mxu2 }
 0x2a4   : > { %v1183_v54 = vadd.f32 %v1157_v38, %v938_v19  ;;  %v939_v3 = vadd.f32 %v915_v48, %v687_v62 }
 0x2a6   : > { %v1203_v25 = vadd.f32 %v1905_v22, %v1183_v54  ;;  %v582_v61 = vpop.f32.mrf.mxu0 }
 0x2a7   : > { %v696_v59 = vadd.f32 %v695_v52, %v582_v61 }
 0x2a8   : > { %1219 = vst [vmem:[%s1911_s17 + $0x58] sm:$0xff] %v1203_v25 }
 0x2b4   : > { %v1160_v56 = vpop.f32.mrf.mxu3 }
 0x2b5   : > { %v1184_v57 = vadd.f32 %v1160_v56, %v939_v3 }
 0x2b7   : > { %v1204_v17 = vadd.f32 %v1905_v22, %v1184_v57 }
 0x2b9   : > { %1220 = vst [vmem:[%s1911_s17 + $0x60] sm:$0xff] %v1204_v17 }
 0x2bc   : > { %v1163_v21 = vpop.f32.mrf.mxu3 }
 0x2bd   : > { %v918_v23 = vpop.f32.mrf.mxu2 }
 0x2be   : > { %v940_v47 = vadd.f32 %v918_v23, %v690_v15 }
 0x2c0   : > { %v1185_v14 = vadd.f32 %v1163_v21, %v940_v47 }
 0x2c2   : > { %v1205_v28 = vadd.f32 %v1905_v22, %v1185_v14 }
 0x2c4   : > { %1221 = vst [vmem:[%s1911_s17 + $0x68] sm:$0xff] %v1205_v28  ;;  %v1166_v40 = vpop.f32.mrf.mxu3 }
 0x2f1   : > { %v1169_v51 = vpop.f32.mrf.mxu3 }
 0x2f8   : > { %v921_v36 = vpop.f32.mrf.mxu2 }
 0x2f9   : > { %v941_v60 = vadd.f32 %v921_v36, %v693_v34 }
 0x2fb   : > { %v1186_v31 = vadd.f32 %v1166_v40, %v941_v60 }
 0x2fd   : > { %v1206_v45 = vadd.f32 %v1905_v22, %v1186_v31 }
 0x2ff   : > { %1222 = vst [vmem:[%s1911_s17 + $0x70] sm:$0xff] %v1206_v45 }
 0x300   : > { %v924_v8 = vpop.f32.mrf.mxu2 }
 0x301   : > { %v942_v41 = vadd.f32 %v924_v8, %v696_v59 }
 0x303   : > { %v1187_v37 = vadd.f32 %v1169_v51, %v942_v41 }
 0x305   : > { %v1207_v7 = vadd.f32 %v1905_v22, %v1187_v37 }
 0x307   : > { %1223 = vst [vmem:[%s1911_s17 + $0x78] sm:$0xff] %v1207_v7 }
 0x308 PF: > { %s14_s15 = sadd.s32 1, %s1414_s15  }
 0x309   : > { %p11_p4 = scmp.ge.s32.totalorder %s14_s15, 6  }
 0x30b   :  { %13 = sbr.rel (!%p11_p4) target bundleno = 1 (0x1), region = 69 }

// kernel: _lambda_.6
= control target key start
LH: loop header
LB: loop body
LE: loop exit
PB: predicated region body
PF: predicated region fallthrough
CT: control target
= control target key end

     0   :  { %s1252_s15 = smov 0   ;;  %s1725_s0 = inlined_call_operand.vmem [shape: f32[512,512], index: 0, kind: input, shape index: {}]   ;;  %s1726_s1 = inlined_call_operand.vmem [shape: f32[512,4], index: 1, kind: input, shape index: {}]   ;;  %s1727_s2 = inlined_call_operand.vmem [shape: f32[512,128], index: 2, kind: input, shape index: {}]   ;;  %s1728_s3 = inlined_call_operand.vmem [shape: f32[1,128], index: 3, kind: input, shape index: {}]   ;;  %s1729_s4 = inlined_call_operand.vmem [shape: f32[512,128], index: 4, kind: output, shape index: {}]  }
   0x1 LB: > { %s1150_s16 = sadd.s32 4294967295, %s1221_s15   ;;  %p1154_p0 = scmp.ge.s32.totalorder %s1221_s15, 1  ;;  %s1221_s15 = sphi %s1252_s15, %s14_s15  }
   0x2   : > { %p175_p1 = scmp.lt.s32.totalorder %s1221_s15, 5 }
   0x4   : > { %p176_p2 = pnand %p1154_p0, %p175_p1 }
   0x5   : > { %s1155_s17 = sshll.u32 (!%p176_p2), %s1150_s16, 4 }
   0x6   : > { %179 = sbr.rel (%p176_p2) target bundleno = 474 (0x1da), region = 36  ;;  %p208_p3 = scmp.lt.s32.totalorder (!%p176_p2), %s1155_s17, 63 }
   0xb   : > { %v1223_v0 = vmov 0   ;;  %s1731_s17 = smov (!%p208_p3, %s1155_s17), 63  ;;  %v1224_v15 = vmov 2   ;;  %v1225_v16 = vmov 1   ;;  %v1226_v17 = vmov 3   ;;  %v369_v18 = vld [vmem:[%s1727_s2 + $0x78] sm:$0xff] }
   0xc   : > { %1178 = vset.pattern.permute.xlu1 %v1223_v0  ;;  %1177 = vset.pattern.permute.xlu0 %v1223_v0  ;;  %s1159_s18 = sshll.u32 %s1731_s17, 3  ;;  %v368_v19 = vld [vmem:[%s1727_s2 + $0x70] sm:$0xff]  ;;  %v367_v20 = vld [vmem:[%s1727_s2 + $0x68] sm:$0xff]  ;;  %v366_v21 = vld [vmem:[%s1727_s2 + $0x60] sm:$0xff]  ;;  %s1164_s6 = sshll.u32 %s1731_s17, 5 }
   0xd   : > { %1179 = vset.pattern.permute.xlu2 %v1223_v0  ;;  %s1271_s21 = scalar_lea.vmem %s1726_s1, %s1159_s18  ;;  %547 = vmatpush.msra.mxu1 %v369_v18  ;;  %v365_v22 = vld [vmem:[%s1727_s2 + $0x58] sm:$0xff]  ;;  %v364_v23 = vld [vmem:[%s1727_s2 + $0x50] sm:$0xff]  ;;  %v363_v24 = vld [vmem:[%s1727_s2 + $0x48] sm:$0xff]  ;;  %s1486_s23 = scalar_lea.vmem %s1725_s0, %s1164_s6 }
   0xe   : > { %v244_v1 = vld [vmem:[%s1271_s21 + $0x10] sm:$0xff]  ;;  %v242_v2 = vld [vmem:[%s1271_s21] sm:$0xff]  ;;  %v245_v4 = vld [vmem:[%s1271_s21 + $0x18] sm:$0xff]  ;;  %s1684_s27 = scalar_lea.vmem %s1729_s4, %s1159_s18 }
   0xf   : > { %270 = vperm.xlu1 %1178, %v244_v1   ;;  %260 = vperm.xlu0 %1177, %v242_v2   ;;  %v1276_v3 = vld [vmem:[%s1271_s21 + $0x20] sm:$0xff]  ;;  %v243_v5 = vld [vmem:[%s1271_s21 + $0x8] sm:$0xff]  ;;  %v1286_v7 = vld [vmem:[%s1271_s21 + $0x38] sm:$0xff] }
  0x10   : > { %280 = vperm.xlu2 %1179, %v1276_v3   ;;  %v1282_v6 = vld [vmem:[%s1271_s21 + $0x28] sm:$0xff]  ;;  %v1289_v8 = vld [vmem:[%s1271_s21 + $0x30] sm:$0xff]  ;;  %v1292_v9 = vld [vmem:[%s1271_s21 + $0x40] sm:$0xff]  ;;  %548 = vmatpush.msra.mxu1 %v368_v19 }
  0x11   : > { %v1298_v10 = vld [vmem:[%s1271_s21 + $0x50] sm:$0xff]  ;;  %v1301_v11 = vld [vmem:[%s1271_s21 + $0x48] sm:$0xff]  ;;  %v1304_v12 = vld [vmem:[%s1271_s21 + $0x58] sm:$0xff] }
  0x12   : > { %v1310_v13 = vld [vmem:[%s1271_s21 + $0x68] sm:$0xff]  ;;  %v1313_v14 = vld [vmem:[%s1271_s21 + $0x60] sm:$0xff]  ;;  %549 = vmatpush.msra.mxu1 %v367_v20  ;;  %v361_v26 = vld [vmem:[%s1727_s2 + $0x38] sm:$0xff] }
  0x13   : > { %v362_v25 = vld [vmem:[%s1727_s2 + $0x40] sm:$0xff]  ;;  %v360_v27 = vld [vmem:[%s1727_s2 + $0x30] sm:$0xff]  ;;  %v359_v28 = vld [vmem:[%s1727_s2 + $0x28] sm:$0xff] }
  0x14   : > { %550 = vmatpush.msra.mxu1 %v366_v21  ;;  %v358_v29 = vld [vmem:[%s1727_s2 + $0x20] sm:$0xff]  ;;  %v357_v30 = vld [vmem:[%s1727_s2 + $0x18] sm:$0xff]  ;;  %v356_v31 = vld [vmem:[%s1727_s2 + $0x10] sm:$0xff] }
  0x15   : > { %v355_v32 = vld [vmem:[%s1727_s2 + $0x8] sm:$0xff]  ;;  %v354_v33 = vld [vmem:[%s1727_s2] sm:$0xff]  ;;  %v723_v34 = vld [vmem:[%s1727_s2 + $0x178] sm:$0xff] }
  0x16   : > { %551 = vmatpush.msra.mxu1 %v365_v22  ;;  %v722_v35 = vld [vmem:[%s1727_s2 + $0x170] sm:$0xff]  ;;  %724 = vmatpush.msra.mxu2 %v723_v34  ;;  %v721_v37 = vld [vmem:[%s1727_s2 + $0x168] sm:$0xff]  ;;  %v720_v38 = vld [vmem:[%s1727_s2 + $0x160] sm:$0xff] }
  0x17   : > { %275 = vperm.xlu1 %1178, %v245_v4   ;;  %265 = vperm.xlu0 %1177, %v243_v5   ;;  %v481_v39 = vld [vmem:[%s1727_s2 + $0xf8] sm:$0xff]  ;;  %v480_v42 = vld [vmem:[%s1727_s2 + $0xf0] sm:$0xff]  ;;  %v479_v45 = vld [vmem:[%s1727_s2 + $0xe8] sm:$0xff] }
  0x18   : > { %285 = vperm.xlu2 %1179, %v1282_v6   ;;  %552 = vmatpush.msra.mxu1 %v364_v23  ;;  %v916_v40 = vld [vmem:[%s1727_s2 + $0x1f8] sm:$0xff]  ;;  %v915_v43 = vld [vmem:[%s1727_s2 + $0x1f0] sm:$0xff]  ;;  %v914_v46 = vld [vmem:[%s1727_s2 + $0x1e8] sm:$0xff] }
  0x19   : > { %725 = vmatpush.msra.mxu2 %v722_v35  ;;  %v719_v41 = vld [vmem:[%s1727_s2 + $0x158] sm:$0xff]  ;;  %482 = vmatpush.msra.mxu0 %v481_v39  ;;  %v718_v44 = vld [vmem:[%s1727_s2 + $0x150] sm:$0xff]  ;;  %v717_v48 = vld [vmem:[%s1727_s2 + $0x148] sm:$0xff] }
  0x1a   : > { %553 = vmatpush.msra.mxu1 %v363_v24  ;;  %917 = vmatpush.msra.mxu3 %v916_v40  ;;  %v478_v49 = vld [vmem:[%s1727_s2 + $0xe0] sm:$0xff]  ;;  %v477_v52 = vld [vmem:[%s1727_s2 + $0xd8] sm:$0xff]  ;;  %v476_v55 = vld [vmem:[%s1727_s2 + $0xd0] sm:$0xff] }
  0x1b   : > { %726 = vmatpush.msra.mxu2 %v721_v37  ;;  %483 = vmatpush.msra.mxu0 %v480_v42  ;;  %v913_v50 = vld [vmem:[%s1727_s2 + $0x1e0] sm:$0xff]  ;;  %v912_v53 = vld [vmem:[%s1727_s2 + $0x1d8] sm:$0xff]  ;;  %v911_v56 = vld [vmem:[%s1727_s2 + $0x1d0] sm:$0xff] }
  0x1c   : > { %554 = vmatpush.msra.mxu1 %v362_v25  ;;  %918 = vmatpush.msra.mxu3 %v915_v43  ;;  %v716_v51 = vld [vmem:[%s1727_s2 + $0x140] sm:$0xff]  ;;  %v715_v54 = vld [vmem:[%s1727_s2 + $0x138] sm:$0xff]  ;;  %v714_v57 = vld [vmem:[%s1727_s2 + $0x130] sm:$0xff] }
  0x1d   : > { %727 = vmatpush.msra.mxu2 %v720_v38  ;;  %484 = vmatpush.msra.mxu0 %v479_v45  ;;  %v475_v58 = vld [vmem:[%s1727_s2 + $0xc8] sm:$0xff]  ;;  %v474_v62 = vld [vmem:[%s1727_s2 + $0xc0] sm:$0xff]  ;;  %v612_v35 = vld [vmem:[%s1486_s23 + $0x10] sm:$0xff] }
  0x1e   : > { %555 = vmatpush.msra.mxu1 %v361_v26  ;;  %919 = vmatpush.msra.mxu3 %v914_v46  ;;  %v910_v59 = vld [vmem:[%s1727_s2 + $0x1c8] sm:$0xff]  ;;  %v909_v63 = vld [vmem:[%s1727_s2 + $0x1c0] sm:$0xff]  ;;  %v613_v46 = vld [vmem:[%s1486_s23 + $0x30] sm:$0xff] }
  0x1f   : > { %295 = vperm.xlu1 %1178, %v1286_v7   ;;  %290 = vperm.xlu0 %1177, %v1289_v8   ;;  %v713_v61 = vld [vmem:[%s1727_s2 + $0x128] sm:$0xff]  ;;  %v470_v25 = vld [vmem:[%s1727_s2 + $0xa0] sm:$0xff] }
  0x20   : > { %300 = vperm.xlu2 %1179, %v1292_v9   ;;  %556 = vmatpush.msra.mxu1 %v360_v27  ;;  %v471_v20 = vld [vmem:[%s1727_s2 + $0xa8] sm:$0xff]  ;;  %v905_v26 = vld [vmem:[%s1727_s2 + $0x1a0] sm:$0xff] }
  0x21   : > { %728 = vmatpush.msra.mxu2 %v719_v41  ;;  %485 = vmatpush.msra.mxu0 %v478_v49  ;;  %v906_v21 = vld [vmem:[%s1727_s2 + $0x1a8] sm:$0xff]  ;;  %v708_v27 = vld [vmem:[%s1727_s2 + $0x100] sm:$0xff] }
  0x22   : > { %557 = vmatpush.msra.mxu1 %v359_v28  ;;  %920 = vmatpush.msra.mxu3 %v913_v50  ;;  %v709_v23 = vld [vmem:[%s1727_s2 + $0x108] sm:$0xff]  ;;  %v469_v28 = vld [vmem:[%s1727_s2 + $0x98] sm:$0xff]  ;;  %v466_v40 = vld [vmem:[%s1727_s2 + $0x80] sm:$0xff] }
  0x23   : > { %729 = vmatpush.msra.mxu2 %v718_v44  ;;  %486 = vmatpush.msra.mxu0 %v477_v52  ;;  %v467_v37 = vld [vmem:[%s1727_s2 + $0x88] sm:$0xff]  ;;  %v901_v42 = vld [vmem:[%s1727_s2 + $0x180] sm:$0xff] }
  0x24   : > { %558 = vmatpush.msra.mxu1 %v358_v29  ;;  %921 = vmatpush.msra.mxu3 %v912_v53  ;;  %v904_v29 = vld [vmem:[%s1727_s2 + $0x198] sm:$0xff]  ;;  %v902_v38 = vld [vmem:[%s1727_s2 + $0x188] sm:$0xff]  ;;  %v228_v43 = vld [vmem:[%s1486_s23 + $0x40] sm:$0xff] }
  0x25   : > { %730 = vmatpush.msra.mxu2 %v717_v48  ;;  %487 = vmatpush.msra.mxu0 %v476_v55 }
  0x26   : > { %559 = vmatpush.msra.mxu1 %v357_v30  ;;  %922 = vmatpush.msra.mxu3 %v911_v56  ;;  %v227_v30 = vld [vmem:[%s1486_s23 + $0x20] sm:$0xff] }
  0x27   : > { %310 = vperm.xlu1 %1178, %v1298_v10   ;;  %305 = vperm.xlu0 %1177, %v1301_v11   ;;  %v230_v56 = vld [vmem:[%s1486_s23 + $0x80] sm:$0xff] }
  0x28   : > { %315 = vperm.xlu2 %1179, %v1304_v12   ;;  %560 = vmatpush.msra.mxu1 %v356_v31  ;;  %v468_v31 = vld [vmem:[%s1727_s2 + $0x90] sm:$0xff] }
  0x29   : > { %731 = vmatpush.msra.mxu2 %v716_v51  ;;  %488 = vmatpush.msra.mxu0 %v475_v58  ;;  %v229_v51 = vld [vmem:[%s1486_s23 + $0x60] sm:$0xff] }
  0x2a   : > { %561 = vmatpush.msra.mxu1 %v355_v32  ;;  %923 = vmatpush.msra.mxu3 %v910_v59  ;;  %v903_v32 = vld [vmem:[%s1727_s2 + $0x190] sm:$0xff] }
  0x2b   : > { %732 = vmatpush.msra.mxu2 %v715_v54  ;;  %489 = vmatpush.msra.mxu0 %v474_v62  ;;  %v370_v62 = vld [vmem:[%s1486_s23 + $0x8] sm:$0xff] }
  0x2c   : > { %562 = vmatpush.msra.mxu1 %v354_v33  ;;  %924 = vmatpush.msra.mxu3 %v909_v63 }
  0x2d   : > { %733 = vmatpush.msra.mxu2 %v714_v57 }
  0x2f   : > { %325 = vperm.xlu1 %1178, %v1310_v13   ;;  %320 = vperm.xlu0 %1177, %v1313_v14  }
  0x30   : > { %1180 = vset.pattern.permute.xlu2 %v1224_v15  ;;  %734 = vmatpush.msra.mxu2 %v713_v61  ;;  %v231_v61 = vld [vmem:[%s1486_s23 + $0xa0] sm:$0xff] }
  0x31   : > { %629 = vperm.xlu2 %1180, %v242_v2  }
  0x37   : > { %1182 = vset.pattern.permute.xlu1 %v1225_v16  ;;  %1181 = vset.pattern.permute.xlu0 %v1226_v17 }
  0x38   : > { %387 = vperm.xlu1 %1182, %v242_v2   ;;  %822 = vperm.xlu0 %1181, %v242_v2   ;;  %v473_v2 = vld [vmem:[%s1727_s2 + $0xb8] sm:$0xff] }
  0x39   : > { %633 = vperm.xlu2 %1180, %v243_v5   ;;  %490 = vmatpush.msra.mxu0 %v473_v2 }
  0x40   : > { %1183 = vset.pattern.permute.xlu1 %v1226_v17  ;;  %1185 = vset.pattern.permute.xlu0 %v1224_v15 }
  0x41   : > { %826 = vperm.xlu1 %1183, %v243_v5   ;;  %637 = vperm.xlu0 %1185, %v244_v1  }
  0x42   : > { %1184 = vset.pattern.permute.xlu2 %v1225_v16 }
  0x43   : > { %391 = vperm.xlu2 %1184, %v243_v5   ;;  %v472_v5 = vld [vmem:[%s1727_s2 + $0xb0] sm:$0xff] }
  0x44   : > { %491 = vmatpush.msra.mxu0 %v472_v5 }
  0x46   : > { %492 = vmatpush.msra.mxu0 %v471_v20 }
  0x48   : > { %493 = vmatpush.msra.mxu0 %v470_v25 }
  0x49   : > { %830 = vperm.xlu1 %1183, %v244_v1   ;;  %1188 = vset.pattern.permute.xlu0 %v1225_v16 }
  0x4a   : > { %399 = vperm.xlu0 %1188, %v245_v4   ;;  %494 = vmatpush.msra.mxu0 %v469_v28 }
  0x4b   : > { %395 = vperm.xlu2 %1184, %v244_v1   ;;  %v712_v1 = vld [vmem:[%s1727_s2 + $0x120] sm:$0xff] }
  0x4c   : > { %735 = vmatpush.msra.mxu2 %v712_v1  ;;  %495 = vmatpush.msra.mxu0 %v468_v31 }
  0x4e   : > { %496 = vmatpush.msra.mxu0 %v467_v37 }
  0x50   : > { %497 = vmatpush.msra.mxu0 %v466_v40 }
  0x51   : > { %1186 = vset.pattern.permute.xlu1 %v1224_v15 }
  0x52   : > { %641 = vperm.xlu1 %1186, %v245_v4   ;;  %1191 = vset.pattern.permute.xlu0 %v1226_v17 }
  0x53   : > { %1187 = vset.pattern.permute.xlu2 %v1226_v17  ;;  %842 = vperm.xlu0 %1191, %v1282_v6  }
  0x54   : > { %834 = vperm.xlu2 %1187, %v245_v4   ;;  %v711_v4 = vld [vmem:[%s1727_s2 + $0x118] sm:$0xff] }
  0x55   : > { %736 = vmatpush.msra.mxu2 %v711_v4  ;;  %v371_v4 = vld [vmem:[%s1486_s23 + $0x28] sm:$0xff] }
  0x5a   : > { %645 = vperm.xlu1 %1186, %v1276_v3  }
  0x5b   : > { %1194 = vset.pattern.permute.xlu0 %v1224_v15 }
  0x5c   : > { %838 = vperm.xlu2 %1187, %v1276_v3   ;;  %657 = vperm.xlu0 %1194, %v1286_v7  }
  0x62   : > { %1189 = vset.pattern.permute.xlu1 %v1225_v16 }
  0x63   : > { %403 = vperm.xlu1 %1189, %v1276_v3   ;;  %v908_v3 = vld [vmem:[%s1727_s2 + $0x1b8] sm:$0xff] }
  0x64   : > { %1190 = vset.pattern.permute.xlu2 %v1224_v15  ;;  %1197 = vset.pattern.permute.xlu0 %v1225_v16 }
  0x65   : > { %649 = vperm.xlu2 %1190, %v1282_v6   ;;  %419 = vperm.xlu0 %1197, %v1292_v9  }
  0x66   : > { %925 = vmatpush.msra.mxu3 %v908_v3 }
  0x6a   : > { %v1392_v36 = vpop.permute.xlu2 %280 }
  0x6b   : > { %407 = vperm.xlu1 %1189, %v1282_v6   ;;  %v907_v6 = vld [vmem:[%s1727_s2 + $0x1b0] sm:$0xff]  ;;  %v342_v58 = vmul.f32 %v1392_v36, %v230_v56 }
  0x6c   : > { %926 = vmatpush.msra.mxu3 %v907_v6  ;;  %v232_v6 = vld [vmem:[%s1486_s23 + $0xc0] sm:$0xff] }
  0x6d   : > { %653 = vperm.xlu2 %1190, %v1289_v8   ;;  %1200 = vset.pattern.permute.xlu0 %v1226_v17 }
  0x6e   : > { %862 = vperm.xlu0 %1200, %v1298_v10   ;;  %927 = vmatpush.msra.mxu3 %v906_v21 }
  0x70   : > { %928 = vmatpush.msra.mxu3 %v905_v26  ;;  %v233_v26 = vld [vmem:[%s1486_s23 + $0xe0] sm:$0xff] }
  0x72   : > { %v1428_v47 = vpop.permute.xlu2 %285  ;;  %929 = vmatpush.msra.mxu3 %v904_v29 }
  0x73   : > { %1192 = vset.pattern.permute.xlu1 %v1226_v17  ;;  %v343_v63 = vmul.f32 %v1428_v47, %v231_v61  ;;  %v1604_v47 = vld [vmem:[%s1271_s21 + $0x78] sm:$0xff] }
  0x74   : > { %846 = vperm.xlu1 %1192, %v1289_v8   ;;  %930 = vmatpush.msra.mxu3 %v903_v32  ;;  %v373_v32 = vld [vmem:[%s1486_s23 + $0x68] sm:$0xff] }
  0x75   : > { %1193 = vset.pattern.permute.xlu2 %v1225_v16 }
  0x76   : > { %411 = vperm.xlu2 %1193, %v1289_v8   ;;  %1203 = vset.pattern.permute.xlu0 %v1224_v15  ;;  %v226_v8 = vld [vmem:[%s1486_s23] sm:$0xff] }
  0x77   : > { %677 = vperm.xlu0 %1203, %v1313_v14   ;;  %931 = vmatpush.msra.mxu3 %v902_v38 }
  0x79   : > { %932 = vmatpush.msra.mxu3 %v901_v42  ;;  %v809_v42 = vld [vmem:[%s1486_s23 + $0x98] sm:$0xff] }
  0x7a   : > { %v1471_v60 = vpop.permute.xlu2 %300 }
  0x7c   : > { %850 = vperm.xlu1 %1192, %v1286_v7  }
  0x7e   : > { %415 = vperm.xlu2 %1193, %v1286_v7   ;;  %v710_v7 = vld [vmem:[%s1727_s2 + $0x110] sm:$0xff] }
  0x7f   : > { %737 = vmatpush.msra.mxu2 %v710_v7  ;;  %1206 = vset.pattern.permute.xlu0 %v1225_v16  ;;  %v806_v7 = vld [vmem:[%s1486_s23 + $0x38] sm:$0xff] }
  0x80   : > { %439 = vperm.xlu0 %1206, %v1310_v13  }
  0x81   : > { %v271_v18 = vpop.permute.xlu1 %270  ;;  %v261_v19 = vpop.permute.xlu0 %260  ;;  %738 = vmatpush.msra.mxu2 %v709_v23  ;;  %v372_v23 = vld [vmem:[%s1486_s23 + $0x48] sm:$0xff] }
  0x82   : > { %v338_v22 = vmul.f32 %v261_v19, %v226_v8  ;;  %v1522_v24 = vpop.permute.xlu2 %315  ;;  %v340_v48 = vmul.f32 %v271_v18, %v228_v43 }
  0x83   : > { %739 = vmatpush.msra.mxu2 %v708_v27  ;;  %v807_v27 = vld [vmem:[%s1486_s23 + $0x58] sm:$0xff] }
  0x84   : > { %1195 = vset.pattern.permute.xlu1 %v1224_v15  ;;  %563 = vmatmul.f32.vlgmr.msra.gmra.mxu1 %v338_v22 }
  0x85   : > { %661 = vperm.xlu1 %1195, %v1292_v9  }
  0x86   : > { %1196 = vset.pattern.permute.xlu2 %v1226_v17 }
  0x87   : > { %854 = vperm.xlu2 %1196, %v1292_v9  }
  0x88   : > { %1209 = vset.pattern.permute.xlu0 %v1224_v15 }
  0x89   : > { %v276_v33 = vpop.permute.xlu1 %275  ;;  %v266_v34 = vpop.permute.xlu0 %265  ;;  %689 = vperm.xlu0 %1209, %v1604_v47  }
  0x8a   : > { %v339_v9 = vmul.f32 %v266_v34, %v227_v30  ;;  %v341_v54 = vmul.f32 %v276_v33, %v229_v51  ;;  %v234_v33 = vld [vmem:[%s1486_s23 + $0x100] sm:$0xff]  ;;  %v808_v34 = vld [vmem:[%s1486_s23 + $0x78] sm:$0xff] }
  0x8b   : > { %v630_v39 = vpop.permute.xlu2 %629  ;;  %v810_v51 = vld [vmem:[%s1486_s23 + $0xb8] sm:$0xff] }
  0x8c   : > { %566 = vmatmul.f32.gmra.mxu1 %v339_v9  ;;  %v692_v41 = vmul.f32 %v630_v39, %v612_v35  ;;  %v615_v9 = vld [vmem:[%s1486_s23 + $0x70] sm:$0xff] }
  0x8d   : > { %665 = vperm.xlu1 %1195, %v1301_v11  }
  0x8e   : > { %740 = vmatmul.f32.vlgmr.msra.gmra.mxu2 %v692_v41  ;;  %v235_v41 = vld [vmem:[%s1486_s23 + $0x120] sm:$0xff] }
  0x8f   : > { %858 = vperm.xlu2 %1196, %v1301_v11  }
  0x91   : > { %v1568_v44 = vpop.permute.xlu1 %295  ;;  %v291_v45 = vpop.permute.xlu0 %290  ;;  %1213 = vset.pattern.permute.xlu0 %v1226_v17 }
  0x92   : > { %v344_v18 = vmul.f32 %v291_v45, %v232_v6  ;;  %v345_v28 = vmul.f32 %v1568_v44, %v233_v26  ;;  %v616_v44 = vld [vmem:[%s1486_s23 + $0x90] sm:$0xff]  ;;  %v376_v6 = vld [vmem:[%s1486_s23 + $0xc8] sm:$0xff] }
  0x93   : > { %v634_v49 = vpop.permute.xlu2 %633 }
  0x94   : > { %569 = vmatmul.f32.gmra.mxu1 %v340_v48  ;;  %v693_v50 = vmul.f32 %v634_v49, %v613_v46  ;;  %v236_v49 = vld [vmem:[%s1486_s23 + $0x140] sm:$0xff] }
  0x95   : > { %1198 = vset.pattern.permute.xlu1 %v1225_v16 }
  0x96   : > { %423 = vperm.xlu1 %1198, %v1301_v11   ;;  %743 = vmatmul.f32.gmra.mxu2 %v693_v50 }
  0x97   : > { %1199 = vset.pattern.permute.xlu2 %v1224_v15 }
  0x98   : > { %669 = vperm.xlu2 %1199, %v1298_v10  }
  0x99   : > { %v1577_v52 = vpop.permute.xlu1 %310  ;;  %v1579_v53 = vpop.permute.xlu0 %305 }
  0x9c   : > { %572 = vmatmul.f32.gmra.mxu1 %v341_v54  ;;  %v617_v54 = vld [vmem:[%s1486_s23 + $0xb0] sm:$0xff] }
  0x9d   : > { %v392_v55 = vpop.permute.xlu2 %391 }
  0x9e   : > { %427 = vperm.xlu1 %1198, %v1298_v10   ;;  %v805_v10 = vld [vmem:[%s1486_s23 + $0x18] sm:$0xff]  ;;  %v451_v8 = vmul.f32 %v392_v55, %v371_v4 }
  0xa0   : > { %673 = vperm.xlu2 %1199, %v1304_v12  }
  0xa1   : > { %v1584_v11 = vpop.permute.xlu1 %325  ;;  %v1586_v57 = vpop.permute.xlu0 %320 }
  0xa4   : > { %575 = vmatmul.f32.gmra.mxu1 %v342_v58  ;;  %v374_v58 = vld [vmem:[%s1486_s23 + $0x88] sm:$0xff] }
  0xa5   : > { %v396_v59 = vpop.permute.xlu2 %395 }
  0xa6   : > { %1201 = vset.pattern.permute.xlu1 %v1226_v17 }
  0xa7   : > { %866 = vperm.xlu1 %1201, %v1304_v12  }
  0xa8   : > { %1202 = vset.pattern.permute.xlu2 %v1225_v16 }
  0xa9   : > { %431 = vperm.xlu2 %1202, %v1304_v12   ;;  %v614_v12 = vld [vmem:[%s1486_s23 + $0x50] sm:$0xff] }
  0xaa   : > { %v388_v36 = vpop.permute.xlu1 %387  ;;  %v823_v1 = vpop.permute.xlu0 %822 }
  0xab   : > { %v450_v2 = vmul.f32 %v388_v36, %v370_v62  ;;  %v885_v3 = vmul.f32 %v823_v1, %v805_v10  ;;  %v237_v10 = vld [vmem:[%s1486_s23 + $0x160] sm:$0xff] }
  0xac   : > { %578 = vmatmul.f32.gmra.mxu1 %v343_v63  ;;  %v349_v63 = vmul.f32 %v1522_v24, %v237_v10 }
  0xad   : > { %498 = vmatmul.f32.vlgmr.msra.gmra.mxu0 %v450_v2  ;;  %933 = vmatmul.f32.vlgmr.msra.gmra.mxu3 %v885_v3  ;;  %v238_v3 = vld [vmem:[%s1486_s23 + $0x180] sm:$0xff] }
  0xae   : > { %v835_v5 = vpop.permute.xlu2 %834  ;;  %v350_v24 = vmul.f32 %v1586_v57, %v238_v3 }
  0xaf   : > { %870 = vperm.xlu1 %1201, %v1313_v14   ;;  %v888_v38 = vmul.f32 %v835_v5, %v808_v34  ;;  %v619_v5 = vld [vmem:[%s1486_s23 + $0xf0] sm:$0xff] }
  0xb1   : > { %435 = vperm.xlu2 %1202, %v1313_v14   ;;  %v452_v14 = vmul.f32 %v396_v59, %v372_v23  ;;  %v812_v23 = vld [vmem:[%s1486_s23 + $0xf8] sm:$0xff] }
  0xb3   : > { %v827_v19 = vpop.permute.xlu1 %826  ;;  %v638_v20 = vpop.permute.xlu0 %637 }
  0xb4   : > { %v886_v21 = vmul.f32 %v827_v19, %v806_v7  ;;  %581 = vmatmul.f32.gmra.mxu1 %v344_v18  ;;  %v694_v22 = vmul.f32 %v638_v20, %v614_v12  ;;  %v811_v12 = vld [vmem:[%s1486_s23 + $0xd8] sm:$0xff]  ;;  %v239_v18 = vld [vmem:[%s1486_s23 + $0x1a0] sm:$0xff]  ;;  %v377_v20 = vld [vmem:[%s1486_s23 + $0xe8] sm:$0xff] }
  0xb5   : > { %501 = vmatmul.f32.gmra.mxu0 %v451_v8 }
  0xb6   : > { %936 = vmatmul.f32.gmra.mxu3 %v886_v21  ;;  %746 = vmatmul.f32.gmra.mxu2 %v694_v22  ;;  %v839_v25 = vpop.permute.xlu2 %838  ;;  %v351_v22 = vmul.f32 %v1584_v11, %v239_v18 }
  0xb7   : > { %1204 = vset.pattern.permute.xlu1 %v1224_v15  ;;  %v256_v15 = vld [vmem:[%s1271_s21 + $0x70] sm:$0xff]  ;;  %v889_v45 = vmul.f32 %v839_v25, %v809_v42  ;;  %v379_v42 = vld [vmem:[%s1486_s23 + $0x128] sm:$0xff] }
  0xb8   : > { %681 = vperm.xlu1 %1204, %v1310_v13  }
  0xb9   : > { %1205 = vset.pattern.permute.xlu2 %v1226_v17 }
  0xba   : > { %874 = vperm.xlu2 %1205, %v1310_v13   ;;  %v346_v13 = vmul.f32 %v1471_v60, %v234_v33  ;;  %v347_v60 = vmul.f32 %v1579_v53, %v235_v41  ;;  %v348_v53 = vmul.f32 %v1577_v52, %v236_v49  ;;  %v814_v33 = vld [vmem:[%s1486_s23 + $0x138] sm:$0xff] }
  0xbb   : > { %v831_v29 = vpop.permute.xlu1 %830 }
  0xbc   : > { %v887_v30 = vmul.f32 %v831_v29, %v807_v27  ;;  %584 = vmatmul.f32.gmra.mxu1 %v345_v28  ;;  %v400_v31 = vpop.permute.xlu0 %399  ;;  %v378_v27 = vld [vmem:[%s1486_s23 + $0x108] sm:$0xff]  ;;  %v813_v28 = vld [vmem:[%s1486_s23 + $0x118] sm:$0xff] }
  0xbd   : > { %504 = vmatmul.f32.gmra.mxu0 %v452_v14  ;;  %v453_v37 = vmul.f32 %v400_v31, %v373_v32 }
  0xbe   : > { %939 = vmatmul.f32.gmra.mxu3 %v887_v30 }
  0xbf   : > { %v650_v35 = vpop.permute.xlu2 %649 }
  0xc0   : > { %685 = vperm.xlu1 %1204, %v256_v15   ;;  %v697_v59 = vmul.f32 %v650_v35, %v617_v54  ;;  %v621_v35 = vld [vmem:[%s1486_s23 + $0x130] sm:$0xff] }
  0xc2   : > { %878 = vperm.xlu2 %1205, %v256_v15  }
  0xc4   : > { %v642_v39 = vpop.permute.xlu1 %641  ;;  %587 = vmatmul.f32.gmra.mxu1 %v346_v13 }
  0xc5   : > { %v695_v40 = vmul.f32 %v642_v39, %v615_v9  ;;  %507 = vmatmul.f32.gmra.mxu0 %v453_v37  ;;  %v843_v50 = vpop.permute.xlu0 %842  ;;  %v815_v39 = vld [vmem:[%s1486_s23 + $0x158] sm:$0xff] }
  0xc6   : > { %942 = vmatmul.f32.gmra.mxu3 %v888_v38  ;;  %v890_v56 = vmul.f32 %v843_v50, %v810_v51 }
  0xc7   : > { %749 = vmatmul.f32.gmra.mxu2 %v695_v40  ;;  %v654_v43 = vpop.permute.xlu2 %653  ;;  %v622_v40 = vld [vmem:[%s1486_s23 + $0x150] sm:$0xff] }
  0xc8   : > { %1207 = vset.pattern.permute.xlu1 %v1223_v0 }
  0xc9   : > { %330 = vperm.xlu1 %1207, %v256_v15  }
  0xca   : > { %1208 = vset.pattern.permute.xlu2 %v1225_v16 }
  0xcb   : > { %443 = vperm.xlu2 %1208, %v256_v15   ;;  %v620_v15 = vld [vmem:[%s1486_s23 + $0x110] sm:$0xff] }
  0xcc   : > { %v646_v46 = vpop.permute.xlu1 %645  ;;  %590 = vmatmul.f32.gmra.mxu1 %v347_v60 }
  0xcd   : > { %v696_v48 = vmul.f32 %v646_v46, %v616_v44  ;;  %v623_v46 = vld [vmem:[%s1486_s23 + $0x170] sm:$0xff] }
  0xce   : > { %945 = vmatmul.f32.gmra.mxu3 %v889_v45  ;;  %v658_v4 = vpop.permute.xlu0 %657 }
  0xcf   : > { %752 = vmatmul.f32.gmra.mxu2 %v696_v48  ;;  %v380_v48 = vld [vmem:[%s1486_s23 + $0x148] sm:$0xff] }
  0xd0   : > { %v412_v55 = vpop.permute.xlu2 %411 }
  0xd1   : > { %1210 = vset.pattern.permute.xlu1 %v1226_v17  ;;  %v618_v17 = vld [vmem:[%s1486_s23 + $0xd0] sm:$0xff]  ;;  %v456_v7 = vmul.f32 %v412_v55, %v376_v6 }
  0xd2   : > { %882 = vperm.xlu1 %1210, %v1604_v47   ;;  %v698_v36 = vmul.f32 %v654_v43, %v618_v17 }
  0xd3   : > { %1211 = vset.pattern.permute.xlu2 %v1223_v0  ;;  %v375_v0 = vld [vmem:[%s1486_s23 + $0xa8] sm:$0xff] }
  0xd4   : > { %593 = vmatmul.f32.gmra.mxu1 %v348_v53  ;;  %335 = vperm.xlu2 %1211, %v1604_v47   ;;  %v624_v53 = vld [vmem:[%s1486_s23 + $0x190] sm:$0xff] }
  0xd5   : > { %v404_v61 = vpop.permute.xlu1 %403 }
  0xd6   : > { %v454_v62 = vmul.f32 %v404_v61, %v374_v58  ;;  %948 = vmatmul.f32.gmra.mxu3 %v890_v56  ;;  %v381_v56 = vld [vmem:[%s1486_s23 + $0x168] sm:$0xff]  ;;  %v816_v61 = vld [vmem:[%s1486_s23 + $0x178] sm:$0xff] }
  0xd7   : > { %755 = vmatmul.f32.gmra.mxu2 %v697_v59  ;;  %v420_v14 = vpop.permute.xlu0 %419 }
  0xd8   : > { %510 = vmatmul.f32.gmra.mxu0 %v454_v62  ;;  %v416_v52 = vpop.permute.xlu2 %415  ;;  %v458_v30 = vmul.f32 %v420_v14, %v378_v27  ;;  %v626_v14 = vld [vmem:[%s1486_s23 + $0x1d0] sm:$0xff] }
  0xd9   : > { %v457_v57 = vmul.f32 %v416_v52, %v377_v20  ;;  %v382_v52 = vld [vmem:[%s1486_s23 + $0x188] sm:$0xff] }
  0xda   : > { %1212 = vset.pattern.permute.xlu1 %v1225_v16  ;;  %v699_v16 = vmul.f32 %v658_v4, %v619_v5  ;;  %v383_v4 = vld [vmem:[%s1486_s23 + $0x1a8] sm:$0xff]  ;;  %v818_v5 = vld [vmem:[%s1486_s23 + $0x1b8] sm:$0xff] }
  0xdb   : > { %447 = vperm.xlu1 %1212, %v1604_v47  }
  0xdc   : > { %596 = vmatmul.f32.gmra.mxu1 %v349_v63 }
  0xdd   : > { %v408_v1 = vpop.permute.xlu1 %407 }
  0xde   : > { %v455_v2 = vmul.f32 %v408_v1, %v375_v0  ;;  %v817_v0 = vld [vmem:[%s1486_s23 + $0x198] sm:$0xff] }
  0xdf   : > { %758 = vmatmul.f32.gmra.mxu2 %v698_v36 }
  0xe0   : > { %513 = vmatmul.f32.gmra.mxu0 %v455_v2  ;;  %v863_v38 = vpop.permute.xlu0 %862 }
  0xe1   : > { %v855_v8 = vpop.permute.xlu2 %854  ;;  %v895_v41 = vmul.f32 %v863_v38, %v815_v39  ;;  %v240_v39 = vld [vmem:[%s1486_s23 + $0x1c0] sm:$0xff] }
  0xe2   : > { %v893_v31 = vmul.f32 %v855_v8, %v813_v28 }
  0xe4   : > { %599 = vmatmul.f32.gmra.mxu1 %v350_v24  ;;  %v625_v24 = vld [vmem:[%s1486_s23 + $0x1b0] sm:$0xff] }
  0xe6   : > { %v847_v47 = vpop.permute.xlu1 %846 }
  0xe7   : > { %v891_v19 = vmul.f32 %v847_v47, %v811_v12  ;;  %761 = vmatmul.f32.gmra.mxu2 %v699_v16 }
  0xe8   : > { %516 = vmatmul.f32.gmra.mxu0 %v456_v7 }
  0xe9   : > { %951 = vmatmul.f32.gmra.mxu3 %v891_v19  ;;  %v859_v21 = vpop.permute.xlu2 %858  ;;  %v678_v55 = vpop.permute.xlu0 %677 }
  0xea   : > { %v894_v37 = vmul.f32 %v859_v21, %v814_v33  ;;  %v704_v58 = vmul.f32 %v678_v55, %v624_v53  ;;  %v384_v21 = vld [vmem:[%s1486_s23 + $0x1c8] sm:$0xff] }
  0xec   : > { %602 = vmatmul.f32.gmra.mxu1 %v351_v22  ;;  %v819_v22 = vld [vmem:[%s1486_s23 + $0x1d8] sm:$0xff] }
  0xee   : > { %v851_v25 = vpop.permute.xlu1 %850 }
  0xef   : > { %v892_v26 = vmul.f32 %v851_v25, %v812_v23  ;;  %v1675_v23 = vld [vmem:[%s1728_s3] ss:$0 sm:$0xff] }
  0xf0   : > { %519 = vmatmul.f32.gmra.mxu0 %v457_v57 }
  0xf1   : > { %954 = vmatmul.f32.gmra.mxu3 %v892_v26 }
  0xf2   : > { %v670_v29 = vpop.permute.xlu2 %669  ;;  %v440_v3 = vpop.permute.xlu0 %439 }
  0xf3   : > { %v702_v43 = vmul.f32 %v670_v29, %v622_v40  ;;  %v463_v8 = vmul.f32 %v440_v3, %v383_v4  ;;  %v385_v4 = vld [vmem:[%s1486_s23 + $0x1e8] sm:$0xff] }
  0xf7   : > { %v662_v32 = vpop.permute.xlu1 %661 }
  0xf8   : > { %v700_v11 = vmul.f32 %v662_v32, %v620_v15  ;;  %522 = vmatmul.f32.gmra.mxu0 %v458_v30 }
  0xf9   : > { %957 = vmatmul.f32.gmra.mxu3 %v893_v31 }
  0xfa   : > { %764 = vmatmul.f32.gmra.mxu2 %v700_v11  ;;  %v674_v34 = vpop.permute.xlu2 %673 }
  0xfb   : > { %v703_v49 = vmul.f32 %v674_v34, %v623_v46 }
  0xff   : > { %v666_v13 = vpop.permute.xlu1 %665 }
 0x100   : > { %v701_v9 = vmul.f32 %v666_v13, %v621_v35  ;;  %v690_v35 = vpop.permute.xlu0 %689 }
 0x101   : > { %960 = vmatmul.f32.gmra.mxu3 %v894_v37  ;;  %v564_v6 = vpop.f32.mrf.mxu1  ;;  %v627_v37 = vld [vmem:[%s1486_s23 + $0x1f0] sm:$0xff] }
 0x102   : > { %767 = vmatmul.f32.gmra.mxu2 %v701_v9  ;;  %v707_v40 = vmul.f32 %v690_v35, %v627_v37 }
 0x103   : > { %v432_v60 = vpop.permute.xlu2 %431 }
 0x104   : > { %v461_v59 = vmul.f32 %v432_v60, %v381_v56 }
 0x108   : > { %v424_v44 = vpop.permute.xlu1 %423 }
 0x109   : > { %v459_v45 = vmul.f32 %v424_v44, %v379_v42  ;;  %963 = vmatmul.f32.gmra.mxu3 %v895_v41  ;;  %v567_v28 = vpop.f32.mrf.mxu1 }
 0x10a   : > { %770 = vmatmul.f32.gmra.mxu2 %v702_v43 }
 0x10b   : > { %525 = vmatmul.f32.gmra.mxu0 %v459_v45  ;;  %v436_v51 = vpop.permute.xlu2 %435 }
 0x10c   : > { %v462_v63 = vmul.f32 %v436_v51, %v382_v52  ;;  %v241_v51 = vld [vmem:[%s1486_s23 + $0x1e0] sm:$0xff] }
 0x110   : > { %v428_v50 = vpop.permute.xlu1 %427 }
 0x111   : > { %v460_v54 = vmul.f32 %v428_v50, %v380_v48  ;;  %v741_v47 = vpop.f32.mrf.mxu2  ;;  %v570_v43 = vpop.f32.mrf.mxu1 }
 0x112   : > { %773 = vmatmul.f32.gmra.mxu2 %v703_v49 }
 0x113   : > { %528 = vmatmul.f32.gmra.mxu0 %v460_v54 }
 0x114   : > { %v875_v62 = vpop.permute.xlu2 %874 }
 0x115   : > { %v898_v16 = vmul.f32 %v875_v62, %v818_v5 }
 0x119   : > { %v867_v10 = vpop.permute.xlu1 %866  ;;  %v744_v34 = vpop.f32.mrf.mxu2 }
 0x11a   : > { %v896_v17 = vmul.f32 %v867_v10, %v816_v61  ;;  %776 = vmatmul.f32.gmra.mxu2 %v704_v58  ;;  %v820_v58 = vld [vmem:[%s1486_s23 + $0x1f8] sm:$0xff] }
 0x11b   : > { %531 = vmatmul.f32.gmra.mxu0 %v461_v59 }
 0x11c   : > { %966 = vmatmul.f32.gmra.mxu3 %v896_v17  ;;  %v879_v2 = vpop.permute.xlu2 %878  ;;  %v573_v17 = vpop.f32.mrf.mxu1 }
 0x11d   : > { %v899_v27 = vmul.f32 %v879_v2, %v819_v22 }
 0x121   : > { %v871_v36 = vpop.permute.xlu1 %870 }
 0x122   : > { %v897_v1 = vmul.f32 %v871_v36, %v817_v0 }
 0x123   : > { %534 = vmatmul.f32.gmra.mxu0 %v462_v63 }
 0x124   : > { %969 = vmatmul.f32.gmra.mxu3 %v897_v1 }
 0x125   : > { %v444_v20 = vpop.permute.xlu2 %443 }
 0x126   : > { %v464_v25 = vmul.f32 %v444_v20, %v384_v21 }
 0x12a   : > { %v682_v7 = vpop.permute.xlu1 %681  ;;  %v499_v12 = vpop.f32.mrf.mxu0 }
 0x12b   : > { %v705_v18 = vmul.f32 %v682_v7, %v625_v24  ;;  %v565_v19 = vadd.f32 %v564_v6, %v499_v12  ;;  %537 = vmatmul.f32.gmra.mxu0 %v463_v8 }
 0x12c   : > { %972 = vmatmul.f32.gmra.mxu3 %v898_v16  ;;  %v576_v16 = vpop.f32.mrf.mxu1 }
 0x12d   : > { %779 = vmatmul.f32.gmra.mxu2 %v705_v18  ;;  %v789_v57 = vadd.f32 %v741_v47, %v565_v19 }
 0x12e   : > { %v336_v50 = vpop.permute.xlu2 %335 }
 0x12f   : > { %v353_v59 = vmul.f32 %v336_v50, %v241_v51 }
 0x130   : > { %v934_v26 = vpop.f32.mrf.mxu3 }
 0x131   : > { %v982_v29 = vadd.f32 %v934_v26, %v789_v57 }
 0x132   : > { %v686_v30 = vpop.permute.xlu1 %685  ;;  %v502_v15 = vpop.f32.mrf.mxu0 }
 0x133   : > { %v1002_v31 = vadd.f32 %v1675_v23, %v982_v29  ;;  %v706_v32 = vmul.f32 %v686_v30, %v626_v14  ;;  %540 = vmatmul.f32.gmra.mxu0 %v464_v25  ;;  %v568_v11 = vadd.f32 %v567_v28, %v502_v15 }
 0x134   : > { %975 = vmatmul.f32.gmra.mxu3 %v899_v27  ;;  %v579_v22 = vpop.f32.mrf.mxu1 }
 0x135   : > { %vm1018_vm0 = vcmp.ge.f32.partialorder %v1002_v31, 0.0  ;;  %v1034_v33 = vmul.f32 0.01, %v1002_v31  ;;  %782 = vmatmul.f32.gmra.mxu2 %v706_v32  ;;  %v790_v9 = vadd.f32 %v744_v34, %v568_v11 }
 0x137   : > { %v1050_v13 = vsel %vm1018_vm0, %v1002_v31, %v1034_v33 }
 0x138   : > { %1066 = vst [vmem:[%s1684_s27] sm:$0xff] %v1050_v13 }
 0x139   : > { %v937_v38 = vpop.f32.mrf.mxu3  ;;  %v747_v48 = vpop.f32.mrf.mxu2 }
 0x13a   : > { %v983_v41 = vadd.f32 %v937_v38, %v790_v9  ;;  %v505_v42 = vpop.f32.mrf.mxu0 }
 0x13b   : > { %v331_v60 = vpop.permute.xlu1 %330  ;;  %v571_v45 = vadd.f32 %v570_v43, %v505_v42 }
 0x13c   : > { %v1003_v44 = vadd.f32 %v1675_v23, %v983_v41  ;;  %v352_v46 = vmul.f32 %v331_v60, %v240_v39  ;;  %v582_v32 = vpop.f32.mrf.mxu1 }
 0x13d   : > { %785 = vmatmul.f32.gmra.mxu2 %v707_v40  ;;  %v791_v55 = vadd.f32 %v747_v48, %v571_v45 }
 0x13e   : > { %vm1019_vm1 = vcmp.ge.f32.partialorder %v1003_v44, 0.0  ;;  %v1035_v49 = vmul.f32 0.01, %v1003_v44  ;;  %605 = vmatmul.f32.gmra.mxu1 %v352_v46 }
 0x140   : > { %v1051_v54 = vsel %vm1019_vm1, %v1003_v44, %v1035_v49 }
 0x141   : > { %1067 = vst [vmem:[%s1684_s27 + $0x8] sm:$0xff] %v1051_v54  ;;  %v940_v53 = vpop.f32.mrf.mxu3 }
 0x142   : > { %v984_v56 = vadd.f32 %v940_v53, %v791_v55  ;;  %v508_v63 = vpop.f32.mrf.mxu0 }
 0x143   : > { %v574_v36 = vadd.f32 %v573_v17, %v508_v63 }
 0x144   : > { %v1004_v61 = vadd.f32 %v1675_v23, %v984_v56  ;;  %v883_v62 = vpop.permute.xlu1 %882  ;;  %v585_v41 = vpop.f32.mrf.mxu1 }
 0x145   : > { %v900_v10 = vmul.f32 %v883_v62, %v820_v58 }
 0x146   : > { %vm1020_vm2 = vcmp.ge.f32.partialorder %v1004_v61, 0.0  ;;  %v1036_v52 = vmul.f32 0.01, %v1004_v61  ;;  %608 = vmatmul.f32.gmra.mxu1 %v353_v59 }
 0x147   : > { %978 = vmatmul.f32.gmra.mxu3 %v900_v10 }
 0x148   : > { %v1052_v0 = vsel %vm1020_vm2, %v1004_v61, %v1036_v52 }
 0x149   : > { %1068 = vst [vmem:[%s1684_s27 + $0x10] sm:$0xff] %v1052_v0  ;;  %v943_v2 = vpop.f32.mrf.mxu3 }
 0x14a   : > { %v750_v1 = vpop.f32.mrf.mxu2 }
 0x14b   : > { %v792_v3 = vadd.f32 %v750_v1, %v574_v36 }
 0x14c   : > { %v588_v51 = vpop.f32.mrf.mxu1 }
 0x14d   : > { %v985_v5 = vadd.f32 %v943_v2, %v792_v3  ;;  %v448_v6 = vpop.permute.xlu1 %447 }
 0x14e   : > { %v465_v8 = vmul.f32 %v448_v6, %v385_v4 }
 0x14f   : > { %v1005_v24 = vadd.f32 %v1675_v23, %v985_v5 }
 0x150   : > { %543 = vmatmul.f32.gmra.mxu0 %v465_v8 }
 0x151   : > { %vm1021_vm3 = vcmp.ge.f32.partialorder %v1005_v24, 0.0  ;;  %v1037_v7 = vmul.f32 0.01, %v1005_v24  ;;  %v946_v20 = vpop.f32.mrf.mxu3 }
 0x152   : > { %v753_v18 = vpop.f32.mrf.mxu2 }
 0x153   : > { %v1053_v12 = vsel %vm1021_vm3, %v1005_v24, %v1037_v7 }
 0x154   : > { %1069 = vst [vmem:[%s1684_s27 + $0x18] sm:$0xff] %v1053_v12  ;;  %v591_v17 = vpop.f32.mrf.mxu1 }
 0x155   : > { %v511_v47 = vpop.f32.mrf.mxu0 }
 0x156   : > { %v577_v19 = vadd.f32 %v576_v16, %v511_v47 }
 0x158   : > { %v793_v21 = vadd.f32 %v753_v18, %v577_v19 }
 0x159   : > { %v949_v29 = vpop.f32.mrf.mxu3 }
 0x15a   : > { %v986_v57 = vadd.f32 %v946_v20, %v793_v21  ;;  %v756_v27 = vpop.f32.mrf.mxu2 }
 0x15c   : > { %v1006_v25 = vadd.f32 %v1675_v23, %v986_v57  ;;  %v594_v4 = vpop.f32.mrf.mxu1 }
 0x15d   : > { %v514_v26 = vpop.f32.mrf.mxu0 }
 0x15e   : > { %vm1022_vm4 = vcmp.ge.f32.partialorder %v1006_v25, 0.0  ;;  %v1038_v14 = vmul.f32 0.01, %v1006_v25  ;;  %v580_v28 = vadd.f32 %v579_v22, %v514_v26 }
 0x160   : > { %v1054_v30 = vsel %vm1022_vm4, %v1006_v25, %v1038_v14  ;;  %v794_v15 = vadd.f32 %v756_v27, %v580_v28 }
 0x161   : > { %1070 = vst [vmem:[%s1684_s27 + $0x20] sm:$0xff] %v1054_v30 }
 0x162   : > { %v987_v31 = vadd.f32 %v949_v29, %v794_v15  ;;  %v759_v13 = vpop.f32.mrf.mxu2 }
 0x164   : > { %v1007_v11 = vadd.f32 %v1675_v23, %v987_v31  ;;  %v597_v20 = vpop.f32.mrf.mxu1 }
 0x165   : > { %v517_v33 = vpop.f32.mrf.mxu0 }
 0x166   : > { %vm1023_vm5 = vcmp.ge.f32.partialorder %v1007_v11, 0.0  ;;  %v1039_v34 = vmul.f32 0.01, %v1007_v11  ;;  %v583_v35 = vadd.f32 %v582_v32, %v517_v33 }
 0x168   : > { %v1055_v37 = vsel %vm1023_vm5, %v1007_v11, %v1039_v34  ;;  %v795_v9 = vadd.f32 %v759_v13, %v583_v35 }
 0x169   : > { %1071 = vst [vmem:[%s1684_s27 + $0x28] sm:$0xff] %v1055_v37 }
 0x16a   : > { %v762_v60 = vpop.f32.mrf.mxu2 }
 0x16c   : > { %v952_v38 = vpop.f32.mrf.mxu3  ;;  %v600_v15 = vpop.f32.mrf.mxu1 }
 0x16d   : > { %v988_v39 = vadd.f32 %v952_v38, %v795_v9  ;;  %v520_v40 = vpop.f32.mrf.mxu0 }
 0x16e   : > { %v586_v43 = vadd.f32 %v585_v41, %v520_v40 }
 0x16f   : > { %v1008_v42 = vadd.f32 %v1675_v23, %v988_v39 }
 0x170   : > { %v796_v46 = vadd.f32 %v762_v60, %v586_v43 }
 0x171   : > { %vm1024_vm6 = vcmp.ge.f32.partialorder %v1008_v42, 0.0  ;;  %v1040_v44 = vmul.f32 0.01, %v1008_v42 }
 0x173   : > { %v1056_v45 = vsel %vm1024_vm6, %v1008_v42, %v1040_v44 }
 0x174   : > { %1072 = vst [vmem:[%s1684_s27 + $0x30] sm:$0xff] %v1056_v45  ;;  %v955_v48 = vpop.f32.mrf.mxu3  ;;  %v603_v40 = vpop.f32.mrf.mxu1 }
 0x175   : > { %v989_v49 = vadd.f32 %v955_v48, %v796_v46  ;;  %v523_v55 = vpop.f32.mrf.mxu0 }
 0x176   : > { %v589_v56 = vadd.f32 %v588_v51, %v523_v55 }
 0x177   : > { %v1009_v50 = vadd.f32 %v1675_v23, %v989_v49 }
 0x179   : > { %vm1025_vm7 = vcmp.ge.f32.partialorder %v1009_v50, 0.0  ;;  %v1041_v54 = vmul.f32 0.01, %v1009_v50 }
 0x17b   : > { %v1057_v53 = vsel %vm1025_vm7, %v1009_v50, %v1041_v54 }
 0x17c   : > { %1073 = vst [vmem:[%s1684_s27 + $0x38] sm:$0xff] %v1057_v53  ;;  %v958_v59 = vpop.f32.mrf.mxu3 }
 0x17d   : > { %v765_v58 = vpop.f32.mrf.mxu2 }
 0x17e   : > { %v797_v61 = vadd.f32 %v765_v58, %v589_v56 }
 0x180   : > { %v990_v62 = vadd.f32 %v958_v59, %v797_v61 }
 0x182   : > { %v1010_v10 = vadd.f32 %v1675_v23, %v990_v62 }
 0x184   : > { %vm1026_vm8 = vcmp.ge.f32.partialorder %v1010_v10, 0.0  ;;  %v1042_v52 = vmul.f32 0.01, %v1010_v10  ;;  %v961_v2 = vpop.f32.mrf.mxu3 }
 0x185   : > { %v768_v36 = vpop.f32.mrf.mxu2 }
 0x186   : > { %v1058_v63 = vsel %vm1026_vm8, %v1010_v10, %v1042_v52 }
 0x187   : > { %1074 = vst [vmem:[%s1684_s27 + $0x40] sm:$0xff] %v1058_v63 }
 0x188   : > { %v526_v0 = vpop.f32.mrf.mxu0 }
 0x189   : > { %v592_v1 = vadd.f32 %v591_v17, %v526_v0 }
 0x18b   : > { %v798_v3 = vadd.f32 %v768_v36, %v592_v1 }
 0x18c   : > { %v964_v12 = vpop.f32.mrf.mxu3 }
 0x18d   : > { %v991_v5 = vadd.f32 %v961_v2, %v798_v3  ;;  %v771_v16 = vpop.f32.mrf.mxu2 }
 0x18f   : > { %v1011_v6 = vadd.f32 %v1675_v23, %v991_v5 }
 0x190   : > { %v529_v8 = vpop.f32.mrf.mxu0 }
 0x191   : > { %vm1027_vm9 = vcmp.ge.f32.partialorder %v1011_v6, 0.0  ;;  %v1043_v24 = vmul.f32 0.01, %v1011_v6  ;;  %v595_v7 = vadd.f32 %v594_v4, %v529_v8 }
 0x193   : > { %v1059_v47 = vsel %vm1027_vm9, %v1011_v6, %v1043_v24  ;;  %v799_v18 = vadd.f32 %v771_v16, %v595_v7 }
 0x194   : > { %1075 = vst [vmem:[%s1684_s27 + $0x48] sm:$0xff] %v1059_v47 }
 0x195   : > { %v992_v19 = vadd.f32 %v964_v12, %v799_v18  ;;  %v774_v14 = vpop.f32.mrf.mxu2 }
 0x197   : > { %v1012_v21 = vadd.f32 %v1675_v23, %v992_v19 }
 0x198   : > { %v532_v22 = vpop.f32.mrf.mxu0 }
 0x199   : > { %vm1028_vm10 = vcmp.ge.f32.partialorder %v1012_v21, 0.0  ;;  %v1044_v57 = vmul.f32 0.01, %v1012_v21  ;;  %v598_v25 = vadd.f32 %v597_v20, %v532_v22 }
 0x19b   : > { %v1060_v26 = vsel %vm1028_vm10, %v1012_v21, %v1044_v57  ;;  %v800_v27 = vadd.f32 %v774_v14, %v598_v25 }
 0x19c   : > { %1076 = vst [vmem:[%s1684_s27 + $0x50] sm:$0xff] %v1060_v26 }
 0x19d   : > { %v777_v11 = vpop.f32.mrf.mxu2 }
 0x19f   : > { %v967_v28 = vpop.f32.mrf.mxu3 }
 0x1a0   : > { %v993_v29 = vadd.f32 %v967_v28, %v800_v27  ;;  %v535_v30 = vpop.f32.mrf.mxu0 }
 0x1a1   : > { %v601_v32 = vadd.f32 %v600_v15, %v535_v30 }
 0x1a2   : > { %v1013_v31 = vadd.f32 %v1675_v23, %v993_v29 }
 0x1a3   : > { %v801_v35 = vadd.f32 %v777_v11, %v601_v32 }
 0x1a4   : > { %vm1029_vm11 = vcmp.ge.f32.partialorder %v1013_v31, 0.0  ;;  %v1045_v33 = vmul.f32 0.01, %v1013_v31 }
 0x1a6   : > { %v1061_v34 = vsel %vm1029_vm11, %v1013_v31, %v1045_v33 }
 0x1a7   : > { %1077 = vst [vmem:[%s1684_s27 + $0x58] sm:$0xff] %v1061_v34  ;;  %v970_v37 = vpop.f32.mrf.mxu3 }
 0x1a8   : > { %v994_v13 = vadd.f32 %v970_v37, %v801_v35  ;;  %v538_v39 = vpop.f32.mrf.mxu0 }
 0x1a9   : > { %v604_v42 = vadd.f32 %v603_v40, %v538_v39 }
 0x1aa   : > { %v1014_v9 = vadd.f32 %v1675_v23, %v994_v13 }
 0x1ac   : > { %vm1030_vm12 = vcmp.ge.f32.partialorder %v1014_v9, 0.0  ;;  %v1046_v38 = vmul.f32 0.01, %v1014_v9 }
 0x1ae   : > { %v1062_v41 = vsel %vm1030_vm12, %v1014_v9, %v1046_v38 }
 0x1af   : > { %1078 = vst [vmem:[%s1684_s27 + $0x60] sm:$0xff] %v1062_v41  ;;  %v973_v60 = vpop.f32.mrf.mxu3 }
 0x1b0   : > { %v780_v43 = vpop.f32.mrf.mxu2  ;;  %v541_v50 = vpop.f32.mrf.mxu0 }
 0x1b1   : > { %v802_v44 = vadd.f32 %v780_v43, %v604_v42 }
 0x1b3   : > { %v995_v45 = vadd.f32 %v973_v60, %v802_v44 }
 0x1b5   : > { %v1015_v46 = vadd.f32 %v1675_v23, %v995_v45 }
 0x1b7   : > { %vm1031_vm13 = vcmp.ge.f32.partialorder %v1015_v46, 0.0  ;;  %v1047_v48 = vmul.f32 0.01, %v1015_v46  ;;  %v976_v56 = vpop.f32.mrf.mxu3 }
 0x1b8   : > { %v783_v55 = vpop.f32.mrf.mxu2 }
 0x1b9   : > { %v1063_v49 = vsel %vm1031_vm13, %v1015_v46, %v1047_v48 }
 0x1ba   : > { %1079 = vst [vmem:[%s1684_s27 + $0x68] sm:$0xff] %v1063_v49 }
 0x1bb   : > { %v606_v51 = vpop.f32.mrf.mxu1 }
 0x1bc   : > { %v607_v54 = vadd.f32 %v606_v51, %v541_v50 }
 0x1be   : > { %v803_v53 = vadd.f32 %v783_v55, %v607_v54 }
 0x1c0   : > { %v996_v58 = vadd.f32 %v976_v56, %v803_v53  ;;  %v786_v52 = vpop.f32.mrf.mxu2 }
 0x1c2   : > { %v1016_v59 = vadd.f32 %v1675_v23, %v996_v58 }
 0x1c3   : > { %v609_v10 = vpop.f32.mrf.mxu1 }
 0x1c4   : > { %vm1032_vm14 = vcmp.ge.f32.partialorder %v1016_v59, 0.0  ;;  %v1048_v61 = vmul.f32 0.01, %v1016_v59 }
 0x1c6   : > { %v1064_v62 = vsel %vm1032_vm14, %v1016_v59, %v1048_v61 }
 0x1c7   : > { %1080 = vst [vmem:[%s1684_s27 + $0x70] sm:$0xff] %v1064_v62 }
 0x1ca   : > { %v979_v36 = vpop.f32.mrf.mxu3 }
 0x1cd   : > { %v544_v17 = vpop.f32.mrf.mxu0 }
 0x1ce   : > { %v610_v63 = vadd.f32 %v609_v10, %v544_v17 }
 0x1d0   : > { %v804_v0 = vadd.f32 %v786_v52, %v610_v63 }
 0x1d2   : > { %v997_v1 = vadd.f32 %v979_v36, %v804_v0 }
 0x1d4   : > { %v1017_v2 = vadd.f32 %v1675_v23, %v997_v1 }
 0x1d6   : > { %vm1033_vm15 = vcmp.ge.f32.partialorder %v1017_v2, 0.0  ;;  %v1049_v3 = vmul.f32 0.01, %v1017_v2 }
 0x1d8   : > { %v1065_v4 = vsel %vm1033_vm15, %v1017_v2, %v1049_v3 }
 0x1d9   : > { %1081 = vst [vmem:[%s1684_s27 + $0x78] sm:$0xff] %v1065_v4 }
 0x1da PF: > { %s14_s15 = sadd.s32 1, %s1221_s15  }
 0x1db   : > { %p11_p4 = scmp.ge.s32.totalorder %s14_s15, 6  }
 0x1dd   :  { %13 = sbr.rel (!%p11_p4) target bundleno = 1 (0x1), region = 69 }

// kernel: _lambda_.7
= control target key start
LH: loop header
LB: loop body
LE: loop exit
PB: predicated region body
PF: predicated region fallthrough
CT: control target
= control target key end

     0   :  { %s1203_s15 = smov 0   ;;  %s1690_s0 = inlined_call_operand.vmem [shape: f32[512,512], index: 0, kind: input, shape index: {}]   ;;  %s1691_s1 = inlined_call_operand.vmem [shape: f32[512,4], index: 1, kind: input, shape index: {}]   ;;  %s1692_s2 = inlined_call_operand.vmem [shape: f32[512,128], index: 2, kind: input, shape index: {}]   ;;  %s1693_s3 = inlined_call_operand.vmem [shape: f32[1,128], index: 3, kind: input, shape index: {}]   ;;  %s1694_s4 = inlined_call_operand.vmem [shape: f32[512,128], index: 4, kind: output, shape index: {}]  }
   0x1 LB: > { %s1102_s16 = sadd.s32 4294967295, %s1172_s15   ;;  %p1106_p0 = scmp.ge.s32.totalorder %s1172_s15, 1  ;;  %s1172_s15 = sphi %s1203_s15, %s14_s15  }
   0x2   : > { %p175_p1 = scmp.lt.s32.totalorder %s1172_s15, 5 }
   0x4   : > { %p176_p2 = pnand %p1106_p0, %p175_p1 }
   0x5   : > { %s1107_s17 = sshll.u32 (!%p176_p2), %s1102_s16, 4 }
   0x6   : > { %179 = sbr.rel (%p176_p2) target bundleno = 470 (0x1d6), region = 36  ;;  %p208_p3 = scmp.lt.s32.totalorder (!%p176_p2), %s1107_s17, 63 }
   0xb   : > { %v1174_v0 = vmov 0   ;;  %s1696_s17 = smov (!%p208_p3, %s1107_s17), 63  ;;  %v1175_v16 = vmov 3   ;;  %v1176_v17 = vmov 1   ;;  %v1177_v18 = vmov 2   ;;  %v369_v19 = vld [vmem:[%s1692_s2 + $0x78] sm:$0xff] }
   0xc   : > { %1131 = vset.pattern.permute.xlu2 %v1174_v0  ;;  %1130 = vset.pattern.permute.xlu1 %v1174_v0  ;;  %s1111_s18 = sshll.u32 %s1696_s17, 3  ;;  %v368_v20 = vld [vmem:[%s1692_s2 + $0x70] sm:$0xff]  ;;  %v367_v21 = vld [vmem:[%s1692_s2 + $0x68] sm:$0xff]  ;;  %v366_v22 = vld [vmem:[%s1692_s2 + $0x60] sm:$0xff]  ;;  %s1116_s28 = sshll.u32 %s1696_s17, 5 }
   0xd   : > { %1129 = vset.pattern.permute.xlu0 %v1174_v0  ;;  %s1222_s21 = scalar_lea.vmem %s1691_s1, %s1111_s18  ;;  %547 = vmatpush.msra.mxu1 %v369_v19  ;;  %v365_v23 = vld [vmem:[%s1692_s2 + $0x58] sm:$0xff]  ;;  %v364_v24 = vld [vmem:[%s1692_s2 + $0x50] sm:$0xff]  ;;  %v363_v25 = vld [vmem:[%s1692_s2 + $0x48] sm:$0xff]  ;;  %s1441_s16 = scalar_lea.vmem %s1690_s0, %s1116_s28 }
   0xe   : > { %v1225_v1 = vld [vmem:[%s1222_s21 + $0x20] sm:$0xff]  ;;  %v244_v2 = vld [vmem:[%s1222_s21 + $0x10] sm:$0xff]  ;;  %v1231_v4 = vld [vmem:[%s1222_s21 + $0x28] sm:$0xff]  ;;  %s1648_s27 = scalar_lea.vmem %s1694_s4, %s1111_s18 }
   0xf   : > { %v242_v3 = vld [vmem:[%s1222_s21] sm:$0xff]  ;;  %280 = vperm.xlu2 %1131, %v1225_v1   ;;  %270 = vperm.xlu1 %1130, %v244_v2   ;;  %v1234_v5 = vld [vmem:[%s1222_s21 + $0x18] sm:$0xff]  ;;  %v243_v6 = vld [vmem:[%s1222_s21 + $0x8] sm:$0xff] }
  0x10   : > { %260 = vperm.xlu0 %1129, %v242_v3   ;;  %v1240_v7 = vld [vmem:[%s1222_s21 + $0x40] sm:$0xff]  ;;  %v1243_v8 = vld [vmem:[%s1222_s21 + $0x38] sm:$0xff]  ;;  %v1246_v9 = vld [vmem:[%s1222_s21 + $0x30] sm:$0xff]  ;;  %548 = vmatpush.msra.mxu1 %v368_v20 }
  0x11   : > { %v1252_v10 = vld [vmem:[%s1222_s21 + $0x58] sm:$0xff]  ;;  %v1255_v11 = vld [vmem:[%s1222_s21 + $0x50] sm:$0xff]  ;;  %v1258_v12 = vld [vmem:[%s1222_s21 + $0x48] sm:$0xff] }
  0x12   : > { %v1264_v13 = vld [vmem:[%s1222_s21 + $0x70] sm:$0xff]  ;;  %v1267_v14 = vld [vmem:[%s1222_s21 + $0x68] sm:$0xff]  ;;  %v1270_v15 = vld [vmem:[%s1222_s21 + $0x60] sm:$0xff]  ;;  %549 = vmatpush.msra.mxu1 %v367_v21 }
  0x13   : > { %v362_v26 = vld [vmem:[%s1692_s2 + $0x40] sm:$0xff]  ;;  %v361_v27 = vld [vmem:[%s1692_s2 + $0x38] sm:$0xff]  ;;  %v360_v28 = vld [vmem:[%s1692_s2 + $0x30] sm:$0xff] }
  0x14   : > { %550 = vmatpush.msra.mxu1 %v366_v22  ;;  %v359_v29 = vld [vmem:[%s1692_s2 + $0x28] sm:$0xff]  ;;  %v358_v30 = vld [vmem:[%s1692_s2 + $0x20] sm:$0xff]  ;;  %v357_v31 = vld [vmem:[%s1692_s2 + $0x18] sm:$0xff] }
  0x15   : > { %v356_v32 = vld [vmem:[%s1692_s2 + $0x10] sm:$0xff]  ;;  %v355_v33 = vld [vmem:[%s1692_s2 + $0x8] sm:$0xff]  ;;  %v354_v34 = vld [vmem:[%s1692_s2] sm:$0xff] }
  0x16   : > { %551 = vmatpush.msra.mxu1 %v365_v23  ;;  %v481_v36 = vld [vmem:[%s1692_s2 + $0xf8] sm:$0xff]  ;;  %v480_v37 = vld [vmem:[%s1692_s2 + $0xf0] sm:$0xff]  ;;  %v479_v40 = vld [vmem:[%s1692_s2 + $0xe8] sm:$0xff] }
  0x17   : > { %285 = vperm.xlu2 %1131, %v1231_v4   ;;  %275 = vperm.xlu1 %1130, %v1234_v5   ;;  %v723_v38 = vld [vmem:[%s1692_s2 + $0x178] sm:$0xff]  ;;  %v722_v41 = vld [vmem:[%s1692_s2 + $0x170] sm:$0xff]  ;;  %v478_v43 = vld [vmem:[%s1692_s2 + $0xe0] sm:$0xff] }
  0x18   : > { %265 = vperm.xlu0 %1129, %v243_v6   ;;  %552 = vmatpush.msra.mxu1 %v364_v24  ;;  %v916_v39 = vld [vmem:[%s1692_s2 + $0x1f8] sm:$0xff]  ;;  %v915_v42 = vld [vmem:[%s1692_s2 + $0x1f0] sm:$0xff]  ;;  %v721_v45 = vld [vmem:[%s1692_s2 + $0x168] sm:$0xff] }
  0x19   : > { %482 = vmatpush.msra.mxu0 %v481_v36  ;;  %724 = vmatpush.msra.mxu2 %v723_v38  ;;  %v914_v46 = vld [vmem:[%s1692_s2 + $0x1e8] sm:$0xff]  ;;  %v477_v47 = vld [vmem:[%s1692_s2 + $0xd8] sm:$0xff]  ;;  %v720_v48 = vld [vmem:[%s1692_s2 + $0x160] sm:$0xff] }
  0x1a   : > { %553 = vmatpush.msra.mxu1 %v363_v25  ;;  %917 = vmatpush.msra.mxu3 %v916_v39  ;;  %v913_v49 = vld [vmem:[%s1692_s2 + $0x1e0] sm:$0xff]  ;;  %v476_v50 = vld [vmem:[%s1692_s2 + $0xd0] sm:$0xff]  ;;  %v719_v51 = vld [vmem:[%s1692_s2 + $0x158] sm:$0xff] }
  0x1b   : > { %483 = vmatpush.msra.mxu0 %v480_v37  ;;  %725 = vmatpush.msra.mxu2 %v722_v41  ;;  %v912_v52 = vld [vmem:[%s1692_s2 + $0x1d8] sm:$0xff]  ;;  %v475_v53 = vld [vmem:[%s1692_s2 + $0xc8] sm:$0xff]  ;;  %v718_v54 = vld [vmem:[%s1692_s2 + $0x150] sm:$0xff] }
  0x1c   : > { %554 = vmatpush.msra.mxu1 %v362_v26  ;;  %918 = vmatpush.msra.mxu3 %v915_v42  ;;  %v911_v55 = vld [vmem:[%s1692_s2 + $0x1d0] sm:$0xff]  ;;  %v474_v56 = vld [vmem:[%s1692_s2 + $0xc0] sm:$0xff]  ;;  %v717_v58 = vld [vmem:[%s1692_s2 + $0x148] sm:$0xff] }
  0x1d   : > { %484 = vmatpush.msra.mxu0 %v479_v40  ;;  %726 = vmatpush.msra.mxu2 %v721_v45  ;;  %v910_v59 = vld [vmem:[%s1692_s2 + $0x1c8] sm:$0xff]  ;;  %v473_v60 = vld [vmem:[%s1692_s2 + $0xb8] sm:$0xff]  ;;  %v716_v61 = vld [vmem:[%s1692_s2 + $0x140] sm:$0xff] }
  0x1e   : > { %555 = vmatpush.msra.mxu1 %v361_v27  ;;  %919 = vmatpush.msra.mxu3 %v914_v46  ;;  %v909_v62 = vld [vmem:[%s1692_s2 + $0x1c0] sm:$0xff]  ;;  %v472_v63 = vld [vmem:[%s1692_s2 + $0xb0] sm:$0xff]  ;;  %v713_v22 = vld [vmem:[%s1692_s2 + $0x128] sm:$0xff] }
  0x1f   : > { %300 = vperm.xlu2 %1131, %v1240_v7   ;;  %295 = vperm.xlu1 %1130, %v1243_v8   ;;  %v906_v24 = vld [vmem:[%s1692_s2 + $0x1a8] sm:$0xff]  ;;  %v469_v25 = vld [vmem:[%s1692_s2 + $0x98] sm:$0xff]  ;;  %v712_v26 = vld [vmem:[%s1692_s2 + $0x120] sm:$0xff] }
  0x20   : > { %290 = vperm.xlu0 %1129, %v1246_v9   ;;  %556 = vmatpush.msra.mxu1 %v360_v28  ;;  %v905_v27 = vld [vmem:[%s1692_s2 + $0x1a0] sm:$0xff]  ;;  %v468_v28 = vld [vmem:[%s1692_s2 + $0x90] sm:$0xff]  ;;  %v709_v40 = vld [vmem:[%s1692_s2 + $0x108] sm:$0xff] }
  0x21   : > { %485 = vmatpush.msra.mxu0 %v478_v43  ;;  %727 = vmatpush.msra.mxu2 %v720_v48  ;;  %v466_v39 = vld [vmem:[%s1692_s2 + $0x80] sm:$0xff]  ;;  %v902_v41 = vld [vmem:[%s1692_s2 + $0x188] sm:$0xff] }
  0x22   : > { %557 = vmatpush.msra.mxu1 %v359_v29  ;;  %920 = vmatpush.msra.mxu3 %v913_v49  ;;  %v904_v29 = vld [vmem:[%s1692_s2 + $0x198] sm:$0xff]  ;;  %v708_v42 = vld [vmem:[%s1692_s2 + $0x100] sm:$0xff] }
  0x23   : > { %486 = vmatpush.msra.mxu0 %v477_v47  ;;  %728 = vmatpush.msra.mxu2 %v719_v51  ;;  %v901_v43 = vld [vmem:[%s1692_s2 + $0x180] sm:$0xff]  ;;  %v370_v47 = vld [vmem:[%s1441_s16 + $0x8] sm:$0xff] }
  0x24   : > { %558 = vmatpush.msra.mxu1 %v358_v30  ;;  %921 = vmatpush.msra.mxu3 %v912_v52  ;;  %v227_v30 = vld [vmem:[%s1441_s16 + $0x20] sm:$0xff] }
  0x25   : > { %487 = vmatpush.msra.mxu0 %v476_v50  ;;  %729 = vmatpush.msra.mxu2 %v718_v54  ;;  %v228_v45 = vld [vmem:[%s1441_s16 + $0x40] sm:$0xff] }
  0x26   : > { %559 = vmatpush.msra.mxu1 %v357_v31  ;;  %922 = vmatpush.msra.mxu3 %v911_v55  ;;  %v467_v31 = vld [vmem:[%s1692_s2 + $0x88] sm:$0xff]  ;;  %v229_v51 = vld [vmem:[%s1441_s16 + $0x60] sm:$0xff] }
  0x27   : > { %315 = vperm.xlu2 %1131, %v1252_v10   ;;  %310 = vperm.xlu1 %1130, %v1255_v11  }
  0x28   : > { %305 = vperm.xlu0 %1129, %v1258_v12   ;;  %560 = vmatpush.msra.mxu1 %v356_v32 }
  0x29   : > { %488 = vmatpush.msra.mxu0 %v475_v53  ;;  %730 = vmatpush.msra.mxu2 %v717_v58 }
  0x2a   : > { %561 = vmatpush.msra.mxu1 %v355_v33  ;;  %923 = vmatpush.msra.mxu3 %v910_v59  ;;  %v710_v33 = vld [vmem:[%s1692_s2 + $0x110] sm:$0xff] }
  0x2b   : > { %489 = vmatpush.msra.mxu0 %v474_v56  ;;  %731 = vmatpush.msra.mxu2 %v716_v61  ;;  %v230_v56 = vld [vmem:[%s1441_s16 + $0x80] sm:$0xff] }
  0x2c   : > { %562 = vmatpush.msra.mxu1 %v354_v34  ;;  %924 = vmatpush.msra.mxu3 %v909_v62  ;;  %v903_v34 = vld [vmem:[%s1692_s2 + $0x190] sm:$0xff]  ;;  %v231_v61 = vld [vmem:[%s1441_s16 + $0xa0] sm:$0xff]  ;;  %v805_v62 = vld [vmem:[%s1441_s16 + $0x18] sm:$0xff] }
  0x2d   : > { %490 = vmatpush.msra.mxu0 %v473_v60 }
  0x2f   : > { %330 = vperm.xlu2 %1131, %v1264_v13   ;;  %325 = vperm.xlu1 %1130, %v1267_v14  }
  0x30   : > { %320 = vperm.xlu0 %1129, %v1270_v15   ;;  %491 = vmatpush.msra.mxu0 %v472_v63 }
  0x37   : > { %1133 = vset.pattern.permute.xlu1 %v1175_v16  ;;  %1134 = vset.pattern.permute.xlu2 %v1176_v17 }
  0x38   : > { %1132 = vset.pattern.permute.xlu0 %v1177_v18  ;;  %822 = vperm.xlu1 %1133, %v242_v3  }
  0x39   : > { %629 = vperm.xlu0 %1132, %v242_v3   ;;  %387 = vperm.xlu2 %1134, %v242_v3   ;;  %v471_v3 = vld [vmem:[%s1692_s2 + $0xa8] sm:$0xff] }
  0x3a   : > { %492 = vmatpush.msra.mxu0 %v471_v3 }
  0x40   : > { %1135 = vset.pattern.permute.xlu1 %v1177_v18 }
  0x41   : > { %1137 = vset.pattern.permute.xlu0 %v1176_v17  ;;  %633 = vperm.xlu1 %1135, %v243_v6  }
  0x42   : > { %391 = vperm.xlu0 %1137, %v243_v6   ;;  %1136 = vset.pattern.permute.xlu2 %v1175_v16 }
  0x43   : > { %826 = vperm.xlu2 %1136, %v243_v6   ;;  %v907_v6 = vld [vmem:[%s1692_s2 + $0x1b0] sm:$0xff] }
  0x49   : > { %637 = vperm.xlu1 %1135, %v244_v2  }
  0x4a   : > { %1140 = vset.pattern.permute.xlu0 %v1175_v16 }
  0x4b   : > { %834 = vperm.xlu0 %1140, %v1234_v5   ;;  %830 = vperm.xlu2 %1136, %v244_v2  }
  0x51   : > { %1138 = vset.pattern.permute.xlu1 %v1176_v17 }
  0x52   : > { %395 = vperm.xlu1 %1138, %v244_v2   ;;  %v908_v2 = vld [vmem:[%s1692_s2 + $0x1b8] sm:$0xff] }
  0x53   : > { %1143 = vset.pattern.permute.xlu0 %v1177_v18  ;;  %1139 = vset.pattern.permute.xlu2 %v1177_v18 }
  0x54   : > { %649 = vperm.xlu0 %1143, %v1231_v4   ;;  %641 = vperm.xlu2 %1139, %v1234_v5  }
  0x55   : > { %925 = vmatpush.msra.mxu3 %v908_v2 }
  0x57   : > { %926 = vmatpush.msra.mxu3 %v907_v6  ;;  %v1561_v6 = vld [vmem:[%s1222_s21 + $0x78] sm:$0xff] }
  0x59   : > { %927 = vmatpush.msra.mxu3 %v906_v24 }
  0x5a   : > { %399 = vperm.xlu1 %1138, %v1234_v5   ;;  %v226_v5 = vld [vmem:[%s1441_s16] sm:$0xff] }
  0x5b   : > { %928 = vmatpush.msra.mxu3 %v905_v27 }
  0x5c   : > { %645 = vperm.xlu2 %1139, %v1225_v1   ;;  %1146 = vset.pattern.permute.xlu0 %v1176_v17 }
  0x5d   : > { %411 = vperm.xlu0 %1146, %v1246_v9   ;;  %929 = vmatpush.msra.mxu3 %v904_v29  ;;  %v614_v29 = vld [vmem:[%s1441_s16 + $0x50] sm:$0xff] }
  0x5f   : > { %930 = vmatpush.msra.mxu3 %v903_v34  ;;  %v808_v34 = vld [vmem:[%s1441_s16 + $0x78] sm:$0xff] }
  0x61   : > { %931 = vmatpush.msra.mxu3 %v902_v41 }
  0x62   : > { %1141 = vset.pattern.permute.xlu1 %v1175_v16 }
  0x63   : > { %838 = vperm.xlu1 %1141, %v1225_v1   ;;  %932 = vmatpush.msra.mxu3 %v901_v43 }
  0x64   : > { %1142 = vset.pattern.permute.xlu2 %v1176_v17 }
  0x65   : > { %403 = vperm.xlu2 %1142, %v1225_v1   ;;  %1149 = vset.pattern.permute.xlu0 %v1175_v16  ;;  %v715_v1 = vld [vmem:[%s1692_s2 + $0x138] sm:$0xff] }
  0x66   : > { %854 = vperm.xlu0 %1149, %v1240_v7   ;;  %732 = vmatpush.msra.mxu2 %v715_v1 }
  0x69   : > { %v1346_v35 = vpop.permute.xlu2 %280 }
  0x6b   : > { %842 = vperm.xlu1 %1141, %v1231_v4  }
  0x6d   : > { %407 = vperm.xlu2 %1142, %v1231_v4   ;;  %v714_v4 = vld [vmem:[%s1692_s2 + $0x130] sm:$0xff] }
  0x6e   : > { %1152 = vset.pattern.permute.xlu0 %v1177_v18  ;;  %733 = vmatpush.msra.mxu2 %v714_v4  ;;  %v806_v4 = vld [vmem:[%s1441_s16 + $0x38] sm:$0xff] }
  0x6f   : > { %669 = vperm.xlu0 %1152, %v1255_v11  }
  0x70   : > { %734 = vmatpush.msra.mxu2 %v713_v22 }
  0x71   : > { %v1375_v44 = vpop.permute.xlu2 %285 }
  0x72   : > { %735 = vmatpush.msra.mxu2 %v712_v26  ;;  %v807_v26 = vld [vmem:[%s1441_s16 + $0x58] sm:$0xff] }
  0x73   : > { %1144 = vset.pattern.permute.xlu1 %v1177_v18 }
  0x74   : > { %653 = vperm.xlu1 %1144, %v1246_v9  }
  0x75   : > { %1145 = vset.pattern.permute.xlu2 %v1175_v16 }
  0x76   : > { %846 = vperm.xlu2 %1145, %v1246_v9   ;;  %v470_v9 = vld [vmem:[%s1692_s2 + $0xa0] sm:$0xff] }
  0x77   : > { %1155 = vset.pattern.permute.xlu0 %v1176_v17  ;;  %493 = vmatpush.msra.mxu0 %v470_v9  ;;  %v232_v9 = vld [vmem:[%s1441_s16 + $0xc0] sm:$0xff] }
  0x78   : > { %431 = vperm.xlu0 %1155, %v1252_v10  }
  0x79   : > { %v1418_v57 = vpop.permute.xlu2 %300  ;;  %494 = vmatpush.msra.mxu0 %v469_v25 }
  0x7b   : > { %495 = vmatpush.msra.mxu0 %v468_v28  ;;  %v233_v28 = vld [vmem:[%s1441_s16 + $0xe0] sm:$0xff] }
  0x7c   : > { %657 = vperm.xlu1 %1144, %v1243_v8  }
  0x7d   : > { %496 = vmatpush.msra.mxu0 %v467_v31 }
  0x7e   : > { %850 = vperm.xlu2 %1145, %v1243_v8  }
  0x7f   : > { %497 = vmatpush.msra.mxu0 %v466_v39 }
  0x80   : > { %1158 = vset.pattern.permute.xlu0 %v1175_v16 }
  0x81   : > { %v1467_v19 = vpop.permute.xlu2 %315  ;;  %v271_v20 = vpop.permute.xlu1 %270  ;;  %874 = vperm.xlu0 %1158, %v1267_v14  }
  0x82   : > { %v261_v21 = vpop.permute.xlu0 %260  ;;  %v340_v48 = vmul.f32 %v271_v20, %v228_v45  ;;  %v371_v20 = vld [vmem:[%s1441_s16 + $0x28] sm:$0xff]  ;;  %v616_v45 = vld [vmem:[%s1441_s16 + $0x90] sm:$0xff] }
  0x83   : > { %v338_v23 = vmul.f32 %v261_v21, %v226_v5 }
  0x84   : > { %1147 = vset.pattern.permute.xlu1 %v1176_v17 }
  0x85   : > { %563 = vmatmul.f32.vlgmr.msra.gmra.mxu1 %v338_v23  ;;  %415 = vperm.xlu1 %1147, %v1243_v8   ;;  %v711_v8 = vld [vmem:[%s1692_s2 + $0x118] sm:$0xff] }
  0x86   : > { %1148 = vset.pattern.permute.xlu2 %v1177_v18  ;;  %736 = vmatpush.msra.mxu2 %v711_v8 }
  0x87   : > { %661 = vperm.xlu2 %1148, %v1240_v7  }
  0x88   : > { %737 = vmatpush.msra.mxu2 %v710_v33 }
  0x89   : > { %v276_v32 = vpop.permute.xlu1 %275  ;;  %v1508_v37 = vpop.permute.xlu2 %330  ;;  %1161 = vset.pattern.permute.xlu0 %v1177_v18 }
  0x8a   : > { %v266_v36 = vpop.permute.xlu0 %265  ;;  %738 = vmatpush.msra.mxu2 %v709_v40  ;;  %v341_v54 = vmul.f32 %v276_v32, %v229_v51  ;;  %689 = vperm.xlu0 %1161, %v1561_v6   ;;  %v372_v40 = vld [vmem:[%s1441_s16 + $0x48] sm:$0xff]  ;;  %v236_v51 = vld [vmem:[%s1441_s16 + $0x140] sm:$0xff] }
  0x8b   : > { %v339_v38 = vmul.f32 %v266_v36, %v227_v30 }
  0x8c   : > { %739 = vmatpush.msra.mxu2 %v708_v42 }
  0x8d   : > { %566 = vmatmul.f32.gmra.mxu1 %v339_v38  ;;  %419 = vperm.xlu1 %1147, %v1240_v7   ;;  %v234_v38 = vld [vmem:[%s1441_s16 + $0x100] sm:$0xff] }
  0x8e   : > { %v346_v41 = vmul.f32 %v1418_v57, %v234_v38 }
  0x8f   : > { %665 = vperm.xlu2 %1148, %v1258_v12  }
  0x91   : > { %v1529_v46 = vpop.permute.xlu1 %295 }
  0x92   : > { %v291_v7 = vpop.permute.xlu0 %290  ;;  %1164 = vset.pattern.permute.xlu0 %v1175_v16  ;;  %v345_v30 = vmul.f32 %v1529_v46, %v233_v28  ;;  %v235_v46 = vld [vmem:[%s1441_s16 + $0x120] sm:$0xff] }
  0x93   : > { %v388_v49 = vpop.permute.xlu2 %387  ;;  %v344_v21 = vmul.f32 %v291_v7, %v232_v9  ;;  %v373_v7 = vld [vmem:[%s1441_s16 + $0x68] sm:$0xff]  ;;  %v811_v9 = vld [vmem:[%s1441_s16 + $0xd8] sm:$0xff] }
  0x94   : > { %v450_v50 = vmul.f32 %v388_v49, %v370_v47 }
  0x95   : > { %569 = vmatmul.f32.gmra.mxu1 %v340_v48  ;;  %1150 = vset.pattern.permute.xlu1 %v1175_v16 }
  0x96   : > { %858 = vperm.xlu1 %1150, %v1258_v12   ;;  %498 = vmatmul.f32.vlgmr.msra.gmra.mxu0 %v450_v50 }
  0x97   : > { %1151 = vset.pattern.permute.xlu2 %v1176_v17 }
  0x98   : > { %423 = vperm.xlu2 %1151, %v1258_v12   ;;  %v342_v12 = vmul.f32 %v1346_v35, %v230_v56  ;;  %v343_v35 = vmul.f32 %v1375_v44, %v231_v61  ;;  %v613_v44 = vld [vmem:[%s1441_s16 + $0x30] sm:$0xff] }
  0x99   : > { %v1538_v52 = vpop.permute.xlu1 %310 }
  0x9a   : > { %v1540_v53 = vpop.permute.xlu0 %305 }
  0x9b   : > { %v347_v57 = vmul.f32 %v1540_v53, %v235_v46  ;;  %v348_v53 = vmul.f32 %v1538_v52, %v236_v51  ;;  %v379_v46 = vld [vmem:[%s1441_s16 + $0x128] sm:$0xff] }
  0x9d   : > { %572 = vmatmul.f32.gmra.mxu1 %v341_v54  ;;  %v827_v55 = vpop.permute.xlu2 %826  ;;  %v374_v54 = vld [vmem:[%s1441_s16 + $0x88] sm:$0xff] }
  0x9e   : > { %862 = vperm.xlu1 %1150, %v1255_v11  }
  0xa0   : > { %427 = vperm.xlu2 %1151, %v1255_v11   ;;  %v612_v11 = vld [vmem:[%s1441_s16 + $0x10] sm:$0xff] }
  0xa1   : > { %v1545_v58 = vpop.permute.xlu1 %325 }
  0xa2   : > { %v1547_v59 = vpop.permute.xlu0 %320 }
  0xa5   : > { %575 = vmatmul.f32.gmra.mxu1 %v342_v12  ;;  %v831_v60 = vpop.permute.xlu2 %830 }
  0xa6   : > { %1153 = vset.pattern.permute.xlu1 %v1177_v18  ;;  %v887_v8 = vmul.f32 %v831_v60, %v807_v26  ;;  %v809_v60 = vld [vmem:[%s1441_s16 + $0x98] sm:$0xff] }
  0xa7   : > { %673 = vperm.xlu1 %1153, %v1252_v10  }
  0xa8   : > { %1154 = vset.pattern.permute.xlu2 %v1175_v16 }
  0xa9   : > { %866 = vperm.xlu2 %1154, %v1252_v10   ;;  %v886_v10 = vmul.f32 %v827_v55, %v806_v4 }
  0xaa   : > { %v823_v63 = vpop.permute.xlu1 %822 }
  0xab   : > { %v885_v1 = vmul.f32 %v823_v63, %v805_v62  ;;  %v630_v2 = vpop.permute.xlu0 %629  ;;  %v237_v62 = vld [vmem:[%s1441_s16 + $0x160] sm:$0xff] }
  0xac   : > { %v692_v3 = vmul.f32 %v630_v2, %v612_v11  ;;  %v375_v11 = vld [vmem:[%s1441_s16 + $0xa8] sm:$0xff] }
  0xad   : > { %578 = vmatmul.f32.gmra.mxu1 %v343_v35  ;;  %933 = vmatmul.f32.vlgmr.msra.gmra.mxu3 %v885_v1  ;;  %v810_v35 = vld [vmem:[%s1441_s16 + $0xb8] sm:$0xff] }
  0xae   : > { %740 = vmatmul.f32.vlgmr.msra.gmra.mxu2 %v692_v3  ;;  %v642_v5 = vpop.permute.xlu2 %641  ;;  %v238_v3 = vld [vmem:[%s1441_s16 + $0x180] sm:$0xff] }
  0xaf   : > { %677 = vperm.xlu1 %1153, %v1270_v15  }
  0xb1   : > { %870 = vperm.xlu2 %1154, %v1270_v15  }
  0xb3   : > { %v634_v22 = vpop.permute.xlu1 %633 }
  0xb4   : > { %v693_v23 = vmul.f32 %v634_v22, %v613_v44  ;;  %v392_v24 = vpop.permute.xlu0 %391  ;;  %v618_v44 = vld [vmem:[%s1441_s16 + $0xd0] sm:$0xff]  ;;  %v239_v22 = vld [vmem:[%s1441_s16 + $0x1a0] sm:$0xff] }
  0xb5   : > { %v451_v25 = vmul.f32 %v392_v24, %v371_v20  ;;  %581 = vmatmul.f32.gmra.mxu1 %v344_v21  ;;  %936 = vmatmul.f32.gmra.mxu3 %v886_v10 }
  0xb6   : > { %743 = vmatmul.f32.gmra.mxu2 %v693_v23  ;;  %v646_v27 = vpop.permute.xlu2 %645  ;;  %v812_v23 = vld [vmem:[%s1441_s16 + $0xf8] sm:$0xff] }
  0xb7   : > { %501 = vmatmul.f32.gmra.mxu0 %v451_v25  ;;  %1156 = vset.pattern.permute.xlu1 %v1176_v17  ;;  %v696_v47 = vmul.f32 %v646_v27, %v616_v45  ;;  %v351_v25 = vmul.f32 %v1545_v58, %v239_v22  ;;  %v622_v45 = vld [vmem:[%s1441_s16 + $0x150] sm:$0xff] }
  0xb8   : > { %435 = vperm.xlu1 %1156, %v1270_v15   ;;  %v615_v15 = vld [vmem:[%s1441_s16 + $0x70] sm:$0xff] }
  0xb9   : > { %1157 = vset.pattern.permute.xlu2 %v1177_v18  ;;  %v695_v39 = vmul.f32 %v642_v5, %v615_v15  ;;  %v376_v5 = vld [vmem:[%s1441_s16 + $0xc8] sm:$0xff] }
  0xba   : > { %681 = vperm.xlu2 %1157, %v1267_v14   ;;  %v377_v15 = vld [vmem:[%s1441_s16 + $0xe8] sm:$0xff] }
  0xbb   : > { %v638_v31 = vpop.permute.xlu1 %637 }
  0xbc   : > { %v694_v32 = vmul.f32 %v638_v31, %v614_v29  ;;  %v620_v31 = vld [vmem:[%s1441_s16 + $0x110] sm:$0xff] }
  0xbd   : > { %584 = vmatmul.f32.gmra.mxu1 %v345_v30  ;;  %939 = vmatmul.f32.gmra.mxu3 %v887_v8  ;;  %v835_v33 = vpop.permute.xlu0 %834  ;;  %v240_v8 = vld [vmem:[%s1441_s16 + $0x1c0] sm:$0xff]  ;;  %v813_v30 = vld [vmem:[%s1441_s16 + $0x118] sm:$0xff] }
  0xbe   : > { %746 = vmatmul.f32.gmra.mxu2 %v694_v32  ;;  %v888_v18 = vmul.f32 %v835_v33, %v808_v34  ;;  %v352_v33 = vmul.f32 %v1508_v37, %v240_v8  ;;  %v383_v8 = vld [vmem:[%s1441_s16 + $0x1a8] sm:$0xff] }
  0xbf   : > { %v404_v36 = vpop.permute.xlu2 %403 }
  0xc0   : > { %439 = vperm.xlu1 %1156, %v1267_v14   ;;  %v454_v12 = vmul.f32 %v404_v36, %v374_v54  ;;  %v815_v54 = vld [vmem:[%s1441_s16 + $0x158] sm:$0xff] }
  0xc2   : > { %685 = vperm.xlu2 %1157, %v1264_v13  }
  0xc4   : > { %v396_v42 = vpop.permute.xlu1 %395 }
  0xc5   : > { %v452_v43 = vmul.f32 %v396_v42, %v372_v40  ;;  %587 = vmatmul.f32.gmra.mxu1 %v346_v41  ;;  %942 = vmatmul.f32.gmra.mxu3 %v888_v18  ;;  %v621_v18 = vld [vmem:[%s1441_s16 + $0x130] sm:$0xff]  ;;  %v378_v41 = vld [vmem:[%s1441_s16 + $0x108] sm:$0xff] }
  0xc6   : > { %749 = vmatmul.f32.gmra.mxu2 %v695_v39  ;;  %v650_v50 = vpop.permute.xlu0 %649 }
  0xc7   : > { %504 = vmatmul.f32.gmra.mxu0 %v452_v43  ;;  %v408_v14 = vpop.permute.xlu2 %407 }
  0xc8   : > { %1159 = vset.pattern.permute.xlu1 %v1175_v16  ;;  %v617_v16 = vld [vmem:[%s1441_s16 + $0xb0] sm:$0xff]  ;;  %v455_v52 = vmul.f32 %v408_v14, %v375_v11 }
  0xc9   : > { %878 = vperm.xlu1 %1159, %v1264_v13   ;;  %v697_v56 = vmul.f32 %v650_v50, %v617_v16  ;;  %v380_v50 = vld [vmem:[%s1441_s16 + $0x148] sm:$0xff]  ;;  %v623_v11 = vld [vmem:[%s1441_s16 + $0x170] sm:$0xff] }
  0xca   : > { %1160 = vset.pattern.permute.xlu2 %v1176_v17 }
  0xcb   : > { %443 = vperm.xlu2 %1160, %v1264_v13  }
  0xcc   : > { %v400_v48 = vpop.permute.xlu1 %399 }
  0xcd   : > { %v453_v49 = vmul.f32 %v400_v48, %v373_v7  ;;  %590 = vmatmul.f32.gmra.mxu1 %v347_v57  ;;  %v814_v57 = vld [vmem:[%s1441_s16 + $0x138] sm:$0xff] }
  0xce   : > { %752 = vmatmul.f32.gmra.mxu2 %v696_v47 }
  0xcf   : > { %507 = vmatmul.f32.gmra.mxu0 %v453_v49  ;;  %v412_v4 = vpop.permute.xlu0 %411 }
  0xd0   : > { %v847_v55 = vpop.permute.xlu2 %846 }
  0xd1   : > { %882 = vperm.xlu1 %1159, %v1561_v6  }
  0xd3   : > { %1162 = vset.pattern.permute.xlu2 %v1174_v0  ;;  %v349_v0 = vmul.f32 %v1467_v19, %v237_v62  ;;  %v891_v19 = vmul.f32 %v847_v55, %v811_v9  ;;  %v818_v9 = vld [vmem:[%s1441_s16 + $0x1b8] sm:$0xff] }
  0xd4   : > { %335 = vperm.xlu2 %1162, %v1561_v6  }
  0xd5   : > { %593 = vmatmul.f32.gmra.mxu1 %v348_v53  ;;  %v839_v13 = vpop.permute.xlu1 %838 }
  0xd6   : > { %v889_v61 = vmul.f32 %v839_v13, %v809_v60  ;;  %755 = vmatmul.f32.gmra.mxu2 %v697_v56  ;;  %v816_v60 = vld [vmem:[%s1441_s16 + $0x178] sm:$0xff] }
  0xd7   : > { %510 = vmatmul.f32.gmra.mxu0 %v454_v12  ;;  %v381_v12 = vld [vmem:[%s1441_s16 + $0x168] sm:$0xff] }
  0xd8   : > { %945 = vmatmul.f32.gmra.mxu3 %v889_v61  ;;  %v851_v63 = vpop.permute.xlu2 %850  ;;  %v855_v29 = vpop.permute.xlu0 %854 }
  0xd9   : > { %1163 = vset.pattern.permute.xlu1 %v1176_v17  ;;  %v350_v17 = vmul.f32 %v1547_v59, %v238_v3  ;;  %v892_v26 = vmul.f32 %v851_v63, %v812_v23  ;;  %v619_v59 = vld [vmem:[%s1441_s16 + $0xf0] sm:$0xff]  ;;  %v893_v34 = vmul.f32 %v855_v29, %v813_v30 }
  0xda   : > { %447 = vperm.xlu1 %1163, %v1561_v6   ;;  %v456_v6 = vmul.f32 %v412_v4, %v376_v5 }
  0xdd   : > { %596 = vmatmul.f32.gmra.mxu1 %v349_v0  ;;  %v843_v1 = vpop.permute.xlu1 %842 }
  0xde   : > { %v890_v2 = vmul.f32 %v843_v1, %v810_v35 }
  0xdf   : > { %513 = vmatmul.f32.gmra.mxu0 %v455_v52  ;;  %v817_v52 = vld [vmem:[%s1441_s16 + $0x198] sm:$0xff] }
  0xe0   : > { %948 = vmatmul.f32.gmra.mxu3 %v890_v2  ;;  %v624_v2 = vld [vmem:[%s1441_s16 + $0x190] sm:$0xff] }
  0xe1   : > { %v662_v10 = vpop.permute.xlu2 %661  ;;  %v670_v37 = vpop.permute.xlu0 %669 }
  0xe2   : > { %v700_v58 = vmul.f32 %v662_v10, %v620_v31  ;;  %v702_v47 = vmul.f32 %v670_v37, %v622_v45  ;;  %v625_v10 = vld [vmem:[%s1441_s16 + $0x1b0] sm:$0xff]  ;;  %v819_v45 = vld [vmem:[%s1441_s16 + $0x1d8] sm:$0xff] }
  0xe5   : > { %599 = vmatmul.f32.gmra.mxu1 %v350_v17 }
  0xe6   : > { %v654_v20 = vpop.permute.xlu1 %653 }
  0xe7   : > { %v698_v21 = vmul.f32 %v654_v20, %v618_v44  ;;  %516 = vmatmul.f32.gmra.mxu0 %v456_v6  ;;  %v382_v44 = vld [vmem:[%s1441_s16 + $0x188] sm:$0xff] }
  0xe8   : > { %951 = vmatmul.f32.gmra.mxu3 %v891_v19 }
  0xe9   : > { %758 = vmatmul.f32.gmra.mxu2 %v698_v21  ;;  %v666_v24 = vpop.permute.xlu2 %665 }
  0xea   : > { %v701_v40 = vmul.f32 %v666_v24, %v621_v18  ;;  %v432_v53 = vpop.permute.xlu0 %431  ;;  %v626_v24 = vld [vmem:[%s1441_s16 + $0x1d0] sm:$0xff] }
  0xeb   : > { %v461_v61 = vmul.f32 %v432_v53, %v381_v12  ;;  %v627_v18 = vld [vmem:[%s1441_s16 + $0x1f0] sm:$0xff] }
  0xed   : > { %602 = vmatmul.f32.gmra.mxu1 %v351_v25  ;;  %v241_v25 = vld [vmem:[%s1441_s16 + $0x1e0] sm:$0xff] }
  0xee   : > { %v658_v27 = vpop.permute.xlu1 %657 }
  0xef   : > { %v699_v28 = vmul.f32 %v658_v27, %v619_v59 }
  0xf0   : > { %954 = vmatmul.f32.gmra.mxu3 %v892_v26 }
  0xf1   : > { %761 = vmatmul.f32.gmra.mxu2 %v699_v28 }
  0xf2   : > { %v424_v32 = vpop.permute.xlu2 %423 }
  0xf3   : > { %v459_v7 = vmul.f32 %v424_v32, %v379_v46  ;;  %v875_v5 = vpop.permute.xlu0 %874  ;;  %v1641_v32 = vld [vmem:[%s1693_s3] ss:$0 sm:$0xff] }
  0xf4   : > { %v898_v6 = vmul.f32 %v875_v5, %v818_v9 }
  0xf5   : > { %605 = vmatmul.f32.gmra.mxu1 %v352_v33 }
  0xf7   : > { %v416_v36 = vpop.permute.xlu1 %415 }
  0xf8   : > { %v457_v38 = vmul.f32 %v416_v36, %v377_v15  ;;  %957 = vmatmul.f32.gmra.mxu3 %v893_v34 }
  0xf9   : > { %764 = vmatmul.f32.gmra.mxu2 %v700_v58 }
  0xfa   : > { %519 = vmatmul.f32.gmra.mxu0 %v457_v38  ;;  %v428_v39 = vpop.permute.xlu2 %427 }
  0xfb   : > { %v460_v51 = vmul.f32 %v428_v39, %v380_v50  ;;  %v820_v50 = vld [vmem:[%s1441_s16 + $0x1f8] sm:$0xff] }
  0xfc   : > { %v690_v38 = vpop.permute.xlu0 %689 }
  0xff   : > { %v420_v42 = vpop.permute.xlu1 %419 }
 0x100   : > { %v458_v43 = vmul.f32 %v420_v42, %v378_v41  ;;  %v707_v42 = vmul.f32 %v690_v38, %v627_v18 }
 0x101   : > { %767 = vmatmul.f32.gmra.mxu2 %v701_v40  ;;  %v384_v40 = vld [vmem:[%s1441_s16 + $0x1c8] sm:$0xff] }
 0x102   : > { %522 = vmatmul.f32.gmra.mxu0 %v458_v43  ;;  %v564_v20 = vpop.f32.mrf.mxu1 }
 0x103   : > { %v867_v14 = vpop.permute.xlu2 %866 }
 0x104   : > { %v896_v62 = vmul.f32 %v867_v14, %v816_v60 }
 0x108   : > { %v859_v48 = vpop.permute.xlu1 %858 }
 0x109   : > { %v894_v49 = vmul.f32 %v859_v48, %v814_v57  ;;  %770 = vmatmul.f32.gmra.mxu2 %v702_v47 }
 0x10a   : > { %525 = vmatmul.f32.gmra.mxu0 %v459_v7  ;;  %v567_v58 = vpop.f32.mrf.mxu1 }
 0x10b   : > { %960 = vmatmul.f32.gmra.mxu3 %v894_v49  ;;  %v871_v16 = vpop.permute.xlu2 %870 }
 0x10c   : > { %v897_v1 = vmul.f32 %v871_v16, %v817_v52 }
 0x110   : > { %v863_v55 = vpop.permute.xlu1 %862 }
 0x111   : > { %v895_v56 = vmul.f32 %v863_v55, %v815_v54 }
 0x112   : > { %528 = vmatmul.f32.gmra.mxu0 %v460_v51  ;;  %v570_v49 = vpop.f32.mrf.mxu1 }
 0x113   : > { %963 = vmatmul.f32.gmra.mxu3 %v895_v56  ;;  %v499_v23 = vpop.f32.mrf.mxu0 }
 0x114   : > { %v682_v13 = vpop.permute.xlu2 %681  ;;  %v565_v27 = vadd.f32 %v564_v20, %v499_v23 }
 0x115   : > { %v705_v19 = vmul.f32 %v682_v13, %v625_v10 }
 0x119   : > { %v674_v63 = vpop.permute.xlu1 %673 }
 0x11a   : > { %v703_v0 = vmul.f32 %v674_v63, %v623_v11  ;;  %531 = vmatmul.f32.gmra.mxu0 %v461_v61  ;;  %v573_v60 = vpop.f32.mrf.mxu1  ;;  %v385_v61 = vld [vmem:[%s1441_s16 + $0x1e8] sm:$0xff] }
 0x11b   : > { %966 = vmatmul.f32.gmra.mxu3 %v896_v62 }
 0x11c   : > { %773 = vmatmul.f32.gmra.mxu2 %v703_v0  ;;  %v686_v35 = vpop.permute.xlu2 %685 }
 0x11d   : > { %v706_v28 = vmul.f32 %v686_v35, %v626_v24 }
 0x121   : > { %v678_v3 = vpop.permute.xlu1 %677 }
 0x122   : > { %v704_v4 = vmul.f32 %v678_v3, %v624_v2 }
 0x123   : > { %969 = vmatmul.f32.gmra.mxu3 %v897_v1 }
 0x124   : > { %776 = vmatmul.f32.gmra.mxu2 %v704_v4  ;;  %v576_v4 = vpop.f32.mrf.mxu1 }
 0x125   : > { %v444_v17 = vpop.permute.xlu2 %443 }
 0x126   : > { %v464_v37 = vmul.f32 %v444_v17, %v384_v40 }
 0x12a   : > { %v436_v21 = vpop.permute.xlu1 %435 }
 0x12b   : > { %v462_v22 = vmul.f32 %v436_v21, %v382_v44  ;;  %972 = vmatmul.f32.gmra.mxu3 %v898_v6 }
 0x12c   : > { %779 = vmatmul.f32.gmra.mxu2 %v705_v19  ;;  %v579_v21 = vpop.f32.mrf.mxu1 }
 0x12d   : > { %534 = vmatmul.f32.gmra.mxu0 %v462_v22 }
 0x12e   : > { %v336_v26 = vpop.permute.xlu2 %335 }
 0x12f   : > { %v353_v59 = vmul.f32 %v336_v26, %v241_v25 }
 0x130   : > { %v934_v30 = vpop.f32.mrf.mxu3 }
 0x131   : > { %v741_v29 = vpop.f32.mrf.mxu2  ;;  %608 = vmatmul.f32.gmra.mxu1 %v353_v59 }
 0x132   : > { %v789_v31 = vadd.f32 %v741_v29, %v565_v27  ;;  %v440_v33 = vpop.permute.xlu1 %439 }
 0x133   : > { %v463_v34 = vmul.f32 %v440_v33, %v383_v8 }
 0x134   : > { %v982_v15 = vadd.f32 %v934_v30, %v789_v31  ;;  %782 = vmatmul.f32.gmra.mxu2 %v706_v28  ;;  %v502_v36 = vpop.f32.mrf.mxu0  ;;  %v582_v28 = vpop.f32.mrf.mxu1 }
 0x135   : > { %537 = vmatmul.f32.gmra.mxu0 %v463_v34  ;;  %v568_v41 = vadd.f32 %v567_v58, %v502_v36 }
 0x136   : > { %v1002_v39 = vadd.f32 %v1641_v32, %v982_v15 }
 0x138   : > { %1018 = vst [vmem:[%s1648_s27] sm:$0xff] %v1002_v39  ;;  %v937_v14 = vpop.f32.mrf.mxu3 }
 0x139   : > { %v744_v43 = vpop.f32.mrf.mxu2 }
 0x13a   : > { %v790_v46 = vadd.f32 %v744_v43, %v568_v41 }
 0x13b   : > { %v879_v47 = vpop.permute.xlu1 %878 }
 0x13c   : > { %v983_v7 = vadd.f32 %v937_v14, %v790_v46  ;;  %v899_v57 = vmul.f32 %v879_v47, %v819_v45  ;;  %785 = vmatmul.f32.gmra.mxu2 %v707_v42  ;;  %v585_v15 = vpop.f32.mrf.mxu1 }
 0x13d   : > { %540 = vmatmul.f32.gmra.mxu0 %v464_v37 }
 0x13e   : > { %v1003_v48 = vadd.f32 %v1641_v32, %v983_v7  ;;  %975 = vmatmul.f32.gmra.mxu3 %v899_v57 }
 0x140   : > { %1019 = vst [vmem:[%s1648_s27 + $0x8] sm:$0xff] %v1003_v48  ;;  %v940_v53 = vpop.f32.mrf.mxu3 }
 0x141   : > { %v747_v16 = vpop.f32.mrf.mxu2 }
 0x143   : > { %v883_v51 = vpop.permute.xlu1 %882 }
 0x144   : > { %v900_v54 = vmul.f32 %v883_v51, %v820_v50  ;;  %v505_v55 = vpop.f32.mrf.mxu0  ;;  %v588_v41 = vpop.f32.mrf.mxu1 }
 0x145   : > { %v571_v56 = vadd.f32 %v570_v49, %v505_v55 }
 0x146   : > { %978 = vmatmul.f32.gmra.mxu3 %v900_v54 }
 0x147   : > { %v791_v12 = vadd.f32 %v747_v16, %v571_v56 }
 0x148   : > { %v943_v1 = vpop.f32.mrf.mxu3 }
 0x149   : > { %v984_v13 = vadd.f32 %v940_v53, %v791_v12  ;;  %v750_v0 = vpop.f32.mrf.mxu2 }
 0x14b   : > { %v1004_v62 = vadd.f32 %v1641_v32, %v984_v13 }
 0x14c   : > { %v448_v11 = vpop.permute.xlu1 %447  ;;  %v508_v63 = vpop.f32.mrf.mxu0 }
 0x14d   : > { %1020 = vst [vmem:[%s1648_s27 + $0x10] sm:$0xff] %v1004_v62  ;;  %v465_v52 = vmul.f32 %v448_v11, %v385_v61  ;;  %v574_v35 = vadd.f32 %v573_v60, %v508_v63  ;;  %v591_v57 = vpop.f32.mrf.mxu1 }
 0x14f   : > { %543 = vmatmul.f32.gmra.mxu0 %v465_v52  ;;  %v792_v2 = vadd.f32 %v750_v0, %v574_v35 }
 0x151   : > { %v985_v3 = vadd.f32 %v943_v1, %v792_v2  ;;  %v753_v17 = vpop.f32.mrf.mxu2 }
 0x153   : > { %v1005_v5 = vadd.f32 %v1641_v32, %v985_v3 }
 0x154   : > { %v511_v9 = vpop.f32.mrf.mxu0 }
 0x155   : > { %1021 = vst [vmem:[%s1648_s27 + $0x18] sm:$0xff] %v1005_v5  ;;  %v577_v10 = vadd.f32 %v576_v4, %v511_v9  ;;  %v594_v53 = vpop.f32.mrf.mxu1 }
 0x157   : > { %v793_v6 = vadd.f32 %v753_v17, %v577_v10 }
 0x159   : > { %v756_v24 = vpop.f32.mrf.mxu2 }
 0x15b   : > { %v946_v19 = vpop.f32.mrf.mxu3 }
 0x15c   : > { %v986_v44 = vadd.f32 %v946_v19, %v793_v6  ;;  %v514_v20 = vpop.f32.mrf.mxu0 }
 0x15d   : > { %v580_v23 = vadd.f32 %v579_v21, %v514_v20  ;;  %v597_v52 = vpop.f32.mrf.mxu1 }
 0x15e   : > { %v1006_v22 = vadd.f32 %v1641_v32, %v986_v44 }
 0x15f   : > { %v794_v25 = vadd.f32 %v756_v24, %v580_v23 }
 0x160   : > { %1022 = vst [vmem:[%s1648_s27 + $0x20] sm:$0xff] %v1006_v22 }
 0x163   : > { %v949_v26 = vpop.f32.mrf.mxu3 }
 0x164   : > { %v987_v59 = vadd.f32 %v949_v26, %v794_v25  ;;  %v517_v8 = vpop.f32.mrf.mxu0 }
 0x165   : > { %v583_v29 = vadd.f32 %v582_v28, %v517_v8  ;;  %v600_v9 = vpop.f32.mrf.mxu1 }
 0x166   : > { %v1007_v27 = vadd.f32 %v1641_v32, %v987_v59 }
 0x168   : > { %1023 = vst [vmem:[%s1648_s27 + $0x28] sm:$0xff] %v1007_v27 }
 0x16b   : > { %v952_v33 = vpop.f32.mrf.mxu3 }
 0x16c   : > { %v759_v30 = vpop.f32.mrf.mxu2 }
 0x16d   : > { %v795_v31 = vadd.f32 %v759_v30, %v583_v29  ;;  %v603_v21 = vpop.f32.mrf.mxu1 }
 0x16f   : > { %v988_v34 = vadd.f32 %v952_v33, %v795_v31 }
 0x171   : > { %v1008_v58 = vadd.f32 %v1641_v32, %v988_v34 }
 0x173   : > { %1024 = vst [vmem:[%s1648_s27 + $0x30] sm:$0xff] %v1008_v58  ;;  %v955_v39 = vpop.f32.mrf.mxu3 }
 0x174   : > { %v762_v36 = vpop.f32.mrf.mxu2 }
 0x175   : > { %v606_v29 = vpop.f32.mrf.mxu1 }
 0x177   : > { %v520_v38 = vpop.f32.mrf.mxu0 }
 0x178   : > { %v586_v18 = vadd.f32 %v585_v15, %v520_v38 }
 0x17a   : > { %v796_v40 = vadd.f32 %v762_v36, %v586_v18 }
 0x17b   : > { %v958_v14 = vpop.f32.mrf.mxu3 }
 0x17c   : > { %v989_v42 = vadd.f32 %v955_v39, %v796_v40  ;;  %v765_v45 = vpop.f32.mrf.mxu2 }
 0x17e   : > { %v1009_v43 = vadd.f32 %v1641_v32, %v989_v42 }
 0x17f   : > { %v523_v37 = vpop.f32.mrf.mxu0 }
 0x180   : > { %1025 = vst [vmem:[%s1648_s27 + $0x38] sm:$0xff] %v1009_v43  ;;  %v589_v46 = vadd.f32 %v588_v41, %v523_v37 }
 0x182   : > { %v797_v47 = vadd.f32 %v765_v45, %v589_v46 }
 0x184   : > { %v990_v7 = vadd.f32 %v958_v14, %v797_v47  ;;  %v768_v16 = vpop.f32.mrf.mxu2 }
 0x186   : > { %v1010_v48 = vadd.f32 %v1641_v32, %v990_v7 }
 0x187   : > { %v526_v49 = vpop.f32.mrf.mxu0 }
 0x188   : > { %1026 = vst [vmem:[%s1648_s27 + $0x40] sm:$0xff] %v1010_v48  ;;  %v592_v50 = vadd.f32 %v591_v57, %v526_v49 }
 0x18a   : > { %v798_v51 = vadd.f32 %v768_v16, %v592_v50 }
 0x18c   : > { %v771_v13 = vpop.f32.mrf.mxu2 }
 0x18e   : > { %v961_v54 = vpop.f32.mrf.mxu3 }
 0x18f   : > { %v991_v55 = vadd.f32 %v961_v54, %v798_v51  ;;  %v529_v56 = vpop.f32.mrf.mxu0 }
 0x190   : > { %v595_v60 = vadd.f32 %v594_v53, %v529_v56 }
 0x191   : > { %v1011_v12 = vadd.f32 %v1641_v32, %v991_v55 }
 0x192   : > { %v799_v61 = vadd.f32 %v771_v13, %v595_v60 }
 0x193   : > { %1027 = vst [vmem:[%s1648_s27 + $0x48] sm:$0xff] %v1011_v12 }
 0x196   : > { %v964_v62 = vpop.f32.mrf.mxu3 }
 0x197   : > { %v992_v11 = vadd.f32 %v964_v62, %v799_v61  ;;  %v532_v0 = vpop.f32.mrf.mxu0 }
 0x198   : > { %v598_v35 = vadd.f32 %v597_v52, %v532_v0 }
 0x199   : > { %v1012_v63 = vadd.f32 %v1641_v32, %v992_v11 }
 0x19b   : > { %1028 = vst [vmem:[%s1648_s27 + $0x50] sm:$0xff] %v1012_v63 }
 0x19e   : > { %v967_v3 = vpop.f32.mrf.mxu3 }
 0x19f   : > { %v774_v1 = vpop.f32.mrf.mxu2 }
 0x1a0   : > { %v800_v2 = vadd.f32 %v774_v1, %v598_v35 }
 0x1a2   : > { %v993_v4 = vadd.f32 %v967_v3, %v800_v2 }
 0x1a4   : > { %v1013_v5 = vadd.f32 %v1641_v32, %v993_v4 }
 0x1a6   : > { %1029 = vst [vmem:[%s1648_s27 + $0x58] sm:$0xff] %v1013_v5  ;;  %v970_v19 = vpop.f32.mrf.mxu3 }
 0x1a7   : > { %v777_v10 = vpop.f32.mrf.mxu2 }
 0x1aa   : > { %v535_v17 = vpop.f32.mrf.mxu0 }
 0x1ab   : > { %v601_v6 = vadd.f32 %v600_v9, %v535_v17 }
 0x1ad   : > { %v801_v44 = vadd.f32 %v777_v10, %v601_v6 }
 0x1ae   : > { %v973_v26 = vpop.f32.mrf.mxu3  ;;  %v609_v36 = vpop.f32.mrf.mxu1 }
 0x1af   : > { %v994_v20 = vadd.f32 %v970_v19, %v801_v44  ;;  %v780_v25 = vpop.f32.mrf.mxu2 }
 0x1b1   : > { %v1014_v22 = vadd.f32 %v1641_v32, %v994_v20 }
 0x1b2   : > { %v538_v23 = vpop.f32.mrf.mxu0 }
 0x1b3   : > { %1030 = vst [vmem:[%s1648_s27 + $0x60] sm:$0xff] %v1014_v22  ;;  %v604_v24 = vadd.f32 %v603_v21, %v538_v23 }
 0x1b5   : > { %v802_v59 = vadd.f32 %v780_v25, %v604_v24 }
 0x1b7   : > { %v995_v27 = vadd.f32 %v973_v26, %v802_v59  ;;  %v783_v31 = vpop.f32.mrf.mxu2 }
 0x1b9   : > { %v1015_v28 = vadd.f32 %v1641_v32, %v995_v27 }
 0x1ba   : > { %v541_v8 = vpop.f32.mrf.mxu0 }
 0x1bb   : > { %1031 = vst [vmem:[%s1648_s27 + $0x68] sm:$0xff] %v1015_v28  ;;  %v607_v30 = vadd.f32 %v606_v29, %v541_v8 }
 0x1bd   : > { %v803_v33 = vadd.f32 %v783_v31, %v607_v30 }
 0x1bf   : > { %v786_v18 = vpop.f32.mrf.mxu2 }
 0x1c1   : > { %v976_v34 = vpop.f32.mrf.mxu3 }
 0x1c2   : > { %v996_v58 = vadd.f32 %v976_v34, %v803_v33 }
 0x1c4   : > { %v1016_v15 = vadd.f32 %v1641_v32, %v996_v58 }
 0x1c6   : > { %1032 = vst [vmem:[%s1648_s27 + $0x70] sm:$0xff] %v1016_v15 }
 0x1c9   : > { %v979_v41 = vpop.f32.mrf.mxu3 }
 0x1cc   : > { %v544_v38 = vpop.f32.mrf.mxu0 }
 0x1cd   : > { %v610_v39 = vadd.f32 %v609_v36, %v544_v38 }
 0x1cf   : > { %v804_v40 = vadd.f32 %v786_v18, %v610_v39 }
 0x1d1   : > { %v997_v42 = vadd.f32 %v979_v41, %v804_v40 }
 0x1d3   : > { %v1017_v43 = vadd.f32 %v1641_v32, %v997_v42 }
 0x1d5   : > { %1033 = vst [vmem:[%s1648_s27 + $0x78] sm:$0xff] %v1017_v43 }
 0x1d6 PF: > { %s14_s15 = sadd.s32 1, %s1172_s15  }
 0x1d7   : > { %p11_p4 = scmp.ge.s32.totalorder %s14_s15, 6  }
 0x1d9   :  { %13 = sbr.rel (!%p11_p4) target bundleno = 1 (0x1), region = 69 }

</bundles_post_ra>
